<compile_context>
chip_gen: v7x
topology: tpu7x:2x2x1
jax: 0.10.0
libtpu: 0.0.40
codegen_flags: <defaults>
</compile_context>

<pallas_src>
import functools

import numpy as np

import jax
import jax.numpy as jnp
from jax.experimental import pallas as pl
from jax.experimental.pallas import tpu as pltpu


# ----------------------------------------------------------------------------
# Host-built 0/1 column selectors for the fused 2x2 max-pools (they also do
# the channel re-interleave, so they stay as MXU matmuls).
# ----------------------------------------------------------------------------
def _pool1_col_selectors():
    """Conv1 lanes (oc*28 + w) -> pooled lanes (x*6 + oc), x = w // 2."""
    n_in, n_out = 6 * 28, 14 * 6
    w = np.arange(n_in)[:, None]
    x = np.arange(n_out)[None, :]
    ic_in, w_in = w // 28, w % 28
    ic_out, x_out = x % 6, x // 6
    same = ic_in == ic_out
    return jnp.asarray(np.stack([(same & (w_in == 2 * x_out)).astype(np.float32),
                                 (same & (w_in == 2 * x_out + 1)).astype(np.float32)]))


def _pool2_col_selectors():
    """Conv2 lanes (oc*10 + w) -> pooled lanes (oc*5 + x), x = w // 2."""
    n_in, n_out = 16 * 10, 16 * 5
    w = np.arange(n_in)[:, None]
    x = np.arange(n_out)[None, :]
    oc_in, w_in = w // 10, w % 10
    oc_out, x_out = x // 5, x % 5
    same = oc_in == oc_out
    return jnp.asarray(np.stack([(same & (w_in == 2 * x_out)).astype(np.float32),
                                 (same & (w_in == 2 * x_out + 1)).astype(np.float32)]))


# ----------------------------------------------------------------------------
# Fused LeNet-5 kernel (one grid step = one batch tile of `bt` samples).
# Layout convention: every 2-D intermediate has row index y*bt + b.
# ----------------------------------------------------------------------------
def _lenet5_kernel(x_ref, n1_ref, b1l_ref, m2_ref, b2l_ref, c1s_ref, c2s_ref,
                   fw1_ref, fb1_ref, fw2_ref, fb2_ref, fw3_ref, fb3_ref,
                   out_ref, *, bt):
    f32 = jnp.float32

    # ---- conv1 (1->6, 5x5 on the pre-padded 32x32 input) + ReLU -------------
    # 5 banded matmuls; batch is folded into M (rows = y*bt + b).
    acc1 = None
    for ki in range(5):
        win = x_ref[ki:ki + 28].reshape(28 * bt, 32)            # (28bt, 32)
        t = jnp.dot(win, n1_ref[ki], preferred_element_type=f32)
        acc1 = t if acc1 is None else acc1 + t
    c1 = jnp.maximum(acc1 + b1l_ref[...], 0.0)                  # (28bt,168) lanes oc*28+x

    # ---- pool1 (2x2 / 2): VPU row max + 0/1 column-selector matmuls ---------
    c1r = c1.reshape(14, 2 * bt, 168)
    rmax1 = jnp.maximum(c1r[:, :bt, :], c1r[:, bt:, :]).reshape(14 * bt, 168)
    p1 = jnp.maximum(
        jnp.dot(rmax1, c1s_ref[0], preferred_element_type=f32),
        jnp.dot(rmax1, c1s_ref[1], preferred_element_type=f32))
    # p1: (14bt, 84), row yo*bt + b, lanes x*6 + ic

    # ---- conv2 (6->16, 5x5, valid) + ReLU: 5 banded matmuls -----------------
    acc2 = None
    for ki in range(5):
        win = p1[ki * bt:(ki + 10) * bt, :]                     # (10bt, 84)
        t = jnp.dot(win, m2_ref[ki], preferred_element_type=f32)
        acc2 = t if acc2 is None else acc2 + t
    c2 = jnp.maximum(acc2 + b2l_ref[...], 0.0)                  # (10bt,160) lanes oc*10+x

    # ---- pool2 ---------------------------------------------------------------
    c2r = c2.reshape(5, 2 * bt, 160)
    rmax2 = jnp.maximum(c2r[:, :bt, :], c2r[:, bt:, :]).reshape(5 * bt, 160)
    p2 = jnp.maximum(
        jnp.dot(rmax2, c2s_ref[0], preferred_element_type=f32),
        jnp.dot(rmax2, c2s_ref[1], preferred_element_type=f32))
    # p2: (5bt, 80), row y*bt + b, lanes oc*5 + x

    # ---- fc1 with the PyTorch (C,H,W) flatten folded into 5 row blocks ------
    h1 = None
    for y in range(5):
        t = jnp.dot(p2[y * bt:(y + 1) * bt, :], fw1_ref[y],
                    preferred_element_type=f32)
        h1 = t if h1 is None else h1 + t
    h1 = jnp.maximum(h1 + fb1_ref[...], 0.0)                    # (bt, 120)

    # ---- fc2 -> fc3 (lane-dense 128-wide store) ------------------------------
    h2 = jnp.maximum(
        jnp.dot(h1, fw2_ref[...], preferred_element_type=f32) + fb2_ref[...], 0.0)
    out_ref[...] = (
        jnp.dot(h2, fw3_ref[...], preferred_element_type=f32) + fb3_ref[...])


# ----------------------------------------------------------------------------
# Wrapper: parameter prep (tiny, fused by XLA under jit) + the pallas_call.
# ----------------------------------------------------------------------------
def lenet5_forward(params, x_nchw):
    B = x_nchw.shape[0]
    # Batch tile: multiple of 8 (keeps all in-kernel reshapes sublane-tile
    # aligned), up to 64, and >=2 grid steps once B > 16 (v7x megacore).
    bt = min(64, 8 * max(1, -(-B // 16)))
    n_tiles = -(-B // bt)
    b_pad = n_tiles * bt

    # NCHW (C=1) -> (B, 28, 28); zero-pad spatially (conv1 padding=2), pad the
    # batch to a multiple of the tile, and go row-major: (32, b_pad, 32).
    x = x_nchw.astype(jnp.float32)[:, 0, :, :]
    x = jnp.pad(x, ((0, b_pad - B), (2, 2), (2, 2)))            # (b_pad, 32, 32)
    x = jnp.transpose(x, (1, 0, 2))                             # (32, b_pad, 32)

    w1 = params["w1"].astype(jnp.float32)        # (6, 1, 5, 5)
    b1 = params["b1"].astype(jnp.float32)
    w2 = params["w2"].astype(jnp.float32)        # (16, 6, 5, 5)
    b2 = params["b2"].astype(jnp.float32)

    # conv1 banded operands: n1[ki, w, oc*28+x] = w1[oc,0,ki,w-x], 0 <= w-x < 5.
    x_i = np.arange(28)[:, None, None]
    w_i = np.arange(32)[None, :, None]
    k_i = np.arange(5)[None, None, :]
    band1 = jnp.asarray((w_i == x_i + k_i).astype(np.float32))          # (28,32,5)
    n1 = jnp.einsum("xwj,okj->kwox", band1, w1.reshape(6, 5, 5)).reshape(5, 32, 168)
    b1lane = jnp.repeat(b1, 28)[None, :]                                # (1, 168)

    # conv2 banded operands (kj shift folded into the band):
    #   m2b[ki, x*6+ic, oc*10+xo] = w2[oc, ic, ki, x-xo], 0 <= x-xo < 5.
    xi = np.arange(14)[:, None, None]
    zo = np.arange(10)[None, :, None]
    kj = np.arange(5)[None, None, :]
    band2 = jnp.asarray((xi == zo + kj).astype(np.float32))             # (14,10,5)
    m2b = jnp.einsum("xzj,oikj->kxioz", band2, w2).reshape(5, 84, 160)
    b2lane = jnp.repeat(b2, 10)[None, :]                                # (1, 160)

    # Pool column selectors.
    c1s = _pool1_col_selectors()          # (2, 168, 84)
    c2s = _pool2_col_selectors()          # (2, 160, 80)

    # fc1 weight split into 5 per-pooled-row blocks matching p2's (oc*5+x)
    # lane layout; fc2 pre-transposed; fc3 padded to 128 lane-dense outputs.
    fw1b = params["fw1"].astype(jnp.float32).T.reshape(16, 5, 5, 120) \
        .transpose(1, 0, 2, 3).reshape(5, 80, 120)
    fb1 = params["fb1"].astype(jnp.float32)[None, :]
    fw2t = params["fw2"].astype(jnp.float32).T                          # (120, 84)
    fb2 = params["fb2"].astype(jnp.float32)[None, :]
    fw3p = jnp.zeros((84, 128), jnp.float32).at[:, :10].set(
        params["fw3"].astype(jnp.float32).T)
    fb3p = jnp.zeros((1, 128), jnp.float32).at[:, :10].set(
        params["fb3"].astype(jnp.float32)[None, :])

    resident = pl.BlockSpec(memory_space=pltpu.MemorySpace.VMEM)
    out = pl.pallas_call(
        functools.partial(_lenet5_kernel, bt=bt),
        out_shape=jax.ShapeDtypeStruct((b_pad, 128), jnp.float32),
        grid=(n_tiles,),
        in_specs=[pl.BlockSpec((32, bt, 32), lambda i: (0, i, 0))] + [resident] * 12,
        out_specs=pl.BlockSpec((bt, 128), lambda i: (i, 0)),
        compiler_params=pltpu.CompilerParams(dimension_semantics=("parallel",)),
    )(x, n1, b1lane, m2b, b2lane, c1s, c2s,
      fw1b, fb1, fw2t, fb2, fw3p, fb3p)

    return out[:B, :10]


# ----------------------------------------------------------------------------
# Parameters (PyTorch-style uniform init) and a pure-JAX reference.
# ----------------------------------------------------------------------------
def init_params(key):
    ks = jax.random.split(key, 10)

    def u(k, shape, fan_in):
        bound = 1.0 / jnp.sqrt(jnp.float32(fan_in))
        return jax.random.uniform(k, shape, jnp.float32, -bound, bound)

    return {
        "w1": u(ks[0], (6, 1, 5, 5), 1 * 5 * 5),
        "b1": u(ks[1], (6,), 1 * 5 * 5),
        "w2": u(ks[2], (16, 6, 5, 5), 6 * 5 * 5),
        "b2": u(ks[3], (16,), 6 * 5 * 5),
        "fw1": u(ks[4], (120, 400), 400),
        "fb1": u(ks[5], (120,), 400),
        "fw2": u(ks[6], (84, 120), 120),
        "fb2": u(ks[7], (84,), 120),
        "fw3": u(ks[8], (10, 84), 84),
        "fb3": u(ks[9], (10,), 84),
    }


def _reference_forward(params, x_nchw):
    def conv(x, w, b, pad):
        y = jax.lax.conv_general_dilated(
            x, w, (1, 1), [(pad, pad), (pad, pad)],
            dimension_numbers=("NCHW", "OIHW", "NCHW"))
        return jax.nn.relu(y + b[None, :, None, None])

    def pool(x):
        B, C, H, W = x.shape
        return x.reshape(B, C, H // 2, 2, W // 2, 2).max(axis=(3, 5))

    out = pool(conv(x_nchw, params["w1"], params["b1"], 2))
    out = pool(conv(out, params["w2"], params["b2"], 0))
    out = out.reshape(x_nchw.shape[0], -1)
    out = jax.nn.relu(out @ params["fw1"].T + params["fb1"])
    out = jax.nn.relu(out @ params["fw2"].T + params["fb2"])
    return out @ params["fw3"].T + params["fb3"]


if __name__ == "__main__":
    key = jax.random.PRNGKey(0)
    k_x, k_p = jax.random.split(key)
    # LeNet-5 requires 28x28 input so fc1 sees 16*5*5 = 400 features.
    x = jax.random.normal(k_x, (2, 1, 28, 28), jnp.float32)
    params = init_params(k_p)

    fwd = jax.jit(lenet5_forward)
    out = jax.block_until_ready(fwd(params, x))
    ref = jax.block_until_ready(_reference_forward(params, x))

    assert out.shape == (2, 10)
    err = float(jnp.max(jnp.abs(out - ref)))
    assert bool(jnp.allclose(out, ref, atol=1e-3, rtol=1e-3)), err
    print("KERNEL_OK")
</pallas_src>

<mosaic_0001>
module attributes {stable_mosaic.version = 11 : i64} {
  func.func @_lenet5_kernel(%arg0: i32, %arg1: memref<32x8x32xf32, #tpu.memory_space<vmem>>, %arg2: memref<5x32x168xf32, #tpu.memory_space<vmem>>, %arg3: memref<1x168xf32, #tpu.memory_space<vmem>>, %arg4: memref<5x84x160xf32, #tpu.memory_space<vmem>>, %arg5: memref<1x160xf32, #tpu.memory_space<vmem>>, %arg6: memref<2x168x84xf32, #tpu.memory_space<vmem>>, %arg7: memref<2x160x80xf32, #tpu.memory_space<vmem>>, %arg8: memref<5x80x120xf32, #tpu.memory_space<vmem>>, %arg9: memref<1x120xf32, #tpu.memory_space<vmem>>, %arg10: memref<120x84xf32, #tpu.memory_space<vmem>>, %arg11: memref<1x84xf32, #tpu.memory_space<vmem>>, %arg12: memref<84x128xf32, #tpu.memory_space<vmem>>, %arg13: memref<1x128xf32, #tpu.memory_space<vmem>>, %arg14: memref<8x128xf32, #tpu.memory_space<vmem>>) attributes {dimension_semantics = [#tpu.dimension_semantics<parallel>], iteration_bounds = array<i64: 1>, scalar_prefetch = 0 : i64, scratch_operands = 0 : i64, tpu.core_type = #tpu.core_type<tc>, window_params = [{transform_indices = @transform_0, window_bounds = array<i64: 32, 8, 32>}, {pipeline_mode = #tpu.pipeline_mode<synchronous>, transform_indices = @transform_1, window_bounds = array<i64: 5, 32, 168>}, {pipeline_mode = #tpu.pipeline_mode<synchronous>, transform_indices = @transform_2, window_bounds = array<i64: 1, 168>}, {pipeline_mode = #tpu.pipeline_mode<synchronous>, transform_indices = @transform_3, window_bounds = array<i64: 5, 84, 160>}, {pipeline_mode = #tpu.pipeline_mode<synchronous>, transform_indices = @transform_4, window_bounds = array<i64: 1, 160>}, {pipeline_mode = #tpu.pipeline_mode<synchronous>, transform_indices = @transform_5, window_bounds = array<i64: 2, 168, 84>}, {pipeline_mode = #tpu.pipeline_mode<synchronous>, transform_indices = @transform_6, window_bounds = array<i64: 2, 160, 80>}, {pipeline_mode = #tpu.pipeline_mode<synchronous>, transform_indices = @transform_7, window_bounds = array<i64: 5, 80, 120>}, {pipeline_mode = #tpu.pipeline_mode<synchronous>, transform_indices = @transform_8, window_bounds = array<i64: 1, 120>}, {pipeline_mode = #tpu.pipeline_mode<synchronous>, transform_indices = @transform_9, window_bounds = array<i64: 120, 84>}, {pipeline_mode = #tpu.pipeline_mode<synchronous>, transform_indices = @transform_10, window_bounds = array<i64: 1, 84>}, {pipeline_mode = #tpu.pipeline_mode<synchronous>, transform_indices = @transform_11, window_bounds = array<i64: 84, 128>}, {pipeline_mode = #tpu.pipeline_mode<synchronous>, transform_indices = @transform_12, window_bounds = array<i64: 1, 128>}, {transform_indices = @transform_13, window_bounds = array<i64: 8, 128>}]} {
    %c0 = arith.constant 0 : index
    %c0_0 = arith.constant 0 : index
    %c0_1 = arith.constant 0 : index
    %0 = vector.load %arg1[%c0, %c0_0, %c0_1] : memref<32x8x32xf32, #tpu.memory_space<vmem>>, vector<28x8x32xf32>
    %1 = vector.shape_cast %0 : vector<28x8x32xf32> to vector<224x32xf32>
    %c0_2 = arith.constant 0 : index
    %c0_3 = arith.constant 0 : index
    %c0_4 = arith.constant 0 : index
    %2 = vector.load %arg2[%c0_2, %c0_3, %c0_4] : memref<5x32x168xf32, #tpu.memory_space<vmem>>, vector<1x32x168xf32>
    %3 = vector.shape_cast %2 : vector<1x32x168xf32> to vector<32x168xf32>
    %cst = arith.constant dense<0.000000e+00> : vector<224x168xf32>
    %4 = tpu.matmul %1, %3, %cst {dimension_numbers = #tpu.dot_dimension_numbers<[1], [0], [0], [1], [0, 0, 1, 1], [], []>} : vector<224x32xf32>, vector<32x168xf32>, vector<224x168xf32> -> vector<224x168xf32>
    %c1 = arith.constant 1 : index
    %c0_5 = arith.constant 0 : index
    %c0_6 = arith.constant 0 : index
    %5 = vector.load %arg1[%c1, %c0_5, %c0_6] : memref<32x8x32xf32, #tpu.memory_space<vmem>>, vector<28x8x32xf32>
    %6 = vector.shape_cast %5 : vector<28x8x32xf32> to vector<224x32xf32>
    %c1_7 = arith.constant 1 : index
    %c0_8 = arith.constant 0 : index
    %c0_9 = arith.constant 0 : index
    %7 = vector.load %arg2[%c1_7, %c0_8, %c0_9] : memref<5x32x168xf32, #tpu.memory_space<vmem>>, vector<1x32x168xf32>
    %8 = vector.shape_cast %7 : vector<1x32x168xf32> to vector<32x168xf32>
    %cst_10 = arith.constant dense<0.000000e+00> : vector<224x168xf32>
    %9 = tpu.matmul %6, %8, %cst_10 {dimension_numbers = #tpu.dot_dimension_numbers<[1], [0], [0], [1], [0, 0, 1, 1], [], []>} : vector<224x32xf32>, vector<32x168xf32>, vector<224x168xf32> -> vector<224x168xf32>
    %10 = arith.addf %4, %9 : vector<224x168xf32>
    %c2 = arith.constant 2 : index
    %c0_11 = arith.constant 0 : index
    %c0_12 = arith.constant 0 : index
    %11 = vector.load %arg1[%c2, %c0_11, %c0_12] : memref<32x8x32xf32, #tpu.memory_space<vmem>>, vector<28x8x32xf32>
    %12 = vector.shape_cast %11 : vector<28x8x32xf32> to vector<224x32xf32>
    %c2_13 = arith.constant 2 : index
    %c0_14 = arith.constant 0 : index
    %c0_15 = arith.constant 0 : index
    %13 = vector.load %arg2[%c2_13, %c0_14, %c0_15] : memref<5x32x168xf32, #tpu.memory_space<vmem>>, vector<1x32x168xf32>
    %14 = vector.shape_cast %13 : vector<1x32x168xf32> to vector<32x168xf32>
    %cst_16 = arith.constant dense<0.000000e+00> : vector<224x168xf32>
    %15 = tpu.matmul %12, %14, %cst_16 {dimension_numbers = #tpu.dot_dimension_numbers<[1], [0], [0], [1], [0, 0, 1, 1], [], []>} : vector<224x32xf32>, vector<32x168xf32>, vector<224x168xf32> -> vector<224x168xf32>
    %16 = arith.addf %10, %15 : vector<224x168xf32>
    %c3 = arith.constant 3 : index
    %c0_17 = arith.constant 0 : index
    %c0_18 = arith.constant 0 : index
    %17 = vector.load %arg1[%c3, %c0_17, %c0_18] : memref<32x8x32xf32, #tpu.memory_space<vmem>>, vector<28x8x32xf32>
    %18 = vector.shape_cast %17 : vector<28x8x32xf32> to vector<224x32xf32>
    %c3_19 = arith.constant 3 : index
    %c0_20 = arith.constant 0 : index
    %c0_21 = arith.constant 0 : index
    %19 = vector.load %arg2[%c3_19, %c0_20, %c0_21] : memref<5x32x168xf32, #tpu.memory_space<vmem>>, vector<1x32x168xf32>
    %20 = vector.shape_cast %19 : vector<1x32x168xf32> to vector<32x168xf32>
    %cst_22 = arith.constant dense<0.000000e+00> : vector<224x168xf32>
    %21 = tpu.matmul %18, %20, %cst_22 {dimension_numbers = #tpu.dot_dimension_numbers<[1], [0], [0], [1], [0, 0, 1, 1], [], []>} : vector<224x32xf32>, vector<32x168xf32>, vector<224x168xf32> -> vector<224x168xf32>
    %22 = arith.addf %16, %21 : vector<224x168xf32>
    %c4 = arith.constant 4 : index
    %c0_23 = arith.constant 0 : index
    %c0_24 = arith.constant 0 : index
    %23 = vector.load %arg1[%c4, %c0_23, %c0_24] : memref<32x8x32xf32, #tpu.memory_space<vmem>>, vector<28x8x32xf32>
    %24 = vector.shape_cast %23 : vector<28x8x32xf32> to vector<224x32xf32>
    %c4_25 = arith.constant 4 : index
    %c0_26 = arith.constant 0 : index
    %c0_27 = arith.constant 0 : index
    %25 = vector.load %arg2[%c4_25, %c0_26, %c0_27] : memref<5x32x168xf32, #tpu.memory_space<vmem>>, vector<1x32x168xf32>
    %26 = vector.shape_cast %25 : vector<1x32x168xf32> to vector<32x168xf32>
    %cst_28 = arith.constant dense<0.000000e+00> : vector<224x168xf32>
    %27 = tpu.matmul %24, %26, %cst_28 {dimension_numbers = #tpu.dot_dimension_numbers<[1], [0], [0], [1], [0, 0, 1, 1], [], []>} : vector<224x32xf32>, vector<32x168xf32>, vector<224x168xf32> -> vector<224x168xf32>
    %28 = arith.addf %22, %27 : vector<224x168xf32>
    %c0_29 = arith.constant 0 : index
    %c0_30 = arith.constant 0 : index
    %29 = vector.load %arg3[%c0_29, %c0_30] : memref<1x168xf32, #tpu.memory_space<vmem>>, vector<1x168xf32>
    %30 = vector.broadcast %29 : vector<1x168xf32> to vector<224x168xf32>
    %31 = arith.addf %28, %30 : vector<224x168xf32>
    %cst_31 = arith.constant 0.000000e+00 : f32
    %32 = vector.broadcast %cst_31 : f32 to vector<224x168xf32>
    %33 = arith.maximumf %31, %32 : vector<224x168xf32>
    %34 = vector.shape_cast %33 : vector<224x168xf32> to vector<14x16x168xf32>
    %35 = vector.extract_strided_slice %34 {offsets = [0, 0, 0], sizes = [14, 8, 168], strides = [1, 1, 1]} : vector<14x16x168xf32> to vector<14x8x168xf32>
    %36 = vector.extract_strided_slice %34 {offsets = [0, 8, 0], sizes = [14, 8, 168], strides = [1, 1, 1]} : vector<14x16x168xf32> to vector<14x8x168xf32>
    %37 = arith.maximumf %35, %36 : vector<14x8x168xf32>
    %38 = vector.shape_cast %37 : vector<14x8x168xf32> to vector<112x168xf32>
    %c0_32 = arith.constant 0 : index
    %c0_33 = arith.constant 0 : index
    %c0_34 = arith.constant 0 : index
    %39 = vector.load %arg6[%c0_32, %c0_33, %c0_34] : memref<2x168x84xf32, #tpu.memory_space<vmem>>, vector<1x168x84xf32>
    %40 = vector.shape_cast %39 : vector<1x168x84xf32> to vector<168x84xf32>
    %cst_35 = arith.constant dense<0.000000e+00> : vector<112x84xf32>
    %41 = tpu.matmul %38, %40, %cst_35 {dimension_numbers = #tpu.dot_dimension_numbers<[1], [0], [0], [1], [0, 0, 1, 1], [], []>} : vector<112x168xf32>, vector<168x84xf32>, vector<112x84xf32> -> vector<112x84xf32>
    %c1_36 = arith.constant 1 : index
    %c0_37 = arith.constant 0 : index
    %c0_38 = arith.constant 0 : index
    %42 = vector.load %arg6[%c1_36, %c0_37, %c0_38] : memref<2x168x84xf32, #tpu.memory_space<vmem>>, vector<1x168x84xf32>
    %43 = vector.shape_cast %42 : vector<1x168x84xf32> to vector<168x84xf32>
    %cst_39 = arith.constant dense<0.000000e+00> : vector<112x84xf32>
    %44 = tpu.matmul %38, %43, %cst_39 {dimension_numbers = #tpu.dot_dimension_numbers<[1], [0], [0], [1], [0, 0, 1, 1], [], []>} : vector<112x168xf32>, vector<168x84xf32>, vector<112x84xf32> -> vector<112x84xf32>
    %45 = arith.maximumf %41, %44 : vector<112x84xf32>
    %46 = vector.extract_strided_slice %45 {offsets = [0, 0], sizes = [80, 84], strides = [1, 1]} : vector<112x84xf32> to vector<80x84xf32>
    %c0_40 = arith.constant 0 : index
    %c0_41 = arith.constant 0 : index
    %c0_42 = arith.constant 0 : index
    %47 = vector.load %arg4[%c0_40, %c0_41, %c0_42] : memref<5x84x160xf32, #tpu.memory_space<vmem>>, vector<1x84x160xf32>
    %48 = vector.shape_cast %47 : vector<1x84x160xf32> to vector<84x160xf32>
    %cst_43 = arith.constant dense<0.000000e+00> : vector<80x160xf32>
    %49 = tpu.matmul %46, %48, %cst_43 {dimension_numbers = #tpu.dot_dimension_numbers<[1], [0], [0], [1], [0, 0, 1, 1], [], []>} : vector<80x84xf32>, vector<84x160xf32>, vector<80x160xf32> -> vector<80x160xf32>
    %50 = vector.extract_strided_slice %45 {offsets = [8, 0], sizes = [80, 84], strides = [1, 1]} : vector<112x84xf32> to vector<80x84xf32>
    %c1_44 = arith.constant 1 : index
    %c0_45 = arith.constant 0 : index
    %c0_46 = arith.constant 0 : index
    %51 = vector.load %arg4[%c1_44, %c0_45, %c0_46] : memref<5x84x160xf32, #tpu.memory_space<vmem>>, vector<1x84x160xf32>
    %52 = vector.shape_cast %51 : vector<1x84x160xf32> to vector<84x160xf32>
    %cst_47 = arith.constant dense<0.000000e+00> : vector<80x160xf32>
    %53 = tpu.matmul %50, %52, %cst_47 {dimension_numbers = #tpu.dot_dimension_numbers<[1], [0], [0], [1], [0, 0, 1, 1], [], []>} : vector<80x84xf32>, vector<84x160xf32>, vector<80x160xf32> -> vector<80x160xf32>
    %54 = arith.addf %49, %53 : vector<80x160xf32>
    %55 = vector.extract_strided_slice %45 {offsets = [16, 0], sizes = [80, 84], strides = [1, 1]} : vector<112x84xf32> to vector<80x84xf32>
    %c2_48 = arith.constant 2 : index
    %c0_49 = arith.constant 0 : index
    %c0_50 = arith.constant 0 : index
    %56 = vector.load %arg4[%c2_48, %c0_49, %c0_50] : memref<5x84x160xf32, #tpu.memory_space<vmem>>, vector<1x84x160xf32>
    %57 = vector.shape_cast %56 : vector<1x84x160xf32> to vector<84x160xf32>
    %cst_51 = arith.constant dense<0.000000e+00> : vector<80x160xf32>
    %58 = tpu.matmul %55, %57, %cst_51 {dimension_numbers = #tpu.dot_dimension_numbers<[1], [0], [0], [1], [0, 0, 1, 1], [], []>} : vector<80x84xf32>, vector<84x160xf32>, vector<80x160xf32> -> vector<80x160xf32>
    %59 = arith.addf %54, %58 : vector<80x160xf32>
    %60 = vector.extract_strided_slice %45 {offsets = [24, 0], sizes = [80, 84], strides = [1, 1]} : vector<112x84xf32> to vector<80x84xf32>
    %c3_52 = arith.constant 3 : index
    %c0_53 = arith.constant 0 : index
    %c0_54 = arith.constant 0 : index
    %61 = vector.load %arg4[%c3_52, %c0_53, %c0_54] : memref<5x84x160xf32, #tpu.memory_space<vmem>>, vector<1x84x160xf32>
    %62 = vector.shape_cast %61 : vector<1x84x160xf32> to vector<84x160xf32>
    %cst_55 = arith.constant dense<0.000000e+00> : vector<80x160xf32>
    %63 = tpu.matmul %60, %62, %cst_55 {dimension_numbers = #tpu.dot_dimension_numbers<[1], [0], [0], [1], [0, 0, 1, 1], [], []>} : vector<80x84xf32>, vector<84x160xf32>, vector<80x160xf32> -> vector<80x160xf32>
    %64 = arith.addf %59, %63 : vector<80x160xf32>
    %65 = vector.extract_strided_slice %45 {offsets = [32, 0], sizes = [80, 84], strides = [1, 1]} : vector<112x84xf32> to vector<80x84xf32>
    %c4_56 = arith.constant 4 : index
    %c0_57 = arith.constant 0 : index
    %c0_58 = arith.constant 0 : index
    %66 = vector.load %arg4[%c4_56, %c0_57, %c0_58] : memref<5x84x160xf32, #tpu.memory_space<vmem>>, vector<1x84x160xf32>
    %67 = vector.shape_cast %66 : vector<1x84x160xf32> to vector<84x160xf32>
    %cst_59 = arith.constant dense<0.000000e+00> : vector<80x160xf32>
    %68 = tpu.matmul %65, %67, %cst_59 {dimension_numbers = #tpu.dot_dimension_numbers<[1], [0], [0], [1], [0, 0, 1, 1], [], []>} : vector<80x84xf32>, vector<84x160xf32>, vector<80x160xf32> -> vector<80x160xf32>
    %69 = arith.addf %64, %68 : vector<80x160xf32>
    %c0_60 = arith.constant 0 : index
    %c0_61 = arith.constant 0 : index
    %70 = vector.load %arg5[%c0_60, %c0_61] : memref<1x160xf32, #tpu.memory_space<vmem>>, vector<1x160xf32>
    %71 = vector.broadcast %70 : vector<1x160xf32> to vector<80x160xf32>
    %72 = arith.addf %69, %71 : vector<80x160xf32>
    %cst_62 = arith.constant 0.000000e+00 : f32
    %73 = vector.broadcast %cst_62 : f32 to vector<80x160xf32>
    %74 = arith.maximumf %72, %73 : vector<80x160xf32>
    %75 = vector.shape_cast %74 : vector<80x160xf32> to vector<5x16x160xf32>
    %76 = vector.extract_strided_slice %75 {offsets = [0, 0, 0], sizes = [5, 8, 160], strides = [1, 1, 1]} : vector<5x16x160xf32> to vector<5x8x160xf32>
    %77 = vector.extract_strided_slice %75 {offsets = [0, 8, 0], sizes = [5, 8, 160], strides = [1, 1, 1]} : vector<5x16x160xf32> to vector<5x8x160xf32>
    %78 = arith.maximumf %76, %77 : vector<5x8x160xf32>
    %79 = vector.shape_cast %78 : vector<5x8x160xf32> to vector<40x160xf32>
    %c0_63 = arith.constant 0 : index
    %c0_64 = arith.constant 0 : index
    %c0_65 = arith.constant 0 : index
    %80 = vector.load %arg7[%c0_63, %c0_64, %c0_65] : memref<2x160x80xf32, #tpu.memory_space<vmem>>, vector<1x160x80xf32>
    %81 = vector.shape_cast %80 : vector<1x160x80xf32> to vector<160x80xf32>
    %cst_66 = arith.constant dense<0.000000e+00> : vector<40x80xf32>
    %82 = tpu.matmul %79, %81, %cst_66 {dimension_numbers = #tpu.dot_dimension_numbers<[1], [0], [0], [1], [0, 0, 1, 1], [], []>} : vector<40x160xf32>, vector<160x80xf32>, vector<40x80xf32> -> vector<40x80xf32>
    %c1_67 = arith.constant 1 : index
    %c0_68 = arith.constant 0 : index
    %c0_69 = arith.constant 0 : index
    %83 = vector.load %arg7[%c1_67, %c0_68, %c0_69] : memref<2x160x80xf32, #tpu.memory_space<vmem>>, vector<1x160x80xf32>
    %84 = vector.shape_cast %83 : vector<1x160x80xf32> to vector<160x80xf32>
    %cst_70 = arith.constant dense<0.000000e+00> : vector<40x80xf32>
    %85 = tpu.matmul %79, %84, %cst_70 {dimension_numbers = #tpu.dot_dimension_numbers<[1], [0], [0], [1], [0, 0, 1, 1], [], []>} : vector<40x160xf32>, vector<160x80xf32>, vector<40x80xf32> -> vector<40x80xf32>
    %86 = arith.maximumf %82, %85 : vector<40x80xf32>
    %87 = vector.extract_strided_slice %86 {offsets = [0, 0], sizes = [8, 80], strides = [1, 1]} : vector<40x80xf32> to vector<8x80xf32>
    %c0_71 = arith.constant 0 : index
    %c0_72 = arith.constant 0 : index
    %c0_73 = arith.constant 0 : index
    %88 = vector.load %arg8[%c0_71, %c0_72, %c0_73] : memref<5x80x120xf32, #tpu.memory_space<vmem>>, vector<1x80x120xf32>
    %89 = vector.shape_cast %88 : vector<1x80x120xf32> to vector<80x120xf32>
    %cst_74 = arith.constant dense<0.000000e+00> : vector<8x120xf32>
    %90 = tpu.matmul %87, %89, %cst_74 {dimension_numbers = #tpu.dot_dimension_numbers<[1], [0], [0], [1], [0, 0, 1, 1], [], []>} : vector<8x80xf32>, vector<80x120xf32>, vector<8x120xf32> -> vector<8x120xf32>
    %91 = vector.extract_strided_slice %86 {offsets = [8, 0], sizes = [8, 80], strides = [1, 1]} : vector<40x80xf32> to vector<8x80xf32>
    %c1_75 = arith.constant 1 : index
    %c0_76 = arith.constant 0 : index
    %c0_77 = arith.constant 0 : index
    %92 = vector.load %arg8[%c1_75, %c0_76, %c0_77] : memref<5x80x120xf32, #tpu.memory_space<vmem>>, vector<1x80x120xf32>
    %93 = vector.shape_cast %92 : vector<1x80x120xf32> to vector<80x120xf32>
    %cst_78 = arith.constant dense<0.000000e+00> : vector<8x120xf32>
    %94 = tpu.matmul %91, %93, %cst_78 {dimension_numbers = #tpu.dot_dimension_numbers<[1], [0], [0], [1], [0, 0, 1, 1], [], []>} : vector<8x80xf32>, vector<80x120xf32>, vector<8x120xf32> -> vector<8x120xf32>
    %95 = arith.addf %90, %94 : vector<8x120xf32>
    %96 = vector.extract_strided_slice %86 {offsets = [16, 0], sizes = [8, 80], strides = [1, 1]} : vector<40x80xf32> to vector<8x80xf32>
    %c2_79 = arith.constant 2 : index
    %c0_80 = arith.constant 0 : index
    %c0_81 = arith.constant 0 : index
    %97 = vector.load %arg8[%c2_79, %c0_80, %c0_81] : memref<5x80x120xf32, #tpu.memory_space<vmem>>, vector<1x80x120xf32>
    %98 = vector.shape_cast %97 : vector<1x80x120xf32> to vector<80x120xf32>
    %cst_82 = arith.constant dense<0.000000e+00> : vector<8x120xf32>
    %99 = tpu.matmul %96, %98, %cst_82 {dimension_numbers = #tpu.dot_dimension_numbers<[1], [0], [0], [1], [0, 0, 1, 1], [], []>} : vector<8x80xf32>, vector<80x120xf32>, vector<8x120xf32> -> vector<8x120xf32>
    %100 = arith.addf %95, %99 : vector<8x120xf32>
    %101 = vector.extract_strided_slice %86 {offsets = [24, 0], sizes = [8, 80], strides = [1, 1]} : vector<40x80xf32> to vector<8x80xf32>
    %c3_83 = arith.constant 3 : index
    %c0_84 = arith.constant 0 : index
    %c0_85 = arith.constant 0 : index
    %102 = vector.load %arg8[%c3_83, %c0_84, %c0_85] : memref<5x80x120xf32, #tpu.memory_space<vmem>>, vector<1x80x120xf32>
    %103 = vector.shape_cast %102 : vector<1x80x120xf32> to vector<80x120xf32>
    %cst_86 = arith.constant dense<0.000000e+00> : vector<8x120xf32>
    %104 = tpu.matmul %101, %103, %cst_86 {dimension_numbers = #tpu.dot_dimension_numbers<[1], [0], [0], [1], [0, 0, 1, 1], [], []>} : vector<8x80xf32>, vector<80x120xf32>, vector<8x120xf32> -> vector<8x120xf32>
    %105 = arith.addf %100, %104 : vector<8x120xf32>
    %106 = vector.extract_strided_slice %86 {offsets = [32, 0], sizes = [8, 80], strides = [1, 1]} : vector<40x80xf32> to vector<8x80xf32>
    %c4_87 = arith.constant 4 : index
    %c0_88 = arith.constant 0 : index
    %c0_89 = arith.constant 0 : index
    %107 = vector.load %arg8[%c4_87, %c0_88, %c0_89] : memref<5x80x120xf32, #tpu.memory_space<vmem>>, vector<1x80x120xf32>
    %108 = vector.shape_cast %107 : vector<1x80x120xf32> to vector<80x120xf32>
    %cst_90 = arith.constant dense<0.000000e+00> : vector<8x120xf32>
    %109 = tpu.matmul %106, %108, %cst_90 {dimension_numbers = #tpu.dot_dimension_numbers<[1], [0], [0], [1], [0, 0, 1, 1], [], []>} : vector<8x80xf32>, vector<80x120xf32>, vector<8x120xf32> -> vector<8x120xf32>
    %110 = arith.addf %105, %109 : vector<8x120xf32>
    %c0_91 = arith.constant 0 : index
    %c0_92 = arith.constant 0 : index
    %111 = vector.load %arg9[%c0_91, %c0_92] : memref<1x120xf32, #tpu.memory_space<vmem>>, vector<1x120xf32>
    %112 = vector.broadcast %111 : vector<1x120xf32> to vector<8x120xf32>
    %113 = arith.addf %110, %112 : vector<8x120xf32>
    %cst_93 = arith.constant 0.000000e+00 : f32
    %114 = vector.broadcast %cst_93 : f32 to vector<8x120xf32>
    %115 = arith.maximumf %113, %114 : vector<8x120xf32>
    %c0_94 = arith.constant 0 : index
    %c0_95 = arith.constant 0 : index
    %116 = vector.load %arg10[%c0_94, %c0_95] : memref<120x84xf32, #tpu.memory_space<vmem>>, vector<120x84xf32>
    %cst_96 = arith.constant dense<0.000000e+00> : vector<8x84xf32>
    %117 = tpu.matmul %115, %116, %cst_96 {dimension_numbers = #tpu.dot_dimension_numbers<[1], [0], [0], [1], [0, 0, 1, 1], [], []>} : vector<8x120xf32>, vector<120x84xf32>, vector<8x84xf32> -> vector<8x84xf32>
    %c0_97 = arith.constant 0 : index
    %c0_98 = arith.constant 0 : index
    %118 = vector.load %arg11[%c0_97, %c0_98] : memref<1x84xf32, #tpu.memory_space<vmem>>, vector<1x84xf32>
    %119 = vector.broadcast %118 : vector<1x84xf32> to vector<8x84xf32>
    %120 = arith.addf %117, %119 : vector<8x84xf32>
    %cst_99 = arith.constant 0.000000e+00 : f32
    %121 = vector.broadcast %cst_99 : f32 to vector<8x84xf32>
    %122 = arith.maximumf %120, %121 : vector<8x84xf32>
    %c0_100 = arith.constant 0 : index
    %c0_101 = arith.constant 0 : index
    %123 = vector.load %arg12[%c0_100, %c0_101] : memref<84x128xf32, #tpu.memory_space<vmem>>, vector<84x128xf32>
    %cst_102 = arith.constant dense<0.000000e+00> : vector<8x128xf32>
    %124 = tpu.matmul %122, %123, %cst_102 {dimension_numbers = #tpu.dot_dimension_numbers<[1], [0], [0], [1], [0, 0, 1, 1], [], []>} : vector<8x84xf32>, vector<84x128xf32>, vector<8x128xf32> -> vector<8x128xf32>
    %c0_103 = arith.constant 0 : index
    %c0_104 = arith.constant 0 : index
    %125 = vector.load %arg13[%c0_103, %c0_104] : memref<1x128xf32, #tpu.memory_space<vmem>>, vector<1x128xf32>
    %126 = vector.broadcast %125 : vector<1x128xf32> to vector<8x128xf32>
    %127 = arith.addf %124, %126 : vector<8x128xf32>
    %c0_105 = arith.constant 0 : index
    %c0_106 = arith.constant 0 : index
    %128 = vector.load %arg14[%c0_105, %c0_106] : memref<8x128xf32, #tpu.memory_space<vmem>>, vector<8x128xf32>
    tpu.vector_store %arg14[%c0_105, %c0_106], %127 {strides = array<i32>} : memref<8x128xf32, #tpu.memory_space<vmem>>, vector<8x128xf32>,
    return
  }
  func.func @transform_0(%arg0: i32) -> (i32, i32, i32) {
    %c0_i32 = arith.constant 0 : i32
    %c0_i32_0 = arith.constant 0 : i32
    %c0_i32_1 = arith.constant 0 : i32
    return %c0_i32, %arg0, %c0_i32_0 : i32, i32, i32
  }
  func.func @transform_1(%arg0: i32) -> (i32, i32, i32) {
    %c0_i32 = arith.constant 0 : i32
    %c0_i32_0 = arith.constant 0 : i32
    %c0_i32_1 = arith.constant 0 : i32
    %c0_i32_2 = arith.constant 0 : i32
    return %c0_i32, %c0_i32_0, %c0_i32_1 : i32, i32, i32
  }
  func.func @transform_2(%arg0: i32) -> (i32, i32) {
    %c0_i32 = arith.constant 0 : i32
    %c0_i32_0 = arith.constant 0 : i32
    %c0_i32_1 = arith.constant 0 : i32
    return %c0_i32, %c0_i32_0 : i32, i32
  }
  func.func @transform_3(%arg0: i32) -> (i32, i32, i32) {
    %c0_i32 = arith.constant 0 : i32
    %c0_i32_0 = arith.constant 0 : i32
    %c0_i32_1 = arith.constant 0 : i32
    %c0_i32_2 = arith.constant 0 : i32
    return %c0_i32, %c0_i32_0, %c0_i32_1 : i32, i32, i32
  }
  func.func @transform_4(%arg0: i32) -> (i32, i32) {
    %c0_i32 = arith.constant 0 : i32
    %c0_i32_0 = arith.constant 0 : i32
    %c0_i32_1 = arith.constant 0 : i32
    return %c0_i32, %c0_i32_0 : i32, i32
  }
  func.func @transform_5(%arg0: i32) -> (i32, i32, i32) {
    %c0_i32 = arith.constant 0 : i32
    %c0_i32_0 = arith.constant 0 : i32
    %c0_i32_1 = arith.constant 0 : i32
    %c0_i32_2 = arith.constant 0 : i32
    return %c0_i32, %c0_i32_0, %c0_i32_1 : i32, i32, i32
  }
  func.func @transform_6(%arg0: i32) -> (i32, i32, i32) {
    %c0_i32 = arith.constant 0 : i32
    %c0_i32_0 = arith.constant 0 : i32
    %c0_i32_1 = arith.constant 0 : i32
    %c0_i32_2 = arith.constant 0 : i32
    return %c0_i32, %c0_i32_0, %c0_i32_1 : i32, i32, i32
  }
  func.func @transform_7(%arg0: i32) -> (i32, i32, i32) {
    %c0_i32 = arith.constant 0 : i32
    %c0_i32_0 = arith.constant 0 : i32
    %c0_i32_1 = arith.constant 0 : i32
    %c0_i32_2 = arith.constant 0 : i32
    return %c0_i32, %c0_i32_0, %c0_i32_1 : i32, i32, i32
  }
  func.func @transform_8(%arg0: i32) -> (i32, i32) {
    %c0_i32 = arith.constant 0 : i32
    %c0_i32_0 = arith.constant 0 : i32
    %c0_i32_1 = arith.constant 0 : i32
    return %c0_i32, %c0_i32_0 : i32, i32
  }
  func.func @transform_9(%arg0: i32) -> (i32, i32) {
    %c0_i32 = arith.constant 0 : i32
    %c0_i32_0 = arith.constant 0 : i32
    %c0_i32_1 = arith.constant 0 : i32
    return %c0_i32, %c0_i32_0 : i32, i32
  }
  func.func @transform_10(%arg0: i32) -> (i32, i32) {
    %c0_i32 = arith.constant 0 : i32
    %c0_i32_0 = arith.constant 0 : i32
    %c0_i32_1 = arith.constant 0 : i32
    return %c0_i32, %c0_i32_0 : i32, i32
  }
  func.func @transform_11(%arg0: i32) -> (i32, i32) {
    %c0_i32 = arith.constant 0 : i32
    %c0_i32_0 = arith.constant 0 : i32
    %c0_i32_1 = arith.constant 0 : i32
    return %c0_i32, %c0_i32_0 : i32, i32
  }
  func.func @transform_12(%arg0: i32) -> (i32, i32) {
    %c0_i32 = arith.constant 0 : i32
    %c0_i32_0 = arith.constant 0 : i32
    %c0_i32_1 = arith.constant 0 : i32
    return %c0_i32, %c0_i32_0 : i32, i32
  }
  func.func @transform_13(%arg0: i32) -> (i32, i32) {
    %c0_i32 = arith.constant 0 : i32
    %c0_i32_0 = arith.constant 0 : i32
    return %arg0, %c0_i32 : i32, i32
  }
}

</mosaic_0001>

<bundles_post_ra>
// kernel: lenet5_forward.1
= control target key start
LH: loop header
LB: loop body
LE: loop exit
PB: predicated region body
PF: predicated region fallthrough
CT: control target
= control target key end

     0   :  { %v5808_v3 = vmov 0.0   ;;  %vm118_vm0 = vcmask 261120   ;;  %vm2159_vm1 = vcmask 326656   ;;  %vm2584_vm2 = vcmask 1043456   ;;  %s8001_s1 = inlined_call_operand.vmem [shape: f32[5,32,168], index: 1, kind: input, shape index: {}]   ;;  %s8002_s0 = inlined_call_operand.vmem [shape: f32[32,8,32], index: 0, kind: input, shape index: {}]   ;;  %s8003_s5 = inlined_call_operand.vmem [shape: f32[2,168,84], index: 5, kind: input, shape index: {}]   ;;  %s8004_s2 = inlined_call_operand.vmem [shape: f32[1,168], index: 2, kind: input, shape index: {}]   ;;  %s8005_s3 = inlined_call_operand.vmem [shape: f32[5,84,160], index: 3, kind: input, shape index: {}]   ;;  %s8006_s6 = inlined_call_operand.vmem [shape: f32[2,160,80], index: 6, kind: input, shape index: {}]   ;;  %s8007_s4 = inlined_call_operand.vmem [shape: f32[1,160], index: 4, kind: input, shape index: {}]   ;;  %s8008_s7 = inlined_call_operand.vmem [shape: f32[5,80,120], index: 7, kind: input, shape index: {}]   ;;  %s8009_s9 = inlined_call_operand.vmem [shape: f32[120,84], index: 9, kind: input, shape index: {}]   ;;  %s8010_s8 = inlined_call_operand.vmem [shape: f32[1,120], index: 8, kind: input, shape index: {}]   ;;  %s8011_s11 = inlined_call_operand.vmem [shape: f32[84,128], index: 11, kind: input, shape index: {}]   ;;  %s8012_s10 = inlined_call_operand.vmem [shape: f32[1,84], index: 10, kind: input, shape index: {}]   ;;  %s8013_s12 = inlined_call_operand.vmem [shape: f32[1,128], index: 12, kind: input, shape index: {}]   ;;  %s8014_s13 = inlined_call_operand.vmem [shape: f32[8,128], index: 13, kind: output, shape index: {}]  }
   0x1   :  { %v4341_v0 = vld [vmem:[%s8001_s1 + $0x48] sm:$0xff]  ;;  %v4343_v1 = vld [vmem:[%s8001_s1 + $0x58] sm:$0xff]  ;;  %v4340_v2 = vld [vmem:[%s8001_s1 + $0x40] sm:$0xff]  ;;  %267 = vmatprep.mubr.f32.mxu0 %v5808_v3  ;;  %vm2553_vm3 = vcmask 687104   ;;  %vm5810_vm4 = vmmov 0   ;;  %vm3705_vm5 = vcmask 654336  }
   0x2   :  { %v5130_v4 = vpack.c.bf16 %v4343_v1, %v4341_v0  ;;  %v4342_v5 = vld [vmem:[%s8001_s1 + $0x50] sm:$0xff]  ;;  %v4345_v6 = vld [vmem:[%s8001_s1 + $0x68] sm:$0xff]  ;;  %v4347_v7 = vld [vmem:[%s8001_s1 + $0x78] sm:$0xff]  ;;  %vm4138_vm6 = vcmask 982016  }
   0x3   :  { %v5132_v8 = vpack.c.bf16 %v4342_v5, %v4340_v2  ;;  %v5134_v9 = vpack.c.bf16 %v4347_v7, %v4345_v6  ;;  %v4344_v10 = vld [vmem:[%s8001_s1 + $0x60] sm:$0xff]  ;;  %v4346_v11 = vld [vmem:[%s8001_s1 + $0x70] sm:$0xff]  ;;  %v73_v12 = vld [vmem:[%s8001_s1 + $0x8] sm:$0xff] }
   0x4   :  { %5131 = vmatprep.subr.bf16.mxu0 %v5130_v4  ;;  %v75_v13 = vld [vmem:[%s8001_s1 + $0x18] sm:$0xff]  ;;  %v5136_v14 = vpack.c.bf16 %v4346_v11, %v4344_v10  ;;  %v72_v16 = vld [vmem:[%s8001_s1] sm:$0xff]  ;;  %v74_v17 = vld [vmem:[%s8001_s1 + $0x10] sm:$0xff] }
   0x5   :  { %5133 = vmatpush1.bf16.msra.mxu0 %v5132_v8  ;;  %v5138_v15 = vpack.c.bf16 %v75_v13, %v73_v12  ;;  %v5921_v18 = vld [vmem:[%s8002_s0 + $0x8] sm:$0xff]  ;;  %v5140_v19 = vpack.c.bf16 %v74_v17, %v72_v16  ;;  %v79_v21 = vld [vmem:[%s8001_s1 + $0x38] sm:$0xff]  ;;  %v76_v22 = vld [vmem:[%s8001_s1 + $0x20] sm:$0xff] }
   0x6   :  { %5135 = vmatprep.subr.bf16.mxu0 %v5134_v9  ;;  %v77_v20 = vld [vmem:[%s8001_s1 + $0x28] sm:$0xff]  ;;  %v78_v24 = vld [vmem:[%s8001_s1 + $0x30] sm:$0xff]  ;;  %v4435_v28 = vld [vmem:[%s8001_s1 + $0x98] sm:$0xff] }
   0x7   :  { %v5142_v23 = vpack.c.bf16 %v79_v21, %v77_v20  ;;  %v5941_v25 = vld [vmem:[%s8002_s0 + $0x10] sm:$0xff]  ;;  %v5144_v26 = vpack.c.bf16 %v78_v24, %v76_v22  ;;  %v4433_v27 = vld [vmem:[%s8001_s1 + $0x88] sm:$0xff]  ;;  %v5955_v29 = vld [vmem:[%s8002_s0 + $0x18] sm:$0xff] }
   0x8   :  { %v5146_v30 = vpack.c.bf16 %v4435_v28, %v4433_v27  ;;  %v5963_v31 = vld [vmem:[%s8002_s0 + $0x20] sm:$0xff]  ;;  %v5971_v32 = vld [vmem:[%s8002_s0 + $0x28] sm:$0xff]  ;;  %v5979_v33 = vld [vmem:[%s8002_s0 + $0x30] sm:$0xff]  ;;  %v5809_v28 = vmov 0.0|0.0  }
   0x9   :  { %5137 = vmatpush1.bf16.msra.mxu0 %v5136_v14  ;;  %v5987_v34 = vld [vmem:[%s8002_s0 + $0x38] sm:$0xff]  ;;  %v5995_v35 = vld [vmem:[%s8002_s0 + $0x40] sm:$0xff]  ;;  %v6003_v36 = vld [vmem:[%s8002_s0 + $0x48] sm:$0xff]  ;;  %5170 = vmatprep.subr.bf16.mxu1 %v5809_v28 }
   0xa   :  { %5139 = vmatprep.subr.bf16.mxu0 %v5138_v15  ;;  %v6011_v37 = vld [vmem:[%s8002_s0 + $0x50] sm:$0xff]  ;;  %v6019_v38 = vld [vmem:[%s8002_s0 + $0x58] sm:$0xff]  ;;  %v6027_v39 = vld [vmem:[%s8002_s0 + $0x60] sm:$0xff] }
   0xb   :  { %v6035_v40 = vld [vmem:[%s8002_s0 + $0x68] sm:$0xff]  ;;  %v6043_v41 = vld [vmem:[%s8002_s0 + $0x70] sm:$0xff]  ;;  %v6051_v42 = vld [vmem:[%s8002_s0 + $0x78] sm:$0xff] }
   0xc   :  { %4348 = vmatmul.mubr.msk.f32.vlgmr.msra.gmra.mrb[0].mxu0 %vm118_vm0, %v5921_v18  ;;  %v6059_v43 = vld [vmem:[%s8002_s0 + $0x80] sm:$0xff]  ;;  %v6067_v44 = vld [vmem:[%s8002_s0 + $0x88] sm:$0xff]  ;;  %v6075_v45 = vld [vmem:[%s8002_s0 + $0x90] sm:$0xff] }
   0xd   :  { %5141 = vmatpush1.bf16.msra.mxu0 %v5140_v19  ;;  %273 = vmatprep.mubr.f32.mxu0 %v5808_v3  ;;  %v6083_v46 = vld [vmem:[%s8002_s0 + $0x98] sm:$0xff]  ;;  %v6091_v47 = vld [vmem:[%s8002_s0 + $0xa0] sm:$0xff]  ;;  %v6099_v48 = vld [vmem:[%s8002_s0 + $0xa8] sm:$0xff] }
   0xe   :  { %5143 = vmatprep.subr.bf16.mxu0 %v5142_v23  ;;  %v6107_v49 = vld [vmem:[%s8002_s0 + $0xb0] sm:$0xff]  ;;  %v6115_v50 = vld [vmem:[%s8002_s0 + $0xb8] sm:$0xff]  ;;  %v6123_v51 = vld [vmem:[%s8002_s0 + $0xc0] sm:$0xff] }
   0xf   :  { %v6131_v52 = vld [vmem:[%s8002_s0 + $0xc8] sm:$0xff]  ;;  %v6139_v53 = vld [vmem:[%s8002_s0 + $0xd0] sm:$0xff]  ;;  %v6147_v54 = vld [vmem:[%s8002_s0 + $0xd8] sm:$0xff] }
  0x10   :  { %4349 = vmatmul.mubr.msk.f32.gmra.mrb[2].mxu0 %vm118_vm0, %v5941_v25  ;;  %v6155_v55 = vld [vmem:[%s8002_s0 + $0xe0] sm:$0xff]  ;;  %v4434_v57 = vld [vmem:[%s8001_s1 + $0x90] sm:$0xff]  ;;  %v4437_v58 = vld [vmem:[%s8001_s1 + $0xa8] sm:$0xff] }
  0x11   :  { %279 = vmatprep.mubr.f32.mxu0 %v5808_v3  ;;  %5145 = vmatpush1.bf16.msra.mxu0 %v5144_v26  ;;  %v4432_v56 = vld [vmem:[%s8001_s1 + $0x80] sm:$0xff]  ;;  %v4439_v59 = vld [vmem:[%s8001_s1 + $0xb8] sm:$0xff]  ;;  %v4438_v0 = vld [vmem:[%s8001_s1 + $0xb0] sm:$0xff] }
  0x12   :  { %5147 = vmatprep.subr.bf16.mxu0 %v5146_v30  ;;  %v44_v60 = vld [vmem:[%s8002_s0] sm:$0xff]  ;;  %v5148_v61 = vpack.c.bf16 %v4434_v57, %v4432_v56  ;;  %v5150_v62 = vpack.c.bf16 %v4439_v59, %v4437_v58  ;;  %v4497_v1 = vld [vmem:[%s8001_s1 + $0xc8] sm:$0xff]  ;;  %v4499_v2 = vld [vmem:[%s8001_s1 + $0xd8] sm:$0xff] }
  0x13   :  { %v4436_v63 = vld [vmem:[%s8001_s1 + $0xa0] sm:$0xff]  ;;  %v5154_v5 = vpack.c.bf16 %v4499_v2, %v4497_v1  ;;  %v4498_v7 = vld [vmem:[%s8001_s1 + $0xd0] sm:$0xff]  ;;  %v4501_v8 = vld [vmem:[%s8001_s1 + $0xe8] sm:$0xff] }
  0x14   :  { %4350 = vmatmul.mubr.msk.f32.gmra.mrb[4].mxu0 %vm118_vm0, %v5955_v29  ;;  %v5152_v4 = vpack.c.bf16 %v4438_v0, %v4436_v63  ;;  %v4496_v6 = vld [vmem:[%s8001_s1 + $0xc0] sm:$0xff]  ;;  %v4503_v9 = vld [vmem:[%s8001_s1 + $0xf8] sm:$0xff]  ;;  %v4502_v13 = vld [vmem:[%s8001_s1 + $0xf0] sm:$0xff] }
  0x15   :  { %285 = vmatprep.mubr.f32.mxu0 %v5808_v3  ;;  %v5156_v10 = vpack.c.bf16 %v4498_v7, %v4496_v6  ;;  %v5158_v11 = vpack.c.bf16 %v4503_v9, %v4501_v8  ;;  %v4500_v12 = vld [vmem:[%s8001_s1 + $0xe0] sm:$0xff]  ;;  %v4561_v14 = vld [vmem:[%s8001_s1 + $0x108] sm:$0xff]  ;;  %v4563_v15 = vld [vmem:[%s8001_s1 + $0x118] sm:$0xff] }
  0x16   :  { %v5160_v16 = vpack.c.bf16 %v4502_v13, %v4500_v12  ;;  %v5162_v17 = vpack.c.bf16 %v4563_v15, %v4561_v14  ;;  %v4560_v19 = vld [vmem:[%s8001_s1 + $0x100] sm:$0xff]  ;;  %v4562_v20 = vld [vmem:[%s8001_s1 + $0x110] sm:$0xff]  ;;  %v4565_v21 = vld [vmem:[%s8001_s1 + $0x128] sm:$0xff] }
  0x17   :  { %v4567_v22 = vld [vmem:[%s8001_s1 + $0x138] sm:$0xff]  ;;  %v5164_v23 = vpack.c.bf16 %v4562_v20, %v4560_v19  ;;  %v4566_v26 = vld [vmem:[%s8001_s1 + $0x130] sm:$0xff]  ;;  %v2139_v30 = vld [vmem:[%s8003_s5 + $0x8] sm:$0xff] }
  0x18   :  { %4351 = vmatmul.mubr.msk.f32.gmra.mrb[6].mxu0 %vm118_vm0, %v5963_v31  ;;  %v5166_v24 = vpack.c.bf16 %v4567_v22, %v4565_v21  ;;  %v2140_v56 = vld [vmem:[%s8003_s5 + $0x10] sm:$0xff]  ;;  %v2141_v58 = vld [vmem:[%s8003_s5 + $0x18] sm:$0xff] }
  0x19   :  { %291 = vmatprep.mubr.f32.mxu0 %v5808_v3  ;;  %v5174_v59 = vpack.c.bf16 %v2141_v58, %v2140_v56  ;;  %v2144_v63 = vld [vmem:[%s8003_s5 + $0x30] sm:$0xff]  ;;  %v2145_v0 = vld [vmem:[%s8003_s5 + $0x38] sm:$0xff] }
  0x1a   :  { %v5180_v1 = vpack.c.bf16 %v2145_v0, %v2144_v63  ;;  %v6512_v2 = vld [vmem:[%s8002_s0 + $0xf0] sm:$0xff]  ;;  %v2149_v8 = vld [vmem:[%s8003_s5 + $0x58] sm:$0xff] }
  0x1b   :  { %v2148_v7 = vld [vmem:[%s8003_s5 + $0x50] sm:$0xff] }
  0x1c   :  { %4352 = vmatmul.mubr.msk.f32.gmra.mrb[8].mxu0 %vm118_vm0, %v5971_v32  ;;  %v5186_v9 = vpack.c.bf16 %v2149_v8, %v2148_v7  ;;  %v4615_v63 = vld [vmem:[%s8003_s5 + $0xd0] sm:$0xff] }
  0x1d   :  { %297 = vmatprep.mubr.f32.mxu0 %v5808_v3 }
  0x20   :  { %4353 = vmatmul.mubr.msk.f32.gmra.mrb[10].mxu0 %vm118_vm0, %v5979_v33 }
  0x21   :  { %303 = vmatprep.mubr.f32.mxu0 %v5808_v3 }
  0x24   :  { %4354 = vmatmul.mubr.msk.f32.gmra.mrb[12].mxu0 %vm118_vm0, %v5987_v34 }
  0x25   :  { %309 = vmatprep.mubr.f32.mxu0 %v5808_v3 }
  0x28   :  { %4355 = vmatmul.mubr.msk.f32.gmra.mrb[14].mxu0 %vm118_vm0, %v5995_v35 }
  0x29   :  { %315 = vmatprep.mubr.f32.mxu0 %v5808_v3 }
  0x2c   :  { %4356 = vmatmul.mubr.msk.f32.gmra.mrb[16].mxu0 %vm118_vm0, %v6003_v36 }
  0x2d   :  { %321 = vmatprep.mubr.f32.mxu0 %v5808_v3 }
  0x30   :  { %4357 = vmatmul.mubr.msk.f32.gmra.mrb[18].mxu0 %vm118_vm0, %v6011_v37 }
  0x31   :  { %327 = vmatprep.mubr.f32.mxu0 %v5808_v3 }
  0x34   :  { %4358 = vmatmul.mubr.msk.f32.gmra.mrb[20].mxu0 %vm118_vm0, %v6019_v38 }
  0x35   :  { %333 = vmatprep.mubr.f32.mxu0 %v5808_v3 }
  0x38   :  { %4359 = vmatmul.mubr.msk.f32.gmra.mrb[22].mxu0 %vm118_vm0, %v6027_v39 }
  0x39   :  { %339 = vmatprep.mubr.f32.mxu0 %v5808_v3 }
  0x3c   :  { %4360 = vmatmul.mubr.msk.f32.gmra.mrb[24].mxu0 %vm118_vm0, %v6035_v40 }
  0x3d   :  { %345 = vmatprep.mubr.f32.mxu0 %v5808_v3 }
  0x40   :  { %4361 = vmatmul.mubr.msk.f32.gmra.mrb[26].mxu0 %vm118_vm0, %v6043_v41 }
  0x41   :  { %351 = vmatprep.mubr.f32.mxu0 %v5808_v3 }
  0x44   :  { %4362 = vmatmul.mubr.msk.f32.gmra.mrb[28].mxu0 %vm118_vm0, %v6051_v42 }
  0x45   :  { %357 = vmatprep.mubr.f32.mxu0 %v5808_v3 }
  0x48   :  { %4363 = vmatmul.mubr.msk.f32.gmra.mrb[30].mxu0 %vm118_vm0, %v6059_v43 }
  0x49   :  { %363 = vmatprep.mubr.f32.mxu0 %v5808_v3 }
  0x4c   :  { %4364 = vmatmul.mubr.msk.f32.gmra.mrb[32].mxu0 %vm118_vm0, %v6067_v44 }
  0x4d   :  { %369 = vmatprep.mubr.f32.mxu0 %v5808_v3 }
  0x50   :  { %4365 = vmatmul.mubr.msk.f32.gmra.mrb[34].mxu0 %vm118_vm0, %v6075_v45 }
  0x51   :  { %375 = vmatprep.mubr.f32.mxu0 %v5808_v3 }
  0x54   :  { %4366 = vmatmul.mubr.msk.f32.gmra.mrb[36].mxu0 %vm118_vm0, %v6083_v46 }
  0x55   :  { %381 = vmatprep.mubr.f32.mxu0 %v5808_v3 }
  0x58   :  { %4367 = vmatmul.mubr.msk.f32.gmra.mrb[38].mxu0 %vm118_vm0, %v6091_v47 }
  0x59   :  { %387 = vmatprep.mubr.f32.mxu0 %v5808_v3 }
  0x5c   :  { %4368 = vmatmul.mubr.msk.f32.gmra.mrb[40].mxu0 %vm118_vm0, %v6099_v48 }
  0x5d   :  { %393 = vmatprep.mubr.f32.mxu0 %v5808_v3 }
  0x60   :  { %4369 = vmatmul.mubr.msk.f32.gmra.mrb[42].mxu0 %vm118_vm0, %v6107_v49 }
  0x61   :  { %399 = vmatprep.mubr.f32.mxu0 %v5808_v3 }
  0x64   :  { %4370 = vmatmul.mubr.msk.f32.gmra.mrb[44].mxu0 %vm118_vm0, %v6115_v50 }
  0x65   :  { %405 = vmatprep.mubr.f32.mxu0 %v5808_v3 }
  0x68   :  { %4371 = vmatmul.mubr.msk.f32.gmra.mrb[46].mxu0 %vm118_vm0, %v6123_v51 }
  0x69   :  { %411 = vmatprep.mubr.f32.mxu0 %v5808_v3 }
  0x6c   :  { %4372 = vmatmul.mubr.msk.f32.gmra.mrb[48].mxu0 %vm118_vm0, %v6131_v52 }
  0x6d   :  { %417 = vmatprep.mubr.f32.mxu0 %v5808_v3 }
  0x70   :  { %4373 = vmatmul.mubr.msk.f32.gmra.mrb[50].mxu0 %vm118_vm0, %v6139_v53 }
  0x71   :  { %423 = vmatprep.mubr.f32.mxu0 %v5808_v3 }
  0x74   :  { %4374 = vmatmul.mubr.msk.f32.gmra.mrb[52].mxu0 %vm118_vm0, %v6147_v54 }
  0x75   :  { %429 = vmatprep.mubr.f32.mxu0 %v5808_v3 }
  0x78   :  { %4375 = vmatmul.mubr.msk.f32.gmra.mrb[54].mxu0 %vm118_vm0, %v6155_v55 }
  0x79   :  { %584 = vmatprep.mubr.f32.mxu0 %v5808_v3 }
  0x7c   :  { %4376 = vmatmul.mubr.msk.f32.vlgmr.msra.gmra.mrb[0].mxu0 %vm118_vm0, %v44_v60  ;;  %v2142_v60 = vld [vmem:[%s8003_s5 + $0x20] sm:$0xff] }
  0x7d   :  { %5149 = vmatpush1.bf16.msra.mxu0 %v5148_v61  ;;  %590 = vmatprep.mubr.f32.mxu0 %v5808_v3  ;;  %v2143_v61 = vld [vmem:[%s8003_s5 + $0x28] sm:$0xff] }
  0x7e   :  { %5151 = vmatprep.subr.bf16.mxu0 %v5150_v62  ;;  %v5177_v62 = vpack.c.bf16 %v2143_v61, %v2142_v60 }
  0x80   :  { %4377 = vmatmul.mubr.msk.f32.gmra.mrb[2].mxu0 %vm118_vm0, %v5921_v18  ;;  %v6378_v18 = vld [vmem:[%s8002_s0 + $0xe8] sm:$0xff] }
  0x81   :  { %596 = vmatprep.mubr.f32.mxu0 %v5808_v3  ;;  %5153 = vmatpush1.bf16.msra.mxu0 %v5152_v4  ;;  %v2146_v4 = vld [vmem:[%s8003_s5 + $0x40] sm:$0xff] }
  0x82   :  { %5155 = vmatprep.subr.bf16.mxu0 %v5154_v5  ;;  %v2147_v5 = vld [vmem:[%s8003_s5 + $0x48] sm:$0xff] }
  0x83   :  { %v5183_v6 = vpack.c.bf16 %v2147_v5, %v2146_v4 }
  0x84   :  { %4378 = vmatmul.mubr.msk.f32.gmra.mrb[4].mxu0 %vm118_vm0, %v5941_v25 }
  0x85   :  { %602 = vmatprep.mubr.f32.mxu0 %v5808_v3 }
  0x88   :  { %4379 = vmatmul.mubr.msk.f32.gmra.mrb[6].mxu0 %vm118_vm0, %v5955_v29 }
  0x89   :  { %608 = vmatprep.mubr.f32.mxu0 %v5808_v3 }
  0x8c   :  { %4380 = vmatmul.mubr.msk.f32.gmra.mrb[8].mxu0 %vm118_vm0, %v5963_v31 }
  0x8d   :  { %614 = vmatprep.mubr.f32.mxu0 %v5808_v3 }
  0x90   :  { %4381 = vmatmul.mubr.msk.f32.gmra.mrb[10].mxu0 %vm118_vm0, %v5971_v32 }
  0x91   :  { %620 = vmatprep.mubr.f32.mxu0 %v5808_v3 }
  0x94   :  { %4382 = vmatmul.mubr.msk.f32.gmra.mrb[12].mxu0 %vm118_vm0, %v5979_v33 }
  0x95   :  { %626 = vmatprep.mubr.f32.mxu0 %v5808_v3 }
  0x98   :  { %4383 = vmatmul.mubr.msk.f32.gmra.mrb[14].mxu0 %vm118_vm0, %v5987_v34 }
  0x99   :  { %632 = vmatprep.mubr.f32.mxu0 %v5808_v3 }
  0x9c   :  { %4384 = vmatmul.mubr.msk.f32.gmra.mrb[16].mxu0 %vm118_vm0, %v5995_v35 }
  0x9d   :  { %638 = vmatprep.mubr.f32.mxu0 %v5808_v3 }
  0xa0   :  { %4385 = vmatmul.mubr.msk.f32.gmra.mrb[18].mxu0 %vm118_vm0, %v6003_v36 }
  0xa1   :  { %644 = vmatprep.mubr.f32.mxu0 %v5808_v3 }
  0xa4   :  { %4386 = vmatmul.mubr.msk.f32.gmra.mrb[20].mxu0 %vm118_vm0, %v6011_v37 }
  0xa5   :  { %650 = vmatprep.mubr.f32.mxu0 %v5808_v3 }
  0xa8   :  { %4387 = vmatmul.mubr.msk.f32.gmra.mrb[22].mxu0 %vm118_vm0, %v6019_v38 }
  0xa9   :  { %656 = vmatprep.mubr.f32.mxu0 %v5808_v3 }
  0xac   :  { %4388 = vmatmul.mubr.msk.f32.gmra.mrb[24].mxu0 %vm118_vm0, %v6027_v39 }
  0xad   :  { %662 = vmatprep.mubr.f32.mxu0 %v5808_v3 }
  0xb0   :  { %4389 = vmatmul.mubr.msk.f32.gmra.mrb[26].mxu0 %vm118_vm0, %v6035_v40 }
  0xb1   :  { %668 = vmatprep.mubr.f32.mxu0 %v5808_v3 }
  0xb4   :  { %4390 = vmatmul.mubr.msk.f32.gmra.mrb[28].mxu0 %vm118_vm0, %v6043_v41 }
  0xb5   :  { %674 = vmatprep.mubr.f32.mxu0 %v5808_v3 }
  0xb8   :  { %4391 = vmatmul.mubr.msk.f32.gmra.mrb[30].mxu0 %vm118_vm0, %v6051_v42 }
  0xb9   :  { %680 = vmatprep.mubr.f32.mxu0 %v5808_v3 }
  0xbc   :  { %4392 = vmatmul.mubr.msk.f32.gmra.mrb[32].mxu0 %vm118_vm0, %v6059_v43 }
  0xbd   :  { %686 = vmatprep.mubr.f32.mxu0 %v5808_v3 }
  0xc0   :  { %4393 = vmatmul.mubr.msk.f32.gmra.mrb[34].mxu0 %vm118_vm0, %v6067_v44 }
  0xc1   :  { %692 = vmatprep.mubr.f32.mxu0 %v5808_v3 }
  0xc4   :  { %4394 = vmatmul.mubr.msk.f32.gmra.mrb[36].mxu0 %vm118_vm0, %v6075_v45 }
  0xc5   :  { %698 = vmatprep.mubr.f32.mxu0 %v5808_v3 }
  0xc8   :  { %4395 = vmatmul.mubr.msk.f32.gmra.mrb[38].mxu0 %vm118_vm0, %v6083_v46 }
  0xc9   :  { %704 = vmatprep.mubr.f32.mxu0 %v5808_v3 }
  0xcc   :  { %4396 = vmatmul.mubr.msk.f32.gmra.mrb[40].mxu0 %vm118_vm0, %v6091_v47 }
  0xcd   :  { %710 = vmatprep.mubr.f32.mxu0 %v5808_v3 }
  0xd0   :  { %4397 = vmatmul.mubr.msk.f32.gmra.mrb[42].mxu0 %vm118_vm0, %v6099_v48 }
  0xd1   :  { %716 = vmatprep.mubr.f32.mxu0 %v5808_v3 }
  0xd4   :  { %4398 = vmatmul.mubr.msk.f32.gmra.mrb[44].mxu0 %vm118_vm0, %v6107_v49 }
  0xd5   :  { %722 = vmatprep.mubr.f32.mxu0 %v5808_v3 }
  0xd8   :  { %4399 = vmatmul.mubr.msk.f32.gmra.mrb[46].mxu0 %vm118_vm0, %v6115_v50 }
  0xd9   :  { %728 = vmatprep.mubr.f32.mxu0 %v5808_v3 }
  0xdc   :  { %4400 = vmatmul.mubr.msk.f32.gmra.mrb[48].mxu0 %vm118_vm0, %v6123_v51 }
  0xdd   :  { %734 = vmatprep.mubr.f32.mxu0 %v5808_v3 }
  0xe0   :  { %4401 = vmatmul.mubr.msk.f32.gmra.mrb[50].mxu0 %vm118_vm0, %v6131_v52 }
  0xe1   :  { %740 = vmatprep.mubr.f32.mxu0 %v5808_v3 }
  0xe4   :  { %4402 = vmatmul.mubr.msk.f32.gmra.mrb[52].mxu0 %vm118_vm0, %v6139_v53 }
  0xe5   :  { %746 = vmatprep.mubr.f32.mxu0 %v5808_v3 }
  0xe8   :  { %4403 = vmatmul.mubr.msk.f32.gmra.mrb[54].mxu0 %vm118_vm0, %v6147_v54 }
  0xe9   :  { %939 = vmatprep.mubr.f32.mxu0 %v5808_v3 }
  0xec   :  { %4440 = vmatmul.mubr.msk.f32.vlgmr.msra.gmra.mrb[0].mxu0 %vm118_vm0, %v5941_v25  ;;  %v4564_v25 = vld [vmem:[%s8001_s1 + $0x120] sm:$0xff] }
  0xed   :  { %5157 = vmatpush1.bf16.msra.mxu0 %v5156_v10  ;;  %945 = vmatprep.mubr.f32.mxu0 %v5808_v3  ;;  %v5168_v27 = vpack.c.bf16 %v4566_v26, %v4564_v25  ;;  %v2150_v10 = vld [vmem:[%s8003_s5 + $0x60] sm:$0xff]  ;;  %v4612_v26 = vld [vmem:[%s8003_s5 + $0xb8] sm:$0xff] }
  0xee   :  { %5159 = vmatprep.subr.bf16.mxu0 %v5158_v11  ;;  %v2151_v11 = vld [vmem:[%s8003_s5 + $0x68] sm:$0xff] }
  0xef   :  { %v5189_v12 = vpack.c.bf16 %v2151_v11, %v2150_v10  ;;  %v4617_v10 = vld [vmem:[%s8003_s5 + $0xe0] sm:$0xff] }
  0xf0   :  { %4441 = vmatmul.mubr.msk.f32.gmra.mrb[2].mxu0 %vm118_vm0, %v5955_v29 }
  0xf1   :  { %951 = vmatprep.mubr.f32.mxu0 %v5808_v3  ;;  %5161 = vmatpush1.bf16.msra.mxu0 %v5160_v16  ;;  %v4610_v16 = vld [vmem:[%s8003_s5 + $0xa8] sm:$0xff] }
  0xf2   :  { %5163 = vmatprep.subr.bf16.mxu0 %v5162_v17  ;;  %v4611_v17 = vld [vmem:[%s8003_s5 + $0xb0] sm:$0xff] }
  0xf4   :  { %4442 = vmatmul.mubr.msk.f32.gmra.mrb[4].mxu0 %vm118_vm0, %v5963_v31 }
  0xf5   :  { %957 = vmatprep.mubr.f32.mxu0 %v5808_v3 }
  0xf8   :  { %4443 = vmatmul.mubr.msk.f32.gmra.mrb[6].mxu0 %vm118_vm0, %v5971_v32 }
  0xf9   :  { %963 = vmatprep.mubr.f32.mxu0 %v5808_v3 }
  0xfc   :  { %4444 = vmatmul.mubr.msk.f32.gmra.mrb[8].mxu0 %vm118_vm0, %v5979_v33 }
  0xfd   :  { %969 = vmatprep.mubr.f32.mxu0 %v5808_v3 }
 0x100   :  { %4445 = vmatmul.mubr.msk.f32.gmra.mrb[10].mxu0 %vm118_vm0, %v5987_v34 }
 0x101   :  { %975 = vmatprep.mubr.f32.mxu0 %v5808_v3 }
 0x104   :  { %4446 = vmatmul.mubr.msk.f32.gmra.mrb[12].mxu0 %vm118_vm0, %v5995_v35 }
 0x105   :  { %981 = vmatprep.mubr.f32.mxu0 %v5808_v3 }
 0x108   :  { %4447 = vmatmul.mubr.msk.f32.gmra.mrb[14].mxu0 %vm118_vm0, %v6003_v36 }
 0x109   :  { %987 = vmatprep.mubr.f32.mxu0 %v5808_v3 }
 0x10c   :  { %4448 = vmatmul.mubr.msk.f32.gmra.mrb[16].mxu0 %vm118_vm0, %v6011_v37 }
 0x10d   :  { %993 = vmatprep.mubr.f32.mxu0 %v5808_v3 }
 0x110   :  { %4449 = vmatmul.mubr.msk.f32.gmra.mrb[18].mxu0 %vm118_vm0, %v6019_v38 }
 0x111   :  { %999 = vmatprep.mubr.f32.mxu0 %v5808_v3 }
 0x114   :  { %4450 = vmatmul.mubr.msk.f32.gmra.mrb[20].mxu0 %vm118_vm0, %v6027_v39 }
 0x115   :  { %1005 = vmatprep.mubr.f32.mxu0 %v5808_v3 }
 0x118   :  { %4451 = vmatmul.mubr.msk.f32.gmra.mrb[22].mxu0 %vm118_vm0, %v6035_v40 }
 0x119   :  { %1011 = vmatprep.mubr.f32.mxu0 %v5808_v3 }
 0x11c   :  { %4452 = vmatmul.mubr.msk.f32.gmra.mrb[24].mxu0 %vm118_vm0, %v6043_v41 }
 0x11d   :  { %1017 = vmatprep.mubr.f32.mxu0 %v5808_v3 }
 0x120   :  { %4453 = vmatmul.mubr.msk.f32.gmra.mrb[26].mxu0 %vm118_vm0, %v6051_v42 }
 0x121   :  { %1023 = vmatprep.mubr.f32.mxu0 %v5808_v3 }
 0x124   :  { %4454 = vmatmul.mubr.msk.f32.gmra.mrb[28].mxu0 %vm118_vm0, %v6059_v43 }
 0x125   :  { %1029 = vmatprep.mubr.f32.mxu0 %v5808_v3 }
 0x128   :  { %4455 = vmatmul.mubr.msk.f32.gmra.mrb[30].mxu0 %vm118_vm0, %v6067_v44 }
 0x129   :  { %1035 = vmatprep.mubr.f32.mxu0 %v5808_v3 }
 0x12c   :  { %4456 = vmatmul.mubr.msk.f32.gmra.mrb[32].mxu0 %vm118_vm0, %v6075_v45 }
 0x12d   :  { %1041 = vmatprep.mubr.f32.mxu0 %v5808_v3 }
 0x130   :  { %4457 = vmatmul.mubr.msk.f32.gmra.mrb[34].mxu0 %vm118_vm0, %v6083_v46 }
 0x131   :  { %1047 = vmatprep.mubr.f32.mxu0 %v5808_v3 }
 0x134   :  { %4458 = vmatmul.mubr.msk.f32.gmra.mrb[36].mxu0 %vm118_vm0, %v6091_v47 }
 0x135   :  { %1053 = vmatprep.mubr.f32.mxu0 %v5808_v3 }
 0x138   :  { %4459 = vmatmul.mubr.msk.f32.gmra.mrb[38].mxu0 %vm118_vm0, %v6099_v48 }
 0x139   :  { %1059 = vmatprep.mubr.f32.mxu0 %v5808_v3 }
 0x13c   :  { %4460 = vmatmul.mubr.msk.f32.gmra.mrb[40].mxu0 %vm118_vm0, %v6107_v49 }
 0x13d   :  { %1065 = vmatprep.mubr.f32.mxu0 %v5808_v3 }
 0x140   :  { %4461 = vmatmul.mubr.msk.f32.gmra.mrb[42].mxu0 %vm118_vm0, %v6115_v50 }
 0x141   :  { %1071 = vmatprep.mubr.f32.mxu0 %v5808_v3 }
 0x144   :  { %4462 = vmatmul.mubr.msk.f32.gmra.mrb[44].mxu0 %vm118_vm0, %v6123_v51 }
 0x145   :  { %1077 = vmatprep.mubr.f32.mxu0 %v5808_v3 }
 0x148   :  { %4463 = vmatmul.mubr.msk.f32.gmra.mrb[46].mxu0 %vm118_vm0, %v6131_v52 }
 0x149   :  { %1083 = vmatprep.mubr.f32.mxu0 %v5808_v3 }
 0x14c   :  { %4464 = vmatmul.mubr.msk.f32.gmra.mrb[48].mxu0 %vm118_vm0, %v6139_v53 }
 0x14d   :  { %1089 = vmatprep.mubr.f32.mxu0 %v5808_v3 }
 0x150   :  { %4465 = vmatmul.mubr.msk.f32.gmra.mrb[50].mxu0 %vm118_vm0, %v6147_v54 }
 0x151   :  { %1095 = vmatprep.mubr.f32.mxu0 %v5808_v3 }
 0x154   :  { %4466 = vmatmul.mubr.msk.f32.gmra.mrb[52].mxu0 %vm118_vm0, %v6155_v55 }
 0x155   :  { %1101 = vmatprep.mubr.f32.mxu0 %v5808_v3 }
 0x158   :  { %4467 = vmatmul.mubr.msk.f32.gmra.mrb[54].mxu0 %vm118_vm0, %v6378_v18 }
 0x159   :  { %1350 = vmatprep.mubr.f32.mxu0 %v5808_v3 }
 0x15c   :  { %4504 = vmatmul.mubr.msk.f32.vlgmr.msra.gmra.mrb[0].mxu0 %vm118_vm0, %v5955_v29  ;;  %v2138_v29 = vld [vmem:[%s8003_s5] sm:$0xff] }
 0x15d   :  { %5165 = vmatpush1.bf16.msra.mxu0 %v5164_v23  ;;  %1356 = vmatprep.mubr.f32.mxu0 %v5808_v3  ;;  %v5171_v57 = vpack.c.bf16 %v2139_v30, %v2138_v29 }
 0x15e   :  { %5167 = vmatprep.subr.bf16.mxu0 %v5166_v24  ;;  %v5201_v24 = vpack.c.bf16 %v4611_v17, %v4610_v16 }
 0x15f   :  { %5172 = vmatpush1.bf16.msra.mxu1 %v5171_v57 }
 0x160   :  { %4505 = vmatmul.mubr.msk.f32.gmra.mrb[2].mxu0 %vm118_vm0, %v5963_v31  ;;  %5173 = vmatprep.subr.bf16.mxu1 %v5809_v28 }
 0x161   :  { %1362 = vmatprep.mubr.f32.mxu0 %v5808_v3  ;;  %5169 = vmatpush1.bf16.msra.mxu0 %v5168_v27  ;;  %v4613_v27 = vld [vmem:[%s8003_s5 + $0xc0] sm:$0xff] }
 0x163   :  { %5175 = vmatpush1.bf16.msra.mxu1 %v5174_v59  ;;  %v5204_v59 = vpack.c.bf16 %v4613_v27, %v4612_v26 }
 0x164   :  { %4506 = vmatmul.mubr.msk.f32.gmra.mrb[4].mxu0 %vm118_vm0, %v5971_v32  ;;  %5176 = vmatprep.subr.bf16.mxu1 %v5809_v28 }
 0x165   :  { %1368 = vmatprep.mubr.f32.mxu0 %v5808_v3 }
 0x167   :  { %5178 = vmatpush1.bf16.msra.mxu1 %v5177_v62  ;;  %v4614_v62 = vld [vmem:[%s8003_s5 + $0xc8] sm:$0xff] }
 0x168   :  { %4507 = vmatmul.mubr.msk.f32.gmra.mrb[6].mxu0 %vm118_vm0, %v5979_v33  ;;  %5179 = vmatprep.subr.bf16.mxu1 %v5809_v28  ;;  %v5207_v7 = vpack.c.bf16 %v4615_v63, %v4614_v62 }
 0x169   :  { %1374 = vmatprep.mubr.f32.mxu0 %v5808_v3 }
 0x16b   :  { %5181 = vmatpush1.bf16.msra.mxu1 %v5180_v1 }
 0x16c   :  { %4508 = vmatmul.mubr.msk.f32.gmra.mrb[8].mxu0 %vm118_vm0, %v5987_v34  ;;  %5182 = vmatprep.subr.bf16.mxu1 %v5809_v28 }
 0x16d   :  { %1380 = vmatprep.mubr.f32.mxu0 %v5808_v3 }
 0x16f   :  { %5184 = vmatpush1.bf16.msra.mxu1 %v5183_v6 }
 0x170   :  { %4509 = vmatmul.mubr.msk.f32.gmra.mrb[10].mxu0 %vm118_vm0, %v5995_v35  ;;  %5185 = vmatprep.subr.bf16.mxu1 %v5809_v28 }
 0x171   :  { %1386 = vmatprep.mubr.f32.mxu0 %v5808_v3 }
 0x173   :  { %5187 = vmatpush1.bf16.msra.mxu1 %v5186_v9  ;;  %v4616_v9 = vld [vmem:[%s8003_s5 + $0xd8] sm:$0xff] }
 0x174   :  { %4510 = vmatmul.mubr.msk.f32.gmra.mrb[12].mxu0 %vm118_vm0, %v6003_v36  ;;  %5188 = vmatprep.subr.bf16.mxu1 %v5809_v28 }
 0x175   :  { %1392 = vmatprep.mubr.f32.mxu0 %v5808_v3 }
 0x177   :  { %5190 = vmatpush1.bf16.msra.mxu1 %v5189_v12 }
 0x178   :  { %4511 = vmatmul.mubr.msk.f32.gmra.mrb[14].mxu0 %vm118_vm0, %v6011_v37  ;;  %5191 = vmatprep.subr.bf16.mxu1 %v5809_v28 }
 0x179   :  { %1398 = vmatprep.mubr.f32.mxu0 %v5808_v3 }
 0x17c   :  { %4512 = vmatmul.mubr.msk.f32.gmra.mrb[16].mxu0 %vm118_vm0, %v6019_v38 }
 0x17d   :  { %1404 = vmatprep.mubr.f32.mxu0 %v5808_v3 }
 0x180   :  { %4513 = vmatmul.mubr.msk.f32.gmra.mrb[18].mxu0 %vm118_vm0, %v6027_v39 }
 0x181   :  { %1410 = vmatprep.mubr.f32.mxu0 %v5808_v3 }
 0x184   :  { %4514 = vmatmul.mubr.msk.f32.gmra.mrb[20].mxu0 %vm118_vm0, %v6035_v40 }
 0x185   :  { %1416 = vmatprep.mubr.f32.mxu0 %v5808_v3 }
 0x188   :  { %4515 = vmatmul.mubr.msk.f32.gmra.mrb[22].mxu0 %vm118_vm0, %v6043_v41 }
 0x189   :  { %1422 = vmatprep.mubr.f32.mxu0 %v5808_v3 }
 0x18c   :  { %4516 = vmatmul.mubr.msk.f32.gmra.mrb[24].mxu0 %vm118_vm0, %v6051_v42 }
 0x18d   :  { %1428 = vmatprep.mubr.f32.mxu0 %v5808_v3 }
 0x190   :  { %4517 = vmatmul.mubr.msk.f32.gmra.mrb[26].mxu0 %vm118_vm0, %v6059_v43 }
 0x191   :  { %1434 = vmatprep.mubr.f32.mxu0 %v5808_v3 }
 0x194   :  { %4518 = vmatmul.mubr.msk.f32.gmra.mrb[28].mxu0 %vm118_vm0, %v6067_v44 }
 0x195   :  { %1440 = vmatprep.mubr.f32.mxu0 %v5808_v3 }
 0x198   :  { %4519 = vmatmul.mubr.msk.f32.gmra.mrb[30].mxu0 %vm118_vm0, %v6075_v45 }
 0x199   :  { %1446 = vmatprep.mubr.f32.mxu0 %v5808_v3 }
 0x19c   :  { %4520 = vmatmul.mubr.msk.f32.gmra.mrb[32].mxu0 %vm118_vm0, %v6083_v46 }
 0x19d   :  { %1452 = vmatprep.mubr.f32.mxu0 %v5808_v3 }
 0x1a0   :  { %4521 = vmatmul.mubr.msk.f32.gmra.mrb[34].mxu0 %vm118_vm0, %v6091_v47 }
 0x1a1   :  { %1458 = vmatprep.mubr.f32.mxu0 %v5808_v3 }
 0x1a4   :  { %4522 = vmatmul.mubr.msk.f32.gmra.mrb[36].mxu0 %vm118_vm0, %v6099_v48 }
 0x1a5   :  { %1464 = vmatprep.mubr.f32.mxu0 %v5808_v3 }
 0x1a8   :  { %4523 = vmatmul.mubr.msk.f32.gmra.mrb[38].mxu0 %vm118_vm0, %v6107_v49 }
 0x1a9   :  { %1470 = vmatprep.mubr.f32.mxu0 %v5808_v3 }
 0x1ac   :  { %4524 = vmatmul.mubr.msk.f32.gmra.mrb[40].mxu0 %vm118_vm0, %v6115_v50 }
 0x1ad   :  { %1476 = vmatprep.mubr.f32.mxu0 %v5808_v3 }
 0x1b0   :  { %4525 = vmatmul.mubr.msk.f32.gmra.mrb[42].mxu0 %vm118_vm0, %v6123_v51 }
 0x1b1   :  { %1482 = vmatprep.mubr.f32.mxu0 %v5808_v3 }
 0x1b4   :  { %4526 = vmatmul.mubr.msk.f32.gmra.mrb[44].mxu0 %vm118_vm0, %v6131_v52 }
 0x1b5   :  { %1488 = vmatprep.mubr.f32.mxu0 %v5808_v3 }
 0x1b8   :  { %4527 = vmatmul.mubr.msk.f32.gmra.mrb[46].mxu0 %vm118_vm0, %v6139_v53 }
 0x1b9   :  { %1494 = vmatprep.mubr.f32.mxu0 %v5808_v3 }
 0x1bc   :  { %4528 = vmatmul.mubr.msk.f32.gmra.mrb[48].mxu0 %vm118_vm0, %v6147_v54 }
 0x1bd   :  { %1500 = vmatprep.mubr.f32.mxu0 %v5808_v3 }
 0x1c0   :  { %4529 = vmatmul.mubr.msk.f32.gmra.mrb[50].mxu0 %vm118_vm0, %v6155_v55 }
 0x1c1   :  { %1506 = vmatprep.mubr.f32.mxu0 %v5808_v3 }
 0x1c4   :  { %4530 = vmatmul.mubr.msk.f32.gmra.mrb[52].mxu0 %vm118_vm0, %v6378_v18 }
 0x1c5   :  { %1512 = vmatprep.mubr.f32.mxu0 %v5808_v3 }
 0x1c8   :  { %4531 = vmatmul.mubr.msk.f32.gmra.mrb[54].mxu0 %vm118_vm0, %v6512_v2 }
 0x1c9   :  { %1761 = vmatprep.mubr.f32.mxu0 %v5808_v3 }
 0x1cc   :  { %4568 = vmatmul.mubr.msk.f32.vlgmr.msra.gmra.mrb[0].mxu0 %vm118_vm0, %v5963_v31  ;;  %v2152_v31 = vld [vmem:[%s8003_s5 + $0x70] sm:$0xff] }
 0x1cd   :  { %1767 = vmatprep.mubr.f32.mxu0 %v5808_v3 }
 0x1d0   :  { %4569 = vmatmul.mubr.msk.f32.gmra.mrb[2].mxu0 %vm118_vm0, %v5971_v32  ;;  %v2153_v32 = vld [vmem:[%s8003_s5 + $0x78] sm:$0xff] }
 0x1d1   :  { %1773 = vmatprep.mubr.f32.mxu0 %v5808_v3 }
 0x1d4   :  { %4570 = vmatmul.mubr.msk.f32.gmra.mrb[4].mxu0 %vm118_vm0, %v5979_v33  ;;  %v5192_v33 = vpack.c.bf16 %v2153_v32, %v2152_v31 }
 0x1d5   :  { %1779 = vmatprep.mubr.f32.mxu0 %v5808_v3 }
 0x1d6   :  { %5193 = vmatpush1.bf16.msra.mxu1 %v5192_v33 }
 0x1d7   :  { %5194 = vmatprep.subr.bf16.mxu1 %v5809_v28 }
 0x1d8   :  { %4571 = vmatmul.mubr.msk.f32.gmra.mrb[6].mxu0 %vm118_vm0, %v5987_v34  ;;  %v2154_v34 = vld [vmem:[%s8003_s5 + $0x80] sm:$0xff] }
 0x1d9   :  { %1785 = vmatprep.mubr.f32.mxu0 %v5808_v3 }
 0x1dc   :  { %4572 = vmatmul.mubr.msk.f32.gmra.mrb[8].mxu0 %vm118_vm0, %v5995_v35  ;;  %v2155_v35 = vld [vmem:[%s8003_s5 + $0x88] sm:$0xff] }
 0x1dd   :  { %1791 = vmatprep.mubr.f32.mxu0 %v5808_v3 }
 0x1e0   :  { %4573 = vmatmul.mubr.msk.f32.gmra.mrb[10].mxu0 %vm118_vm0, %v6003_v36  ;;  %v5195_v36 = vpack.c.bf16 %v2155_v35, %v2154_v34  ;;  %v5210_v34 = vpack.c.bf16 %v4617_v10, %v4616_v9 }
 0x1e1   :  { %1797 = vmatprep.mubr.f32.mxu0 %v5808_v3 }
 0x1e2   :  { %5196 = vmatpush1.bf16.msra.mxu1 %v5195_v36 }
 0x1e3   :  { %5197 = vmatprep.subr.bf16.mxu1 %v5809_v28 }
 0x1e4   :  { %4574 = vmatmul.mubr.msk.f32.gmra.mrb[12].mxu0 %vm118_vm0, %v6011_v37  ;;  %v2156_v37 = vld [vmem:[%s8003_s5 + $0x90] sm:$0xff] }
 0x1e5   :  { %1803 = vmatprep.mubr.f32.mxu0 %v5808_v3 }
 0x1e8   :  { %4575 = vmatmul.mubr.msk.f32.gmra.mrb[14].mxu0 %vm118_vm0, %v6019_v38  ;;  %v2157_v38 = vld [vmem:[%s8003_s5 + $0x98] sm:$0xff] }
 0x1e9   :  { %1809 = vmatprep.mubr.f32.mxu0 %v5808_v3 }
 0x1ec   :  { %4576 = vmatmul.mubr.msk.f32.gmra.mrb[16].mxu0 %vm118_vm0, %v6027_v39  ;;  %v5198_v39 = vpack.c.bf16 %v2157_v38, %v2156_v37  ;;  %v4618_v37 = vld [vmem:[%s8003_s5 + $0xe8] sm:$0xff]  ;;  %v4619_v38 = vld [vmem:[%s8003_s5 + $0xf0] sm:$0xff] }
 0x1ed   :  { %1815 = vmatprep.mubr.f32.mxu0 %v5808_v3 }
 0x1ee   :  { %5199 = vmatpush1.bf16.msra.mxu1 %v5198_v39 }
 0x1ef   :  { %2242 = vmatprep.subr.mxu1 %v5808_v3 }
 0x1f0   :  { %4577 = vmatmul.mubr.msk.f32.gmra.mrb[18].mxu0 %vm118_vm0, %v6035_v40  ;;  %v2158_v40 = vld [vmem:[%s8003_s5 + $0xa0] sm:$0xff] }
 0x1f1   :  { %1821 = vmatprep.mubr.f32.mxu0 %v5808_v3 }
 0x1f2   :  { %2243 = vmatpush1.msra.mxu1 %v2158_v40 }
 0x1f3   :  { %5200 = vmatprep.subr.bf16.mxu1 %v5809_v28 }
 0x1f4   :  { %4578 = vmatmul.mubr.msk.f32.gmra.mrb[20].mxu0 %vm118_vm0, %v6043_v41  ;;  %v4559_v41 = vld [vmem:[%s8002_s0 + $0xf8] sm:$0xff] }
 0x1f5   :  { %1827 = vmatprep.mubr.f32.mxu0 %v5808_v3 }
 0x1f8   :  { %4579 = vmatmul.mubr.msk.f32.gmra.mrb[22].mxu0 %vm118_vm0, %v6051_v42  ;;  %v1988_v42 = vlaneseq }
 0x1f9   :  { %1833 = vmatprep.mubr.f32.mxu0 %v5808_v3 }
 0x1fc   :  { %4580 = vmatmul.mubr.msk.f32.gmra.mrb[24].mxu0 %vm118_vm0, %v6059_v43  ;;  %v6650_v43 = vshrl.u32 %v1988_v42, 7 }
 0x1fd   :  { %1839 = vmatprep.mubr.f32.mxu0 %v5808_v3 }
 0x200   :  { %4581 = vmatmul.mubr.msk.f32.gmra.mrb[26].mxu0 %vm118_vm0, %v6067_v44  ;;  %v1990_v44 = vsub.s32 0, %v6650_v43 }
 0x201   :  { %1845 = vmatprep.mubr.f32.mxu0 %v5808_v3 }
 0x204   :  { %4582 = vmatmul.mubr.msk.f32.gmra.mrb[28].mxu0 %vm118_vm0, %v6075_v45  ;;  %v1986_v45 = vld [vmem:[%s8004_s2] sm:$0x3] }
 0x205   :  { %1851 = vmatprep.mubr.f32.mxu0 %v5808_v3 }
 0x208   :  { %4583 = vmatmul.mubr.msk.f32.gmra.mrb[30].mxu0 %vm118_vm0, %v6083_v46  ;;  %v1994_v46 = vsub.s32 1, %v6650_v43  ;;  %v4799_v43 = vld [vmem:[%s8006_s6 + $0xa8] sm:$0xff] }
 0x209   :  { %1857 = vmatprep.mubr.f32.mxu0 %v5808_v3 }
 0x20c   :  { %4584 = vmatmul.mubr.msk.f32.gmra.mrb[32].mxu0 %vm118_vm0, %v6091_v47  ;;  %v6659_v47 = vrot.slane %v1986_v45, %v1990_v44 }
 0x20d   :  { %1863 = vmatprep.mubr.f32.mxu0 %v5808_v3 }
 0x210   :  { %4585 = vmatmul.mubr.msk.f32.gmra.mrb[34].mxu0 %vm118_vm0, %v6099_v48 }
 0x211   :  { %1869 = vmatprep.mubr.f32.mxu0 %v5808_v3 }
 0x214   :  { %4586 = vmatmul.mubr.msk.f32.gmra.mrb[36].mxu0 %vm118_vm0, %v6107_v49  ;;  %v6663_v49 = vrot.slane %v1986_v45, %v1994_v46 }
 0x215   :  { %1875 = vmatprep.mubr.f32.mxu0 %v5808_v3 }
 0x218   :  { %4587 = vmatmul.mubr.msk.f32.gmra.mrb[38].mxu0 %vm118_vm0, %v6115_v50 }
 0x219   :  { %1881 = vmatprep.mubr.f32.mxu0 %v5808_v3 }
 0x21c   :  { %4588 = vmatmul.mubr.msk.f32.gmra.mrb[40].mxu0 %vm118_vm0, %v6123_v51 }
 0x21d   :  { %1887 = vmatprep.mubr.f32.mxu0 %v5808_v3 }
 0x220   :  { %4589 = vmatmul.mubr.msk.f32.gmra.mrb[42].mxu0 %vm118_vm0, %v6131_v52 }
 0x221   :  { %1893 = vmatprep.mubr.f32.mxu0 %v5808_v3 }
 0x224   :  { %4590 = vmatmul.mubr.msk.f32.gmra.mrb[44].mxu0 %vm118_vm0, %v6139_v53 }
 0x225   :  { %1899 = vmatprep.mubr.f32.mxu0 %v5808_v3 }
 0x228   :  { %4591 = vmatmul.mubr.msk.f32.gmra.mrb[46].mxu0 %vm118_vm0, %v6147_v54 }
 0x229   :  { %1905 = vmatprep.mubr.f32.mxu0 %v5808_v3 }
 0x22c   :  { %4592 = vmatmul.mubr.msk.f32.gmra.mrb[48].mxu0 %vm118_vm0, %v6155_v55 }
 0x22d   :  { %1911 = vmatprep.mubr.f32.mxu0 %v5808_v3 }
 0x230   :  { %4593 = vmatmul.mubr.msk.f32.gmra.mrb[50].mxu0 %vm118_vm0, %v6378_v18 }
 0x231   :  { %1917 = vmatprep.mubr.f32.mxu0 %v5808_v3 }
 0x234   :  { %4594 = vmatmul.mubr.msk.f32.gmra.mrb[52].mxu0 %vm118_vm0, %v6512_v2 }
 0x235   :  { %1923 = vmatprep.mubr.f32.mxu0 %v5808_v3 }
 0x238   :  { %4595 = vmatmul.mubr.msk.f32.gmra.mrb[54].mxu0 %vm118_vm0, %v4559_v41 }
 0x29f   :  { %v1763_v48 = vpop.f32.mrb[0].mxu0 }
 0x2a0   :  { %v1765_v50 = vpop.f32.mrb[1].mxu0  ;;  %v1998_v51 = vadd.f32 %v6659_v47, %v1763_v48 }
 0x2a1   :  { %v1999_v52 = vadd.f32 %v6663_v49, %v1765_v50  ;;  %v5213_v50 = vpack.c.bf16 %v4619_v38, %v4618_v37 }
 0x2a2   :  { %v2054_v14 = vmax.f32 %v1998_v51, 0.0 }
 0x2a3   :  { %v1769_v53 = vpop.f32.mrb[2].mxu0  ;;  %v2055_v18 = vmax.f32 %v1999_v52, 0.0  ;;  %v4620_v52 = vld [vmem:[%s8003_s5 + $0xf8] sm:$0xff] }
 0x2a4   :  { %v2000_v54 = vadd.f32 %v6659_v47, %v1769_v53  ;;  %v1771_v55 = vpop.f32.mrb[3].mxu0  ;;  %v4621_v53 = vld [vmem:[%s8003_s5 + $0x100] sm:$0xff] }
 0x2a5   :  { %v2001_v13 = vadd.f32 %v6663_v49, %v1771_v55  ;;  %v5216_v16 = vpack.c.bf16 %v4621_v53, %v4620_v52 }
 0x2a6   :  { %v2056_v15 = vmax.f32 %v2000_v54, 0.0 }
 0x2a7   :  { %v2057_v19 = vmax.f32 %v2001_v13, 0.0  ;;  %v1775_v20 = vpop.f32.mrb[4].mxu0 }
 0x2a8   :  { %v6675_v21 = vmax.f32 %v2054_v14, %v2056_v15  ;;  %v1777_v22 = vpop.f32.mrb[5].mxu0  ;;  %v2002_v25 = vadd.f32 %v6659_v47, %v1775_v20  ;;  %v4623_v20 = vld [vmem:[%s8003_s5 + $0x110] sm:$0xff] }
 0x2a9   :  { %v6677_v23 = vmax.f32 %v2055_v18, %v2057_v19  ;;  %v2003_v29 = vadd.f32 %v6663_v49, %v1777_v22  ;;  %v4622_v19 = vld [vmem:[%s8003_s5 + $0x108] sm:$0xff] }
 0x2aa   :  { %v2058_v60 = vmax.f32 %v2002_v25, 0.0 }
 0x2ab   :  { %v1781_v30 = vpop.f32.mrb[6].mxu0  ;;  %4596 = vmatprep.mubr.msk.f32.mxu1 %vm2159_vm1, %v6677_v23  ;;  %v2059_v0 = vmax.f32 %v2003_v29, 0.0 }
 0x2ac   :  { %v2004_v56 = vadd.f32 %v6659_v47, %v1781_v30  ;;  %v1783_v57 = vpop.f32.mrb[7].mxu0  ;;  %2267 = vmatmul.mubr.f32.vlgmr.msra.gmra.mrb[0].mxu1 %v6675_v21  ;;  %v5219_v30 = vpack.c.bf16 %v4623_v20, %v4622_v19 }
 0x2ad   :  { %v2005_v58 = vadd.f32 %v6663_v49, %v1783_v57  ;;  %5202 = vmatpush1.bf16.msra.mxu1 %v5201_v24  ;;  %v4624_v57 = vld [vmem:[%s8003_s5 + $0x118] sm:$0xff] }
 0x2ae   :  { %v2060_v61 = vmax.f32 %v2004_v56, 0.0  ;;  %5203 = vmatprep.subr.bf16.mxu1 %v5809_v28 }
 0x2af   :  { %v2061_v1 = vmax.f32 %v2005_v58, 0.0  ;;  %v1787_v2 = vpop.f32.mrb[8].mxu0  ;;  %v4625_v58 = vld [vmem:[%s8003_s5 + $0x120] sm:$0xff] }
 0x2b0   :  { %v6699_v4 = vmax.f32 %v2058_v60, %v2060_v61  ;;  %v1789_v5 = vpop.f32.mrb[9].mxu0  ;;  %v2006_v8 = vadd.f32 %v6659_v47, %v1787_v2 }
 0x2b1   :  { %v6701_v6 = vmax.f32 %v2059_v0, %v2061_v1  ;;  %5205 = vmatpush1.bf16.msra.mxu1 %v5204_v59  ;;  %v2007_v11 = vadd.f32 %v6663_v49, %v1789_v5  ;;  %v5222_v0 = vpack.c.bf16 %v4625_v58, %v4624_v57  ;;  %v4626_v5 = vld [vmem:[%s8003_s5 + $0x128] sm:$0xff] }
 0x2b2   :  { %5206 = vmatprep.subr.bf16.mxu1 %v5809_v28  ;;  %v2062_v35 = vmax.f32 %v2006_v8, 0.0 }
 0x2b3   :  { %v1793_v12 = vpop.f32.mrb[10].mxu0  ;;  %4597 = vmatprep.mubr.msk.f32.mxu1 %vm2159_vm1, %v6701_v6  ;;  %v2063_v39 = vmax.f32 %v2007_v11, 0.0 }
 0x2b4   :  { %v2008_v31 = vadd.f32 %v6659_v47, %v1793_v12  ;;  %v1795_v32 = vpop.f32.mrb[11].mxu0  ;;  %2272 = vmatmul.mubr.f32.gmra.mrb[2].mxu1 %v6699_v4 }
 0x2b5   :  { %v2009_v33 = vadd.f32 %v6663_v49, %v1795_v32  ;;  %5208 = vmatpush1.bf16.msra.mxu1 %v5207_v7  ;;  %v4627_v7 = vld [vmem:[%s8003_s5 + $0x130] sm:$0xff] }
 0x2b6   :  { %v2064_v36 = vmax.f32 %v2008_v31, 0.0  ;;  %5209 = vmatprep.subr.bf16.mxu1 %v5809_v28  ;;  %v5225_v32 = vpack.c.bf16 %v4627_v7, %v4626_v5 }
 0x2b7   :  { %v2065_v40 = vmax.f32 %v2009_v33, 0.0  ;;  %v1799_v41 = vpop.f32.mrb[12].mxu0 }
 0x2b8   :  { %v6724_v42 = vmax.f32 %v2062_v35, %v2064_v36  ;;  %v1801_v45 = vpop.f32.mrb[13].mxu0  ;;  %v2010_v51 = vadd.f32 %v6659_v47, %v1799_v41  ;;  %v4629_v35 = vld [vmem:[%s8003_s5 + $0x140] sm:$0xff] }
 0x2b9   :  { %v6726_v48 = vmax.f32 %v2063_v39, %v2065_v40  ;;  %5211 = vmatpush1.bf16.msra.mxu1 %v5210_v34  ;;  %v2011_v54 = vadd.f32 %v6663_v49, %v1801_v45  ;;  %v4628_v34 = vld [vmem:[%s8003_s5 + $0x138] sm:$0xff] }
 0x2ba   :  { %5212 = vmatprep.subr.bf16.mxu1 %v5809_v28  ;;  %v2066_v17 = vmax.f32 %v2010_v51, 0.0  ;;  %v5228_v41 = vpack.c.bf16 %v4629_v35, %v4628_v34 }
 0x2bb   :  { %v1805_v55 = vpop.f32.mrb[14].mxu0  ;;  %4598 = vmatprep.mubr.msk.f32.mxu1 %vm2159_vm1, %v6726_v48  ;;  %v2067_v22 = vmax.f32 %v2011_v54, 0.0 }
 0x2bc   :  { %v2012_v13 = vadd.f32 %v6659_v47, %v1805_v55  ;;  %v1807_v14 = vpop.f32.mrb[15].mxu0  ;;  %2277 = vmatmul.mubr.f32.gmra.mrb[4].mxu1 %v6724_v42 }
 0x2bd   :  { %v2013_v15 = vadd.f32 %v6663_v49, %v1807_v14  ;;  %5214 = vmatpush1.bf16.msra.mxu1 %v5213_v50 }
 0x2be   :  { %v2068_v18 = vmax.f32 %v2012_v13, 0.0  ;;  %5215 = vmatprep.subr.bf16.mxu1 %v5809_v28 }
 0x2bf   :  { %v2069_v24 = vmax.f32 %v2013_v15, 0.0  ;;  %v1811_v25 = vpop.f32.mrb[16].mxu0  ;;  %v4630_v15 = vld [vmem:[%s8003_s5 + $0x148] sm:$0xff] }
 0x2c0   :  { %v6749_v26 = vmax.f32 %v2066_v17, %v2068_v18  ;;  %v1813_v27 = vpop.f32.mrb[17].mxu0  ;;  %v2014_v56 = vadd.f32 %v6659_v47, %v1811_v25 }
 0x2c1   :  { %v6751_v29 = vmax.f32 %v2067_v22, %v2069_v24  ;;  %5217 = vmatpush1.bf16.msra.mxu1 %v5216_v16  ;;  %v2015_v59 = vadd.f32 %v6663_v49, %v1813_v27 }
 0x2c2   :  { %5218 = vmatprep.subr.bf16.mxu1 %v5809_v28  ;;  %v2070_v1 = vmax.f32 %v2014_v56, 0.0 }
 0x2c3   :  { %v1817_v60 = vpop.f32.mrb[18].mxu0  ;;  %4599 = vmatprep.mubr.msk.f32.mxu1 %vm2159_vm1, %v6751_v29  ;;  %v2071_v8 = vmax.f32 %v2015_v59, 0.0 }
 0x2c4   :  { %v2016_v61 = vadd.f32 %v6659_v47, %v1817_v60  ;;  %v1819_v62 = vpop.f32.mrb[19].mxu0  ;;  %2282 = vmatmul.mubr.f32.gmra.mrb[6].mxu1 %v6749_v26 }
 0x2c5   :  { %v2017_v63 = vadd.f32 %v6663_v49, %v1819_v62  ;;  %5220 = vmatpush1.bf16.msra.mxu1 %v5219_v30 }
 0x2c6   :  { %v2072_v2 = vmax.f32 %v2016_v61, 0.0  ;;  %5221 = vmatprep.subr.bf16.mxu1 %v5809_v28 }
 0x2c7   :  { %v2073_v9 = vmax.f32 %v2017_v63, 0.0  ;;  %v1823_v10 = vpop.f32.mrb[20].mxu0 }
 0x2c8   :  { %v6774_v11 = vmax.f32 %v2070_v1, %v2072_v2  ;;  %v1825_v12 = vpop.f32.mrb[21].mxu0  ;;  %v2018_v33 = vadd.f32 %v6659_v47, %v1823_v10 }
 0x2c9   :  { %v6776_v31 = vmax.f32 %v2071_v8, %v2073_v9  ;;  %5223 = vmatpush1.bf16.msra.mxu1 %v5222_v0  ;;  %v2019_v36 = vadd.f32 %v6663_v49, %v1825_v12 }
 0x2ca   :  { %5224 = vmatprep.subr.bf16.mxu1 %v5809_v28  ;;  %v2074_v45 = vmax.f32 %v2018_v33, 0.0 }
 0x2cb   :  { %v1829_v37 = vpop.f32.mrb[22].mxu0  ;;  %4600 = vmatprep.mubr.msk.f32.mxu1 %vm2159_vm1, %v6776_v31  ;;  %v2075_v51 = vmax.f32 %v2019_v36, 0.0 }
 0x2cc   :  { %v2020_v38 = vadd.f32 %v6659_v47, %v1829_v37  ;;  %v1831_v39 = vpop.f32.mrb[23].mxu0  ;;  %2287 = vmatmul.mubr.f32.gmra.mrb[8].mxu1 %v6774_v11 }
 0x2cd   :  { %v2021_v40 = vadd.f32 %v6663_v49, %v1831_v39  ;;  %5226 = vmatpush1.bf16.msra.mxu1 %v5225_v32 }
 0x2ce   :  { %v2076_v50 = vmax.f32 %v2020_v38, 0.0  ;;  %5227 = vmatprep.subr.bf16.mxu1 %v5809_v28 }
 0x2cf   :  { %v2077_v52 = vmax.f32 %v2021_v40, 0.0  ;;  %v1835_v53 = vpop.f32.mrb[24].mxu0 }
 0x2d0   :  { %v6793_v54 = vmax.f32 %v2074_v45, %v2076_v50  ;;  %v1837_v55 = vpop.f32.mrb[25].mxu0  ;;  %v2022_v14 = vadd.f32 %v6659_v47, %v1835_v53 }
 0x2d1   :  { %v6795_v13 = vmax.f32 %v2075_v51, %v2077_v52  ;;  %5229 = vmatpush1.bf16.msra.mxu1 %v5228_v41  ;;  %v2023_v16 = vadd.f32 %v6663_v49, %v1837_v55 }
 0x2d2   :  { %2399 = vmatprep.subr.mxu1 %v5808_v3  ;;  %v2078_v22 = vmax.f32 %v2022_v14, 0.0 }
 0x2d3   :  { %v1841_v17 = vpop.f32.mrb[26].mxu0  ;;  %4601 = vmatprep.mubr.msk.f32.mxu1 %vm2159_vm1, %v6795_v13  ;;  %v2079_v25 = vmax.f32 %v2023_v16, 0.0 }
 0x2d4   :  { %v2024_v18 = vadd.f32 %v6659_v47, %v1841_v17  ;;  %v1843_v19 = vpop.f32.mrb[27].mxu0  ;;  %2292 = vmatmul.mubr.f32.gmra.mrb[10].mxu1 %v6793_v54 }
 0x2d5   :  { %v2025_v20 = vadd.f32 %v6663_v49, %v1843_v19  ;;  %2400 = vmatpush1.msra.mxu1 %v4630_v15 }
 0x2d6   :  { %v2080_v24 = vmax.f32 %v2024_v18, 0.0 }
 0x2d7   :  { %v2081_v27 = vmax.f32 %v2025_v20, 0.0  ;;  %v1847_v30 = vpop.f32.mrb[28].mxu0 }
 0x2d8   :  { %v6808_v56 = vmax.f32 %v2078_v22, %v2080_v24  ;;  %v1849_v57 = vpop.f32.mrb[29].mxu0  ;;  %v2026_v59 = vadd.f32 %v6659_v47, %v1847_v30 }
 0x2d9   :  { %v6810_v58 = vmax.f32 %v2079_v25, %v2081_v27  ;;  %v2027_v60 = vadd.f32 %v6663_v49, %v1849_v57 }
 0x2da   :  { %v2082_v1 = vmax.f32 %v2026_v59, 0.0 }
 0x2db   :  { %v1853_v61 = vpop.f32.mrb[30].mxu0  ;;  %4602 = vmatprep.mubr.msk.f32.mxu1 %vm2159_vm1, %v6810_v58  ;;  %v2083_v5 = vmax.f32 %v2027_v60, 0.0 }
 0x2dc   :  { %v2028_v62 = vadd.f32 %v6659_v47, %v1853_v61  ;;  %v1855_v63 = vpop.f32.mrb[31].mxu0  ;;  %2297 = vmatmul.mubr.f32.gmra.mrb[12].mxu1 %v6808_v56 }
 0x2dd   :  { %v2029_v0 = vadd.f32 %v6663_v49, %v1855_v63 }
 0x2de   :  { %v2084_v2 = vmax.f32 %v2028_v62, 0.0 }
 0x2df   :  { %v2085_v7 = vmax.f32 %v2029_v0, 0.0  ;;  %v1859_v8 = vpop.f32.mrb[32].mxu0 }
 0x2e0   :  { %v6819_v9 = vmax.f32 %v2082_v1, %v2084_v2  ;;  %v1861_v10 = vpop.f32.mrb[33].mxu0  ;;  %v2030_v32 = vadd.f32 %v6659_v47, %v1859_v8 }
 0x2e1   :  { %v6821_v12 = vmax.f32 %v2083_v5, %v2085_v7  ;;  %v2031_v33 = vadd.f32 %v6663_v49, %v1861_v10 }
 0x2e2   :  { %v2086_v38 = vmax.f32 %v2030_v32, 0.0 }
 0x2e3   :  { %v1865_v34 = vpop.f32.mrb[34].mxu0  ;;  %4603 = vmatprep.mubr.msk.f32.mxu1 %vm2159_vm1, %v6821_v12  ;;  %v2087_v40 = vmax.f32 %v2031_v33, 0.0 }
 0x2e4   :  { %v2032_v35 = vadd.f32 %v6659_v47, %v1865_v34  ;;  %v1867_v36 = vpop.f32.mrb[35].mxu0  ;;  %2302 = vmatmul.mubr.f32.gmra.mrb[14].mxu1 %v6819_v9 }
 0x2e5   :  { %v2033_v37 = vadd.f32 %v6663_v49, %v1867_v36 }
 0x2e6   :  { %v2088_v39 = vmax.f32 %v2032_v35, 0.0 }
 0x2e7   :  { %v2089_v41 = vmax.f32 %v2033_v37, 0.0  ;;  %v1871_v45 = vpop.f32.mrb[36].mxu0 }
 0x2e8   :  { %v6830_v50 = vmax.f32 %v2086_v38, %v2088_v39  ;;  %v1873_v51 = vpop.f32.mrb[37].mxu0  ;;  %v2034_v53 = vadd.f32 %v6659_v47, %v1871_v45 }
 0x2e9   :  { %v6832_v52 = vmax.f32 %v2087_v40, %v2089_v41  ;;  %v2035_v55 = vadd.f32 %v6663_v49, %v1873_v51 }
 0x2ea   :  { %v2090_v18 = vmax.f32 %v2034_v53, 0.0 }
 0x2eb   :  { %v1877_v14 = vpop.f32.mrb[38].mxu0  ;;  %4604 = vmatprep.mubr.msk.f32.mxu1 %vm2159_vm1, %v6832_v52  ;;  %v2091_v20 = vmax.f32 %v2035_v55, 0.0 }
 0x2ec   :  { %v2036_v15 = vadd.f32 %v6659_v47, %v1877_v14  ;;  %v1879_v16 = vpop.f32.mrb[39].mxu0  ;;  %2307 = vmatmul.mubr.f32.gmra.mrb[16].mxu1 %v6830_v50 }
 0x2ed   :  { %v2037_v17 = vadd.f32 %v6663_v49, %v1879_v16 }
 0x2ee   :  { %v2092_v19 = vmax.f32 %v2036_v15, 0.0 }
 0x2ef   :  { %v2093_v22 = vmax.f32 %v2037_v17, 0.0  ;;  %v1883_v24 = vpop.f32.mrb[40].mxu0 }
 0x2f0   :  { %v6841_v25 = vmax.f32 %v2090_v18, %v2092_v19  ;;  %v1885_v27 = vpop.f32.mrb[41].mxu0  ;;  %v2038_v57 = vadd.f32 %v6659_v47, %v1883_v24 }
 0x2f1   :  { %v6843_v30 = vmax.f32 %v2091_v20, %v2093_v22  ;;  %v2039_v59 = vadd.f32 %v6663_v49, %v1885_v27 }
 0x2f2   :  { %v2094_v0 = vmax.f32 %v2038_v57, 0.0 }
 0x2f3   :  { %v1889_v60 = vpop.f32.mrb[42].mxu0  ;;  %4605 = vmatprep.mubr.msk.f32.mxu1 %vm2159_vm1, %v6843_v30  ;;  %v2095_v2 = vmax.f32 %v2039_v59, 0.0 }
 0x2f4   :  { %v2040_v61 = vadd.f32 %v6659_v47, %v1889_v60  ;;  %v1891_v62 = vpop.f32.mrb[43].mxu0  ;;  %2312 = vmatmul.mubr.f32.gmra.mrb[18].mxu1 %v6841_v25 }
 0x2f5   :  { %v2041_v63 = vadd.f32 %v6663_v49, %v1891_v62 }
 0x2f6   :  { %v2096_v1 = vmax.f32 %v2040_v61, 0.0 }
 0x2f7   :  { %v2097_v5 = vmax.f32 %v2041_v63, 0.0  ;;  %v1895_v7 = vpop.f32.mrb[44].mxu0 }
 0x2f8   :  { %v6852_v8 = vmax.f32 %v2094_v0, %v2096_v1  ;;  %v1897_v10 = vpop.f32.mrb[45].mxu0  ;;  %v2042_v33 = vadd.f32 %v6659_v47, %v1895_v7 }
 0x2f9   :  { %v6854_v32 = vmax.f32 %v2095_v2, %v2097_v5  ;;  %v2043_v34 = vadd.f32 %v6663_v49, %v1897_v10 }
 0x2fa   :  { %v2098_v39 = vmax.f32 %v2042_v33, 0.0 }
 0x2fb   :  { %v1901_v35 = vpop.f32.mrb[46].mxu0  ;;  %4606 = vmatprep.mubr.msk.f32.mxu1 %vm2159_vm1, %v6854_v32  ;;  %v2099_v41 = vmax.f32 %v2043_v34, 0.0 }
 0x2fc   :  { %v2044_v36 = vadd.f32 %v6659_v47, %v1901_v35  ;;  %v1903_v37 = vpop.f32.mrb[47].mxu0  ;;  %2317 = vmatmul.mubr.f32.gmra.mrb[20].mxu1 %v6852_v8 }
 0x2fd   :  { %v2045_v38 = vadd.f32 %v6663_v49, %v1903_v37 }
 0x2fe   :  { %v2100_v40 = vmax.f32 %v2044_v36, 0.0 }
 0x2ff   :  { %v2101_v45 = vmax.f32 %v2045_v38, 0.0  ;;  %v1907_v51 = vpop.f32.mrb[48].mxu0  ;;  %v4662_v38 = vld [vmem:[%s8005_s3 + $0x138] sm:$0xff] }
 0x300   :  { %v6863_v53 = vmax.f32 %v2098_v39, %v2100_v40  ;;  %v1909_v55 = vpop.f32.mrb[49].mxu0  ;;  %v2046_v15 = vadd.f32 %v6659_v47, %v1907_v51  ;;  %v4664_v39 = vld [vmem:[%s8005_s3 + $0x148] sm:$0xff]  ;;  %v4661_v40 = vld [vmem:[%s8005_s3 + $0x130] sm:$0xff] }
 0x301   :  { %v6865_v14 = vmax.f32 %v2099_v41, %v2101_v45  ;;  %v2047_v16 = vadd.f32 %v6663_v49, %v1909_v55  ;;  %v5246_v41 = vpack.c.bf16 %v4664_v39, %v4662_v38  ;;  %v4663_v45 = vld [vmem:[%s8005_s3 + $0x140] sm:$0xff]  ;;  %v4665_v55 = vld [vmem:[%s8005_s3 + $0x150] sm:$0xf] }
 0x302   :  { %v2102_v22 = vmax.f32 %v2046_v15, 0.0  ;;  %v5248_v51 = vpack.c.bf16 %v4663_v45, %v4661_v40  ;;  %v2511_v15 = vld [vmem:[%s8005_s3 + $0x18] sm:$0xff]  ;;  %v2516_v39 = vld [vmem:[%s8005_s3 + $0x40] sm:$0xff]  ;;  %v2518_v40 = vld [vmem:[%s8005_s3 + $0x50] sm:$0xff] }
 0x303   :  { %v1913_v17 = vpop.f32.mrb[50].mxu0  ;;  %4607 = vmatprep.mubr.msk.f32.mxu1 %vm2159_vm1, %v6865_v14  ;;  %v2103_v27 = vmax.f32 %v2047_v16, 0.0  ;;  %v2523_v45 = vld [vmem:[%s8005_s3 + $0x78] sm:$0xff] }
 0x304   :  { %v2048_v18 = vadd.f32 %v6659_v47, %v1913_v17  ;;  %v1915_v19 = vpop.f32.mrb[51].mxu0  ;;  %2322 = vmatmul.mubr.f32.gmra.mrb[22].mxu1 %v6863_v53 }
 0x305   :  { %v2049_v20 = vadd.f32 %v6663_v49, %v1915_v19 }
 0x306   :  { %v2104_v24 = vmax.f32 %v2048_v18, 0.0 }
 0x307   :  { %v2105_v57 = vmax.f32 %v2049_v20, 0.0  ;;  %v1919_v59 = vpop.f32.mrb[52].mxu0 }
 0x308   :  { %v2134_v60 = vmax.f32 %v2102_v22, %v2104_v24  ;;  %v1921_v61 = vpop.f32.mrb[53].mxu0  ;;  %v2050_v63 = vadd.f32 %v6659_v47, %v1919_v59 }
 0x309   :  { %v2135_v62 = vmax.f32 %v2103_v27, %v2105_v57  ;;  %v2051_v0 = vadd.f32 %v6663_v49, %v1921_v61 }
 0x30a   :  { %v2106_v10 = vmax.f32 %v2050_v63, 0.0 }
 0x30b   :  { %v1925_v1 = vpop.f32.mrb[54].mxu0  ;;  %4608 = vmatprep.mubr.msk.f32.mxu1 %vm2159_vm1, %v2135_v62  ;;  %v2107_v34 = vmax.f32 %v2051_v0, 0.0 }
 0x30c   :  { %v2052_v2 = vadd.f32 %v6659_v47, %v1925_v1  ;;  %v1927_v5 = vpop.f32.mrb[55].mxu0  ;;  %2327 = vmatmul.mubr.f32.gmra.mrb[24].mxu1 %v2134_v60  ;;  %v4646_v47 = vld [vmem:[%s8005_s3 + $0xb8] sm:$0xff] }
 0x30d   :  { %v2053_v7 = vadd.f32 %v6663_v49, %v1927_v5  ;;  %v4648_v49 = vld [vmem:[%s8005_s3 + $0xc8] sm:$0xff] }
 0x30e   :  { %v2108_v33 = vmax.f32 %v2052_v2, 0.0 }
 0x30f   :  { %v2109_v35 = vmax.f32 %v2053_v7, 0.0 }
 0x310   :  { %v2136_v36 = vmax.f32 %v2106_v10, %v2108_v33 }
 0x311   :  { %v2137_v37 = vmax.f32 %v2107_v34, %v2109_v35 }
 0x313   :  { %4609 = vmatprep.mubr.msk.f32.mxu1 %vm2159_vm1, %v2137_v37 }
 0x314   :  { %2332 = vmatmul.mubr.f32.gmra.mrb[26].mxu1 %v2136_v36 }
 0x315   :  { %4631 = vmatprep.mubr.msk.f32.mxu1 %vm2159_vm1, %v6677_v23  ;;  %v5230_v23 = vpack.c.bf16 %v4648_v49, %v4646_v47 }
 0x317   :  { %5231 = vmatprep.subr.bf16.mxu1 %v5230_v23 }
 0x318   :  { %2424 = vmatmul.mubr.f32.vlgmr.msra.gmra.mrb[28].mxu1 %v6675_v21  ;;  %v4645_v21 = vld [vmem:[%s8005_s3 + $0xb0] sm:$0xff] }
 0x319   :  { %4632 = vmatprep.mubr.msk.f32.mxu1 %vm2159_vm1, %v6701_v6 }
 0x31c   :  { %2429 = vmatmul.mubr.f32.gmra.mrb[30].mxu1 %v6699_v4  ;;  %v4647_v4 = vld [vmem:[%s8005_s3 + $0xc0] sm:$0xff] }
 0x31d   :  { %4633 = vmatprep.mubr.msk.f32.mxu1 %vm2159_vm1, %v6726_v48  ;;  %v5232_v6 = vpack.c.bf16 %v4647_v4, %v4645_v21  ;;  %v4652_v48 = vld [vmem:[%s8005_s3 + $0xe8] sm:$0xff] }
 0x31f   :  { %5233 = vmatpush1.bf16.msra.mxu1 %v5232_v6 }
 0x320   :  { %2434 = vmatmul.mubr.f32.gmra.mrb[32].mxu1 %v6724_v42  ;;  %v4650_v42 = vld [vmem:[%s8005_s3 + $0xd8] sm:$0xff] }
 0x321   :  { %4634 = vmatprep.mubr.msk.f32.mxu1 %vm2159_vm1, %v6751_v29  ;;  %v5234_v29 = vpack.c.bf16 %v4652_v48, %v4650_v42  ;;  %v2508_v48 = vld [vmem:[%s8005_s3] sm:$0xff] }
 0x323   :  { %5235 = vmatprep.subr.bf16.mxu1 %v5234_v29  ;;  %v2513_v29 = vld [vmem:[%s8005_s3 + $0x28] sm:$0xff] }
 0x324   :  { %2439 = vmatmul.mubr.f32.gmra.mrb[34].mxu1 %v6749_v26  ;;  %v4649_v26 = vld [vmem:[%s8005_s3 + $0xd0] sm:$0xff] }
 0x325   :  { %4635 = vmatprep.mubr.msk.f32.mxu1 %vm2159_vm1, %v6776_v31 }
 0x328   :  { %2444 = vmatmul.mubr.f32.gmra.mrb[36].mxu1 %v6774_v11  ;;  %v4651_v11 = vld [vmem:[%s8005_s3 + $0xe0] sm:$0xff] }
 0x329   :  { %4636 = vmatprep.mubr.msk.f32.mxu1 %vm2159_vm1, %v6795_v13  ;;  %v5236_v31 = vpack.c.bf16 %v4651_v11, %v4649_v26  ;;  %v4656_v13 = vld [vmem:[%s8005_s3 + $0x108] sm:$0xff]  ;;  %v2510_v26 = vld [vmem:[%s8005_s3 + $0x10] sm:$0xff]  ;;  %v2515_v11 = vld [vmem:[%s8005_s3 + $0x38] sm:$0xff] }
 0x32b   :  { %5237 = vmatpush1.bf16.msra.mxu1 %v5236_v31 }
 0x32c   :  { %2449 = vmatmul.mubr.f32.gmra.mrb[38].mxu1 %v6793_v54  ;;  %v4654_v54 = vld [vmem:[%s8005_s3 + $0xf8] sm:$0xff] }
 0x32d   :  { %4637 = vmatprep.mubr.msk.f32.mxu1 %vm2159_vm1, %v6810_v58  ;;  %v5238_v58 = vpack.c.bf16 %v4656_v13, %v4654_v54  ;;  %v5252_v54 = vpack.c.bf16 %v2510_v26, %v2508_v48  ;;  %v2528_v48 = vld [vmem:[%s8005_s3 + $0xa0] sm:$0xf] }
 0x32f   :  { %5239 = vmatprep.subr.bf16.mxu1 %v5238_v58  ;;  %v5254_v58 = vpack.c.bf16 %v2515_v11, %v2513_v29 }
 0x330   :  { %2454 = vmatmul.mubr.f32.gmra.mrb[40].mxu1 %v6808_v56  ;;  %v4653_v56 = vld [vmem:[%s8005_s3 + $0xf0] sm:$0xff] }
 0x331   :  { %4638 = vmatprep.mubr.msk.f32.mxu1 %vm2159_vm1, %v6821_v12 }
 0x334   :  { %2459 = vmatmul.mubr.f32.gmra.mrb[42].mxu1 %v6819_v9  ;;  %v4655_v9 = vld [vmem:[%s8005_s3 + $0x100] sm:$0xff] }
 0x335   :  { %4639 = vmatprep.mubr.msk.f32.mxu1 %vm2159_vm1, %v6832_v52  ;;  %v5240_v12 = vpack.c.bf16 %v4655_v9, %v4653_v56  ;;  %v4660_v52 = vld [vmem:[%s8005_s3 + $0x128] sm:$0xff]  ;;  %v2512_v9 = vld [vmem:[%s8005_s3 + $0x20] sm:$0xff] }
 0x337   :  { %5241 = vmatpush1.bf16.msra.mxu1 %v5240_v12  ;;  %v2514_v12 = vld [vmem:[%s8005_s3 + $0x30] sm:$0xff] }
 0x338   :  { %2464 = vmatmul.mubr.f32.gmra.mrb[44].mxu1 %v6830_v50  ;;  %v4658_v50 = vld [vmem:[%s8005_s3 + $0x118] sm:$0xff] }
 0x339   :  { %4640 = vmatprep.mubr.msk.f32.mxu1 %vm2159_vm1, %v6843_v30  ;;  %v4657_v30 = vld [vmem:[%s8005_s3 + $0x110] sm:$0xff] }
 0x33c   :  { %2469 = vmatmul.mubr.f32.gmra.mrb[46].mxu1 %v6841_v25  ;;  %v5242_v25 = vpack.c.bf16 %v4660_v52, %v4658_v50  ;;  %v2517_v50 = vld [vmem:[%s8005_s3 + $0x48] sm:$0xff]  ;;  %v2519_v52 = vld [vmem:[%s8005_s3 + $0x58] sm:$0xff] }
 0x33d   :  { %4641 = vmatprep.mubr.msk.f32.mxu1 %vm2159_vm1, %v6854_v32  ;;  %v5258_v38 = vpack.c.bf16 %v2519_v52, %v2517_v50  ;;  %v4691_v52 = vld [vmem:[%s8005_s3 + $0x160] sm:$0xff] }
 0x33e   :  { %5243 = vmatprep.subr.bf16.mxu1 %v5242_v25 }
 0x340   :  { %2474 = vmatmul.mubr.f32.gmra.mrb[48].mxu1 %v6852_v8  ;;  %v4659_v8 = vld [vmem:[%s8005_s3 + $0x120] sm:$0xff] }
 0x341   :  { %4642 = vmatprep.mubr.msk.f32.mxu1 %vm2159_vm1, %v6865_v14  ;;  %v5244_v32 = vpack.c.bf16 %v4659_v8, %v4657_v30  ;;  %v2509_v14 = vld [vmem:[%s8005_s3 + $0x8] sm:$0xff]  ;;  %v5256_v30 = vpack.c.bf16 %v2514_v12, %v2512_v9 }
 0x342   :  { %v5250_v16 = vpack.c.bf16 %v2511_v15, %v2509_v14 }
 0x343   :  { %5245 = vmatpush1.bf16.msra.mxu1 %v5244_v32 }
 0x344   :  { %2479 = vmatmul.mubr.f32.gmra.mrb[50].mxu1 %v6863_v53  ;;  %5247 = vmatprep.subr.bf16.mxu1 %v5246_v41  ;;  %v4666_v53 = vld [vmem:[%s8005_s3 + $0x158] sm:$0xf]  ;;  %v2521_v41 = vld [vmem:[%s8005_s3 + $0x68] sm:$0xff] }
 0x345   :  { %4643 = vmatprep.mubr.msk.f32.mxu1 %vm2159_vm1, %v2135_v62  ;;  %v5262_v15 = vpack.c.bf16 %v2523_v45, %v2521_v41  ;;  %v4695_v41 = vld [vmem:[%s8005_s3 + $0x180] sm:$0xff]  ;;  %v4697_v45 = vld [vmem:[%s8005_s3 + $0x190] sm:$0xff] }
 0x347   :  { %5249 = vmatpush1.bf16.msra.mxu1 %v5248_v51 }
 0x348   :  { %2484 = vmatmul.mubr.f32.gmra.mrb[52].mxu1 %v2134_v60  ;;  %4667 = vmatprep.subr.msk.mxu1 %vm2584_vm2, %v4666_v53  ;;  %v5260_v53 = vpack.c.bf16 %v2518_v40, %v2516_v39 }
 0x349   :  { %4644 = vmatprep.mubr.msk.f32.mxu1 %vm2159_vm1, %v2137_v37 }
 0x34b   :  { %4668 = vmatpush1.msk.msra.mxu1 %vm2584_vm2, %v4665_v55 }
 0x34c   :  { %2489 = vmatmul.mubr.f32.gmra.mrb[54].mxu1 %v2136_v36  ;;  %5251 = vmatprep.subr.bf16.mxu1 %v5250_v16  ;;  %v2520_v16 = vld [vmem:[%s8005_s3 + $0x60] sm:$0xff] }
 0x34d   :  { %2655 = vmatprep.mubr.f32.mxu1 %v5808_v3 }
 0x37f   :  { %v6993_v17 = vpop.f32.mrb[0].mxu1 }
 0x380   :  { %v2270_v18 = vpop.f32.mrb[1].mxu1 }
 0x381   :  { %v2522_v18 = vld [vmem:[%s8005_s3 + $0x70] sm:$0xff] }
 0x387   :  { %v2273_v19 = vpop.f32.mrb[2].mxu1 }
 0x388   :  { %v2275_v20 = vpop.f32.mrb[3].mxu1 }
 0x389   :  { %v2527_v20 = vld [vmem:[%s8005_s3 + $0x98] sm:$0xff] }
 0x38f   :  { %v2278_v22 = vpop.f32.mrb[4].mxu1 }
 0x390   :  { %v2280_v24 = vpop.f32.mrb[5].mxu1 }
 0x391   :  { %v5264_v24 = vpack.c.bf16 %v2522_v18, %v2520_v16 }
 0x397   :  { %v2283_v27 = vpop.f32.mrb[6].mxu1 }
 0x398   :  { %v2285_v57 = vpop.f32.mrb[7].mxu1 }
 0x39f   :  { %v6995_v59 = vpop.f32.mrb[8].mxu1 }
 0x3a0   :  { %v2290_v60 = vpop.f32.mrb[9].mxu1 }
 0x3a7   :  { %v6997_v61 = vpop.f32.mrb[10].mxu1 }
 0x3a8   :  { %v2295_v62 = vpop.f32.mrb[11].mxu1 }
 0x3a9   :  { %v2524_v62 = vld [vmem:[%s8005_s3 + $0x80] sm:$0xff] }
 0x3af   :  { %v6999_v63 = vpop.f32.mrb[12].mxu1 }
 0x3b0   :  { %v2300_v0 = vpop.f32.mrb[13].mxu1 }
 0x3b1   :  { %v2526_v0 = vld [vmem:[%s8005_s3 + $0x90] sm:$0xff] }
 0x3b7   :  { %v7001_v1 = vpop.f32.mrb[14].mxu1 }
 0x3b8   :  { %v2305_v2 = vpop.f32.mrb[15].mxu1 }
 0x3bf   :  { %v7003_v5 = vpop.f32.mrb[16].mxu1 }
 0x3c0   :  { %v2310_v7 = vpop.f32.mrb[17].mxu1 }
 0x3c7   :  { %v7005_v10 = vpop.f32.mrb[18].mxu1 }
 0x3c8   :  { %v2315_v33 = vpop.f32.mrb[19].mxu1 }
 0x3cf   :  { %v7007_v34 = vpop.f32.mrb[20].mxu1 }
 0x3d0   :  { %v2320_v35 = vpop.f32.mrb[21].mxu1 }
 0x3d1   :  { %v2529_v35 = vld [vmem:[%s8005_s3 + $0xa8] sm:$0xf] }
 0x3d7   :  { %v7009_v36 = vpop.f32.mrb[22].mxu1 }
 0x3d8   :  { %v2325_v37 = vpop.f32.mrb[23].mxu1 }
 0x3d9   :  { %v4692_v37 = vld [vmem:[%s8005_s3 + $0x168] sm:$0xff] }
 0x3df   :  { %v7011_v47 = vpop.f32.mrb[24].mxu1 }
 0x3e0   :  { %v2330_v49 = vpop.f32.mrb[25].mxu1 }
 0x3e1   :  { %v4694_v49 = vld [vmem:[%s8005_s3 + $0x178] sm:$0xff] }
 0x3e2   :  { %v5270_v26 = vpack.c.bf16 %v4694_v49, %v4692_v37  ;;  %v4712_v49 = vld [vmem:[%s8005_s3 + $0x208] sm:$0xf] }
 0x3e7   :  { %v7013_v21 = vpop.f32.mrb[26].mxu1 }
 0x3e8   :  { %v2335_v23 = vpop.f32.mrb[27].mxu1 }
 0x3eb   :  { %v7015_v4 = vpop.f32.mrb[28].mxu1 }
 0x3ec   :  { %v2494_v6 = vmax.f32 %v6993_v17, %v7015_v4  ;;  %v2427_v42 = vpop.f32.mrb[29].mxu1  ;;  %v4701_v17 = vld [vmem:[%s8005_s3 + $0x1b0] sm:$0xff]  ;;  %v4704_v4 = vld [vmem:[%s8005_s3 + $0x1c8] sm:$0xff] }
 0x3ef   :  { %v2430_v31 = vpop.f32.mrb[30].mxu1 }
 0x3f0   :  { %v7031_v13 = vmax.f32 %v2273_v19, %v2430_v31  ;;  %v2432_v56 = vpop.f32.mrb[31].mxu1  ;;  %v2525_v19 = vld [vmem:[%s8005_s3 + $0x88] sm:$0xff] }
 0x3f1   :  { %v5266_v60 = vpack.c.bf16 %v2527_v20, %v2525_v19  ;;  %v4699_v19 = vld [vmem:[%s8005_s3 + $0x1a0] sm:$0xff] }
 0x3f2   :  { %4669 = vmatmul.mubr.msk.f32.vlgmr.msra.gmra.mrb[56].mxu1 %vm2553_vm3, %v7031_v13  ;;  %v5280_v20 = vpack.c.bf16 %v4701_v17, %v4699_v19  ;;  %v4743_v19 = vld [vmem:[%s8005_s3 + $0x2a0] sm:$0xff] }
 0x3f3   :  { %v2435_v25 = vpop.f32.mrb[32].mxu1  ;;  %5253 = vmatpush1.bf16.msra.mxu1 %v5252_v54  ;;  %2661 = vmatprep.mubr.f32.mxu1 %v5808_v3 }
 0x3f4   :  { %v7048_v8 = vmax.f32 %v2278_v22, %v2435_v25  ;;  %v2437_v32 = vpop.f32.mrb[33].mxu1  ;;  %5255 = vmatprep.subr.bf16.mxu1 %v5254_v58  ;;  %v4696_v25 = vld [vmem:[%s8005_s3 + $0x188] sm:$0xff] }
 0x3f6   :  { %4670 = vmatmul.mubr.msk.f32.gmra.mrb[58].mxu1 %vm2553_vm3, %v7048_v8 }
 0x3f7   :  { %v2440_v51 = vpop.f32.mrb[34].mxu1  ;;  %2667 = vmatprep.mubr.f32.mxu1 %v5808_v3  ;;  %5257 = vmatpush1.bf16.msra.mxu1 %v5256_v30  ;;  %v4698_v30 = vld [vmem:[%s8005_s3 + $0x198] sm:$0xff] }
 0x3f8   :  { %v7065_v55 = vmax.f32 %v2283_v27, %v2440_v51  ;;  %v2442_v14 = vpop.f32.mrb[35].mxu1  ;;  %5259 = vmatprep.subr.bf16.mxu1 %v5258_v38  ;;  %v5274_v40 = vpack.c.bf16 %v4698_v30, %v4696_v25  ;;  %v4700_v51 = vld [vmem:[%s8005_s3 + $0x1a8] sm:$0xff] }
 0x3f9   :  { %v5276_v14 = vpack.c.bf16 %v4697_v45, %v4695_v41  ;;  %v4737_v45 = vld [vmem:[%s8005_s3 + $0x270] sm:$0xff] }
 0x3fa   :  { %4671 = vmatmul.mubr.msk.f32.gmra.mrb[60].mxu1 %vm2553_vm3, %v7065_v55 }
 0x3fb   :  { %v2445_v22 = vpop.f32.mrb[36].mxu1  ;;  %2673 = vmatprep.mubr.f32.mxu1 %v5808_v3  ;;  %5261 = vmatpush1.bf16.msra.mxu1 %v5260_v53  ;;  %v4702_v53 = vld [vmem:[%s8005_s3 + $0x1b8] sm:$0xff] }
 0x3fc   :  { %v7083_v27 = vmax.f32 %v6995_v59, %v2445_v22  ;;  %v2447_v57 = vpop.f32.mrb[37].mxu1  ;;  %5263 = vmatprep.subr.bf16.mxu1 %v5262_v15  ;;  %v5268_v59 = vpack.c.bf16 %v2526_v0, %v2524_v62  ;;  %v5278_v18 = vpack.c.bf16 %v4702_v53, %v4700_v51  ;;  %v4708_v62 = vld [vmem:[%s8005_s3 + $0x1e8] sm:$0xff]  ;;  %v4710_v0 = vld [vmem:[%s8005_s3 + $0x1f8] sm:$0xff]  ;;  %v4739_v51 = vld [vmem:[%s8005_s3 + $0x280] sm:$0xff] }
 0x3fd   :  { %v4742_v53 = vld [vmem:[%s8005_s3 + $0x298] sm:$0xff] }
 0x3fe   :  { %4672 = vmatmul.mubr.msk.f32.gmra.mrb[62].mxu1 %vm2553_vm3, %v7083_v27 }
 0x3ff   :  { %v2450_v2 = vpop.f32.mrb[38].mxu1  ;;  %2679 = vmatprep.mubr.f32.mxu1 %v5808_v3  ;;  %5265 = vmatpush1.bf16.msra.mxu1 %v5264_v24 }
 0x400   :  { %v7095_v7 = vmax.f32 %v6997_v61, %v2450_v2  ;;  %v2452_v33 = vpop.f32.mrb[39].mxu1  ;;  %5267 = vmatprep.subr.bf16.mxu1 %v5266_v60  ;;  %v4703_v60 = vld [vmem:[%s8005_s3 + $0x1c0] sm:$0xff] }
 0x401   :  { %v4707_v33 = vld [vmem:[%s8005_s3 + $0x1e0] sm:$0xff] }
 0x402   :  { %4673 = vmatmul.mubr.msk.f32.gmra.mrb[64].mxu1 %vm2553_vm3, %v7095_v7 }
 0x403   :  { %v2455_v23 = vpop.f32.mrb[40].mxu1  ;;  %2685 = vmatprep.mubr.f32.mxu1 %v5808_v3  ;;  %5269 = vmatpush1.bf16.msra.mxu1 %v5268_v59  ;;  %v5286_v59 = vpack.c.bf16 %v4710_v0, %v4708_v62  ;;  %v4764_v62 = vld [vmem:[%s8005_s3 + $0x2e8] sm:$0xff]  ;;  %v4766_v0 = vld [vmem:[%s8005_s3 + $0x2f8] sm:$0xff] }
 0x404   :  { %v7110_v61 = vmax.f32 %v6999_v63, %v2455_v23  ;;  %v2457_v42 = vpop.f32.mrb[41].mxu1  ;;  %4679 = vmatprep.subr.msk.mxu1 %vm2584_vm2, %v2529_v35  ;;  %v4709_v35 = vld [vmem:[%s8005_s3 + $0x1f0] sm:$0xff]  ;;  %v4726_v23 = vld [vmem:[%s8005_s3 + $0x218] sm:$0xff] }
 0x405   :  { %v5288_v37 = vpack.c.bf16 %v4709_v35, %v4707_v33  ;;  %v4728_v42 = vld [vmem:[%s8005_s3 + $0x228] sm:$0xff]  ;;  %v4763_v33 = vld [vmem:[%s8005_s3 + $0x2e0] sm:$0xff]  ;;  %v4765_v35 = vld [vmem:[%s8005_s3 + $0x2f0] sm:$0xff] }
 0x406   :  { %4674 = vmatmul.mubr.msk.f32.gmra.mrb[66].mxu1 %vm2553_vm3, %v7110_v61 }
 0x407   :  { %v2460_v29 = vpop.f32.mrb[42].mxu1  ;;  %2691 = vmatprep.mubr.f32.mxu1 %v5808_v3  ;;  %4680 = vmatpush1.msk.msra.mxu1 %vm2584_vm2, %v2528_v48  ;;  %v4711_v48 = vld [vmem:[%s8005_s3 + $0x200] sm:$0xf] }
 0x408   :  { %v7121_v11 = vmax.f32 %v7001_v1, %v2460_v29  ;;  %v2462_v63 = vpop.f32.mrb[43].mxu1  ;;  %5271 = vmatprep.subr.bf16.mxu1 %v5270_v26  ;;  %v5290_v26 = vpack.c.bf16 %v4728_v42, %v4726_v23  ;;  %v4725_v29 = vld [vmem:[%s8005_s3 + $0x210] sm:$0xff]  ;;  %v5316_v23 = vpack.c.bf16 %v4765_v35, %v4763_v33 }
 0x409   :  { %v4727_v63 = vld [vmem:[%s8005_s3 + $0x220] sm:$0xff] }
 0x40a   :  { %4675 = vmatmul.mubr.msk.f32.gmra.mrb[68].mxu1 %vm2553_vm3, %v7121_v11 }
 0x40b   :  { %v2465_v31 = vpop.f32.mrb[44].mxu1  ;;  %2697 = vmatprep.mubr.f32.mxu1 %v5808_v3 }
 0x40c   :  { %v7127_v54 = vmax.f32 %v7003_v5, %v2465_v31  ;;  %v2467_v56 = vpop.f32.mrb[45].mxu1  ;;  %v4730_v31 = vld [vmem:[%s8005_s3 + $0x238] sm:$0xff] }
 0x40d   :  { %v4732_v56 = vld [vmem:[%s8005_s3 + $0x248] sm:$0xff] }
 0x40e   :  { %4676 = vmatmul.mubr.msk.f32.gmra.mrb[70].mxu1 %vm2553_vm3, %v7127_v54 }
 0x40f   :  { %v2470_v58 = vpop.f32.mrb[46].mxu1  ;;  %2703 = vmatprep.mubr.f32.mxu1 %v5808_v3 }
 0x410   :  { %v7133_v1 = vmax.f32 %v7005_v10, %v2470_v58  ;;  %v2472_v9 = vpop.f32.mrb[47].mxu1  ;;  %v4693_v10 = vld [vmem:[%s8005_s3 + $0x170] sm:$0xff]  ;;  %v5292_v58 = vpack.c.bf16 %v4727_v63, %v4725_v29  ;;  %v4772_v29 = vld [vmem:[%s8005_s3 + $0x328] sm:$0xff] }
 0x411   :  { %v5272_v32 = vpack.c.bf16 %v4693_v10, %v4691_v52  ;;  %v5294_v9 = vpack.c.bf16 %v4732_v56, %v4730_v31  ;;  %v4734_v52 = vld [vmem:[%s8005_s3 + $0x258] sm:$0xff]  ;;  %v4736_v10 = vld [vmem:[%s8005_s3 + $0x268] sm:$0xff]  ;;  %v4771_v56 = vld [vmem:[%s8005_s3 + $0x320] sm:$0xff] }
 0x412   :  { %4677 = vmatmul.mubr.msk.f32.gmra.mrb[72].mxu1 %vm2553_vm3, %v7133_v1  ;;  %v5298_v30 = vpack.c.bf16 %v4736_v10, %v4734_v52  ;;  %v4775_v10 = vld [vmem:[%s8005_s3 + $0x340] sm:$0xff] }
 0x413   :  { %v2475_v12 = vpop.f32.mrb[48].mxu1  ;;  %2709 = vmatprep.mubr.f32.mxu1 %v5808_v3 }
 0x414   :  { %v7139_v5 = vmax.f32 %v7007_v34, %v2475_v12  ;;  %v2477_v50 = vpop.f32.mrb[49].mxu1  ;;  %v4729_v12 = vld [vmem:[%s8005_s3 + $0x230] sm:$0xff] }
 0x415   :  { %v4731_v50 = vld [vmem:[%s8005_s3 + $0x240] sm:$0xff] }
 0x416   :  { %4678 = vmatmul.mubr.msk.f32.gmra.mrb[74].mxu1 %vm2553_vm3, %v7139_v5  ;;  %v5296_v25 = vpack.c.bf16 %v4731_v50, %v4729_v12  ;;  %v4778_v12 = vld [vmem:[%s8005_s3 + $0x358] sm:$0xff] }
 0x417   :  { %v2480_v34 = vpop.f32.mrb[50].mxu1  ;;  %2789 = vmatprep.mubr.f32.mxu1 %v5808_v3 }
 0x418   :  { %v7157_v38 = vmax.f32 %v7009_v36, %v2480_v34  ;;  %v2482_v39 = vpop.f32.mrb[51].mxu1  ;;  %v4733_v34 = vld [vmem:[%s8005_s3 + $0x250] sm:$0xff] }
 0x419   :  { %v4738_v39 = vld [vmem:[%s8005_s3 + $0x278] sm:$0xff] }
 0x41a   :  { %4681 = vmatmul.mubr.msk.f32.vlgmr.msra.gmra.mrb[56].mxu1 %vm2553_vm3, %v2494_v6 }
 0x41b   :  { %v2485_v36 = vpop.f32.mrb[52].mxu1  ;;  %5273 = vmatpush1.bf16.msra.mxu1 %v5272_v32  ;;  %2795 = vmatprep.mubr.f32.mxu1 %v5808_v3  ;;  %v4735_v32 = vld [vmem:[%s8005_s3 + $0x260] sm:$0xff] }
 0x41c   :  { %v7177_v15 = vmax.f32 %v7011_v47, %v2485_v36  ;;  %v2487_v16 = vpop.f32.mrb[53].mxu1  ;;  %5275 = vmatprep.subr.bf16.mxu1 %v5274_v40  ;;  %v4706_v47 = vld [vmem:[%s8005_s3 + $0x1d8] sm:$0xff]  ;;  %v5300_v40 = vpack.c.bf16 %v4735_v32, %v4733_v34  ;;  %v4744_v36 = vld [vmem:[%s8005_s3 + $0x2a8] sm:$0xff]  ;;  %v4779_v32 = vld [vmem:[%s8005_s3 + $0x360] sm:$0xf] }
 0x41d   :  { %v5282_v57 = vpack.c.bf16 %v4706_v47, %v4704_v4  ;;  %v5306_v16 = vpack.c.bf16 %v4744_v36, %v4742_v53  ;;  %v4746_v4 = vld [vmem:[%s8005_s3 + $0x2b8] sm:$0xf]  ;;  %v4760_v47 = vld [vmem:[%s8005_s3 + $0x2c8] sm:$0xff]  ;;  %v3447_v53 = vld [vmem:[%s8006_s6 + $0x20] sm:$0xff] }
 0x41e   :  { %4682 = vmatmul.mubr.msk.f32.gmra.mrb[58].mxu1 %vm2553_vm3, %v7031_v13  ;;  %v4705_v13 = vld [vmem:[%s8005_s3 + $0x1d0] sm:$0xff]  ;;  %v4780_v34 = vld [vmem:[%s8005_s3 + $0x368] sm:$0xf] }
 0x41f   :  { %v7193_v6 = vpop.f32.mrb[54].mxu1  ;;  %2801 = vmatprep.mubr.f32.mxu1 %v5808_v3  ;;  %5277 = vmatpush1.bf16.msra.mxu1 %v5276_v14  ;;  %v5284_v2 = vpack.c.bf16 %v4705_v13, %v4703_v60  ;;  %v5304_v14 = vpack.c.bf16 %v4739_v51, %v4737_v45  ;;  %v4759_v60 = vld [vmem:[%s8005_s3 + $0x2c0] sm:$0xff]  ;;  %v4761_v13 = vld [vmem:[%s8005_s3 + $0x2d0] sm:$0xff]  ;;  %v3446_v45 = vld [vmem:[%s8006_s6 + $0x18] sm:$0xff] }
 0x420   :  { %v2507_v22 = vmax.f32 %v7013_v21, %v7193_v6  ;;  %v2492_v24 = vpop.f32.mrb[55].mxu1  ;;  %5279 = vmatprep.subr.bf16.mxu1 %v5278_v18  ;;  %v4741_v18 = vld [vmem:[%s8005_s3 + $0x290] sm:$0xff]  ;;  %v3448_v36 = vld [vmem:[%s8006_s6 + $0x28] sm:$0xff] }
 0x421   :  { %v5308_v17 = vpack.c.bf16 %v4743_v19, %v4741_v18  ;;  %v4745_v24 = vld [vmem:[%s8005_s3 + $0x2b0] sm:$0xf]  ;;  %v3451_v18 = vld [vmem:[%s8006_s6 + $0x40] sm:$0xff]  ;;  %v3452_v19 = vld [vmem:[%s8006_s6 + $0x48] sm:$0xff] }
 0x422   :  { %4683 = vmatmul.mubr.msk.f32.gmra.mrb[60].mxu1 %vm2553_vm3, %v7048_v8  ;;  %v3460_v21 = vld [vmem:[%s8006_s6 + $0x88] sm:$0xff] }
 0x423   :  { %2807 = vmatprep.mubr.f32.mxu1 %v5808_v3  ;;  %5281 = vmatpush1.bf16.msra.mxu1 %v5280_v20  ;;  %v4762_v20 = vld [vmem:[%s8005_s3 + $0x2d8] sm:$0xff] }
 0x424   :  { %5283 = vmatprep.subr.bf16.mxu1 %v5282_v57  ;;  %v5310_v57 = vpack.c.bf16 %v4762_v20, %v4760_v47  ;;  %v3455_v47 = vld [vmem:[%s8006_s6 + $0x60] sm:$0xff]  ;;  %v3456_v20 = vld [vmem:[%s8006_s6 + $0x68] sm:$0xff] }
 0x426   :  { %4684 = vmatmul.mubr.msk.f32.gmra.mrb[62].mxu1 %vm2553_vm3, %v7065_v55 }
 0x427   :  { %2813 = vmatprep.mubr.f32.mxu1 %v5808_v3  ;;  %5285 = vmatpush1.bf16.msra.mxu1 %v5284_v2  ;;  %v5312_v2 = vpack.c.bf16 %v4761_v13, %v4759_v60  ;;  %v3381_v60 = vld [vmem:[%s8007_s4] sm:$0x3] }
 0x428   :  { %5287 = vmatprep.subr.bf16.mxu1 %v5286_v59  ;;  %v5314_v59 = vpack.c.bf16 %v4766_v0, %v4764_v62  ;;  %v7551_v13 = vrot.slane %v3381_v60, %v1990_v44  ;;  %v7555_v0 = vrot.slane %v3381_v60, %v1994_v46  ;;  %v4798_v44 = vld [vmem:[%s8006_s6 + $0xa0] sm:$0xff] }
 0x42a   :  { %4685 = vmatmul.mubr.msk.f32.gmra.mrb[64].mxu1 %vm2553_vm3, %v7083_v27 }
 0x42b   :  { %2819 = vmatprep.mubr.f32.mxu1 %v5808_v3  ;;  %5289 = vmatpush1.bf16.msra.mxu1 %v5288_v37  ;;  %v4768_v37 = vld [vmem:[%s8005_s3 + $0x308] sm:$0xff] }
 0x42c   :  { %4713 = vmatprep.subr.msk.mxu1 %vm2584_vm2, %v4712_v49  ;;  %v4770_v49 = vld [vmem:[%s8005_s3 + $0x318] sm:$0xff] }
 0x42d   :  { %v5318_v42 = vpack.c.bf16 %v4770_v49, %v4768_v37 }
 0x42e   :  { %4686 = vmatmul.mubr.msk.f32.gmra.mrb[66].mxu1 %vm2553_vm3, %v7095_v7 }
 0x42f   :  { %2825 = vmatprep.mubr.f32.mxu1 %v5808_v3  ;;  %4714 = vmatpush1.msk.msra.mxu1 %vm2584_vm2, %v4711_v48  ;;  %v4767_v48 = vld [vmem:[%s8005_s3 + $0x300] sm:$0xff] }
 0x430   :  { %5291 = vmatprep.subr.bf16.mxu1 %v5290_v26  ;;  %v4769_v26 = vld [vmem:[%s8005_s3 + $0x310] sm:$0xff] }
 0x431   :  { %v5320_v63 = vpack.c.bf16 %v4769_v26, %v4767_v48 }
 0x432   :  { %4687 = vmatmul.mubr.msk.f32.gmra.mrb[68].mxu1 %vm2553_vm3, %v7110_v61 }
 0x433   :  { %2831 = vmatprep.mubr.f32.mxu1 %v5808_v3 }
 0x436   :  { %4688 = vmatmul.mubr.msk.f32.gmra.mrb[70].mxu1 %vm2553_vm3, %v7121_v11 }
 0x437   :  { %2837 = vmatprep.mubr.f32.mxu1 %v5808_v3 }
 0x43a   :  { %4689 = vmatmul.mubr.msk.f32.gmra.mrb[72].mxu1 %vm2553_vm3, %v7127_v54 }
 0x43b   :  { %2843 = vmatprep.mubr.f32.mxu1 %v5808_v3 }
 0x43e   :  { %4690 = vmatmul.mubr.msk.f32.gmra.mrb[74].mxu1 %vm2553_vm3, %v7133_v1 }
 0x43f   :  { %2946 = vmatprep.mubr.f32.mxu1 %v5808_v3 }
 0x442   :  { %4715 = vmatmul.mubr.msk.f32.vlgmr.msra.gmra.mrb[56].mxu1 %vm2553_vm3, %v7048_v8  ;;  %v4740_v8 = vld [vmem:[%s8005_s3 + $0x288] sm:$0xff] }
 0x443   :  { %5293 = vmatpush1.bf16.msra.mxu1 %v5292_v58  ;;  %2952 = vmatprep.mubr.f32.mxu1 %v5808_v3  ;;  %v5302_v41 = vpack.c.bf16 %v4740_v8, %v4738_v39  ;;  %v4773_v58 = vld [vmem:[%s8005_s3 + $0x330] sm:$0xff]  ;;  %v3443_v39 = vld [vmem:[%s8006_s6] sm:$0xff]  ;;  %v3444_v8 = vld [vmem:[%s8006_s6 + $0x8] sm:$0xff] }
 0x444   :  { %5295 = vmatprep.subr.bf16.mxu1 %v5294_v9  ;;  %v4776_v9 = vld [vmem:[%s8005_s3 + $0x348] sm:$0xff]  ;;  %v5324_v50 = vpack.c.bf16 %v4773_v58, %v4771_v56  ;;  %v5361_v56 = vpack.c.bf16 %v4799_v43, %v4798_v44  ;;  %v4810_v44 = vld [vmem:[%s8006_s6 + $0x100] sm:$0xff] }
 0x445   :  { %v5326_v52 = vpack.c.bf16 %v4778_v12, %v4776_v9  ;;  %v4800_v9 = vld [vmem:[%s8006_s6 + $0xb0] sm:$0xff]  ;;  %v4801_v12 = vld [vmem:[%s8006_s6 + $0xb8] sm:$0xff]  ;;  %v4811_v43 = vld [vmem:[%s8006_s6 + $0x108] sm:$0xff] }
 0x446   :  { %4716 = vmatmul.mubr.msk.f32.gmra.mrb[58].mxu1 %vm2553_vm3, %v7065_v55 }
 0x447   :  { %2958 = vmatprep.mubr.f32.mxu1 %v5808_v3  ;;  %5297 = vmatpush1.bf16.msra.mxu1 %v5296_v25  ;;  %v4777_v25 = vld [vmem:[%s8005_s3 + $0x350] sm:$0xff] }
 0x448   :  { %5299 = vmatprep.subr.bf16.mxu1 %v5298_v30  ;;  %v5328_v30 = vpack.c.bf16 %v4777_v25, %v4775_v10 }
 0x44a   :  { %4717 = vmatmul.mubr.msk.f32.gmra.mrb[60].mxu1 %vm2553_vm3, %v7083_v27 }
 0x44b   :  { %2964 = vmatprep.mubr.f32.mxu1 %v5808_v3  ;;  %5301 = vmatpush1.bf16.msra.mxu1 %v5300_v40  ;;  %v5331_v40 = vpack.c.bf16 %v3444_v8, %v3443_v39  ;;  %v4802_v8 = vld [vmem:[%s8006_s6 + $0xc0] sm:$0xff] }
 0x44c   :  { %5303 = vmatprep.subr.bf16.mxu1 %v5302_v41  ;;  %v3445_v41 = vld [vmem:[%s8006_s6 + $0x10] sm:$0xff] }
 0x44d   :  { %v5334_v51 = vpack.c.bf16 %v3446_v45, %v3445_v41 }
 0x44e   :  { %4718 = vmatmul.mubr.msk.f32.gmra.mrb[62].mxu1 %vm2553_vm3, %v7095_v7 }
 0x44f   :  { %2970 = vmatprep.mubr.f32.mxu1 %v5808_v3  ;;  %5305 = vmatpush1.bf16.msra.mxu1 %v5304_v14  ;;  %v3449_v14 = vld [vmem:[%s8006_s6 + $0x30] sm:$0xff] }
 0x450   :  { %5307 = vmatprep.subr.bf16.mxu1 %v5306_v16  ;;  %v3450_v16 = vld [vmem:[%s8006_s6 + $0x38] sm:$0xff] }
 0x452   :  { %4719 = vmatmul.mubr.msk.f32.gmra.mrb[64].mxu1 %vm2553_vm3, %v7110_v61 }
 0x453   :  { %2976 = vmatprep.mubr.f32.mxu1 %v5808_v3  ;;  %5309 = vmatpush1.bf16.msra.mxu1 %v5308_v17  ;;  %v3453_v17 = vld [vmem:[%s8006_s6 + $0x50] sm:$0xff] }
 0x454   :  { %4747 = vmatprep.subr.msk.mxu1 %vm2584_vm2, %v4746_v4  ;;  %v3454_v4 = vld [vmem:[%s8006_s6 + $0x58] sm:$0xff] }
 0x456   :  { %4720 = vmatmul.mubr.msk.f32.gmra.mrb[66].mxu1 %vm2553_vm3, %v7121_v11 }
 0x457   :  { %2982 = vmatprep.mubr.f32.mxu1 %v5808_v3  ;;  %4748 = vmatpush1.msk.msra.mxu1 %vm2584_vm2, %v4745_v24  ;;  %v3462_v24 = vld [vmem:[%s8006_s6 + $0x98] sm:$0xff] }
 0x458   :  { %5311 = vmatprep.subr.bf16.mxu1 %v5310_v57 }
 0x45a   :  { %4721 = vmatmul.mubr.msk.f32.gmra.mrb[68].mxu1 %vm2553_vm3, %v7127_v54 }
 0x45b   :  { %2988 = vmatprep.mubr.f32.mxu1 %v5808_v3 }
 0x45e   :  { %4722 = vmatmul.mubr.msk.f32.gmra.mrb[70].mxu1 %vm2553_vm3, %v7133_v1 }
 0x45f   :  { %2994 = vmatprep.mubr.f32.mxu1 %v5808_v3 }
 0x462   :  { %4723 = vmatmul.mubr.msk.f32.gmra.mrb[72].mxu1 %vm2553_vm3, %v7139_v5 }
 0x463   :  { %3000 = vmatprep.mubr.f32.mxu1 %v5808_v3 }
 0x466   :  { %4724 = vmatmul.mubr.msk.f32.gmra.mrb[74].mxu1 %vm2553_vm3, %v7157_v38 }
 0x467   :  { %3123 = vmatprep.mubr.f32.mxu1 %v5808_v3 }
 0x46a   :  { %4749 = vmatmul.mubr.msk.f32.vlgmr.msra.gmra.mrb[56].mxu1 %vm2553_vm3, %v7065_v55  ;;  %v4774_v55 = vld [vmem:[%s8005_s3 + $0x338] sm:$0xff] }
 0x46b   :  { %5313 = vmatpush1.bf16.msra.mxu1 %v5312_v2  ;;  %3129 = vmatprep.mubr.f32.mxu1 %v5808_v3  ;;  %v5322_v31 = vpack.c.bf16 %v4774_v55, %v4772_v29 }
 0x46c   :  { %5315 = vmatprep.subr.bf16.mxu1 %v5314_v59 }
 0x46e   :  { %4750 = vmatmul.mubr.msk.f32.gmra.mrb[58].mxu1 %vm2553_vm3, %v7083_v27 }
 0x46f   :  { %3135 = vmatprep.mubr.f32.mxu1 %v5808_v3  ;;  %5317 = vmatpush1.bf16.msra.mxu1 %v5316_v23 }
 0x470   :  { %5319 = vmatprep.subr.bf16.mxu1 %v5318_v42 }
 0x472   :  { %4751 = vmatmul.mubr.msk.f32.gmra.mrb[60].mxu1 %vm2553_vm3, %v7095_v7 }
 0x473   :  { %3141 = vmatprep.mubr.f32.mxu1 %v5808_v3  ;;  %5321 = vmatpush1.bf16.msra.mxu1 %v5320_v63 }
 0x474   :  { %5323 = vmatprep.subr.bf16.mxu1 %v5322_v31 }
 0x476   :  { %4752 = vmatmul.mubr.msk.f32.gmra.mrb[62].mxu1 %vm2553_vm3, %v7110_v61 }
 0x477   :  { %3147 = vmatprep.mubr.f32.mxu1 %v5808_v3  ;;  %5325 = vmatpush1.bf16.msra.mxu1 %v5324_v50 }
 0x478   :  { %5327 = vmatprep.subr.bf16.mxu1 %v5326_v52 }
 0x47a   :  { %4753 = vmatmul.mubr.msk.f32.gmra.mrb[64].mxu1 %vm2553_vm3, %v7121_v11 }
 0x47b   :  { %3153 = vmatprep.mubr.f32.mxu1 %v5808_v3  ;;  %5329 = vmatpush1.bf16.msra.mxu1 %v5328_v30 }
 0x47c   :  { %4781 = vmatprep.subr.msk.mxu1 %vm2584_vm2, %v4780_v34  ;;  %v5364_v34 = vpack.c.bf16 %v4801_v12, %v4800_v9  ;;  %v5379_v9 = vpack.c.bf16 %v4811_v43, %v4810_v44 }
 0x47e   :  { %4754 = vmatmul.mubr.msk.f32.gmra.mrb[66].mxu1 %vm2553_vm3, %v7127_v54 }
 0x47f   :  { %3159 = vmatprep.mubr.f32.mxu1 %v5808_v3  ;;  %4782 = vmatpush1.msk.msra.mxu1 %vm2584_vm2, %v4779_v32 }
 0x480   :  { %5330 = vmatprep.subr.bf16.mxu1 %v5809_v28 }
 0x482   :  { %4755 = vmatmul.mubr.msk.f32.gmra.mrb[68].mxu1 %vm2553_vm3, %v7133_v1 }
 0x483   :  { %3165 = vmatprep.mubr.f32.mxu1 %v5808_v3 }
 0x486   :  { %4756 = vmatmul.mubr.msk.f32.gmra.mrb[70].mxu1 %vm2553_vm3, %v7139_v5 }
 0x487   :  { %3171 = vmatprep.mubr.f32.mxu1 %v5808_v3 }
 0x48a   :  { %4757 = vmatmul.mubr.msk.f32.gmra.mrb[72].mxu1 %vm2553_vm3, %v7157_v38 }
 0x48b   :  { %3177 = vmatprep.mubr.f32.mxu1 %v5808_v3 }
 0x48e   :  { %4758 = vmatmul.mubr.msk.f32.gmra.mrb[74].mxu1 %vm2553_vm3, %v7177_v15 }
 0x48f   :  { %3300 = vmatprep.mubr.f32.mxu1 %v5808_v3 }
 0x492   :  { %4783 = vmatmul.mubr.msk.f32.vlgmr.msra.gmra.mrb[56].mxu1 %vm2553_vm3, %v7083_v27  ;;  %v5337_v27 = vpack.c.bf16 %v3448_v36, %v3447_v53 }
 0x493   :  { %3306 = vmatprep.mubr.f32.mxu1 %v5808_v3  ;;  %5332 = vmatpush1.bf16.msra.mxu1 %v5331_v40  ;;  %v4803_v40 = vld [vmem:[%s8006_s6 + $0xc8] sm:$0xff] }
 0x494   :  { %5333 = vmatprep.subr.bf16.mxu1 %v5809_v28 }
 0x496   :  { %4784 = vmatmul.mubr.msk.f32.gmra.mrb[58].mxu1 %vm2553_vm3, %v7095_v7  ;;  %v5340_v7 = vpack.c.bf16 %v3450_v16, %v3449_v14  ;;  %v5367_v14 = vpack.c.bf16 %v4803_v40, %v4802_v8 }
 0x497   :  { %3312 = vmatprep.mubr.f32.mxu1 %v5808_v3  ;;  %5335 = vmatpush1.bf16.msra.mxu1 %v5334_v51 }
 0x498   :  { %5336 = vmatprep.subr.bf16.mxu1 %v5809_v28 }
 0x49a   :  { %4785 = vmatmul.mubr.msk.f32.gmra.mrb[60].mxu1 %vm2553_vm3, %v7110_v61  ;;  %v5343_v61 = vpack.c.bf16 %v3452_v19, %v3451_v18  ;;  %v4805_v18 = vld [vmem:[%s8006_s6 + $0xd8] sm:$0xff] }
 0x49b   :  { %3318 = vmatprep.mubr.f32.mxu1 %v5808_v3  ;;  %5338 = vmatpush1.bf16.msra.mxu1 %v5337_v27 }
 0x49c   :  { %5339 = vmatprep.subr.bf16.mxu1 %v5809_v28 }
 0x49e   :  { %4786 = vmatmul.mubr.msk.f32.gmra.mrb[62].mxu1 %vm2553_vm3, %v7121_v11  ;;  %v5346_v11 = vpack.c.bf16 %v3454_v4, %v3453_v17 }
 0x49f   :  { %3324 = vmatprep.mubr.f32.mxu1 %v5808_v3  ;;  %5341 = vmatpush1.bf16.msra.mxu1 %v5340_v7  ;;  %v4804_v7 = vld [vmem:[%s8006_s6 + $0xd0] sm:$0xff] }
 0x4a0   :  { %5342 = vmatprep.subr.bf16.mxu1 %v5809_v28 }
 0x4a2   :  { %4787 = vmatmul.mubr.msk.f32.gmra.mrb[64].mxu1 %vm2553_vm3, %v7127_v54  ;;  %v5349_v54 = vpack.c.bf16 %v3456_v20, %v3455_v47  ;;  %v5370_v47 = vpack.c.bf16 %v4805_v18, %v4804_v7  ;;  %v4817_v7 = vld [vmem:[%s8006_s6 + $0x138] sm:$0xff] }
 0x4a3   :  { %3330 = vmatprep.mubr.f32.mxu1 %v5808_v3  ;;  %5344 = vmatpush1.bf16.msra.mxu1 %v5343_v61 }
 0x4a4   :  { %5345 = vmatprep.subr.bf16.mxu1 %v5809_v28 }
 0x4a6   :  { %4788 = vmatmul.mubr.msk.f32.gmra.mrb[66].mxu1 %vm2553_vm3, %v7133_v1  ;;  %v3457_v1 = vld [vmem:[%s8006_s6 + $0x70] sm:$0xff] }
 0x4a7   :  { %3336 = vmatprep.mubr.f32.mxu1 %v5808_v3  ;;  %5347 = vmatpush1.bf16.msra.mxu1 %v5346_v11 }
 0x4a8   :  { %5348 = vmatprep.subr.bf16.mxu1 %v5809_v28 }
 0x4aa   :  { %4789 = vmatmul.mubr.msk.f32.gmra.mrb[68].mxu1 %vm2553_vm3, %v7139_v5  ;;  %v3458_v5 = vld [vmem:[%s8006_s6 + $0x78] sm:$0xff] }
 0x4ab   :  { %3342 = vmatprep.mubr.f32.mxu1 %v5808_v3  ;;  %5350 = vmatpush1.bf16.msra.mxu1 %v5349_v54 }
 0x4ac   :  { %5351 = vmatprep.subr.bf16.mxu1 %v5809_v28 }
 0x4ae   :  { %4790 = vmatmul.mubr.msk.f32.gmra.mrb[70].mxu1 %vm2553_vm3, %v7157_v38  ;;  %v5352_v38 = vpack.c.bf16 %v3458_v5, %v3457_v1  ;;  %v4806_v1 = vld [vmem:[%s8006_s6 + $0xe0] sm:$0xff]  ;;  %v4807_v5 = vld [vmem:[%s8006_s6 + $0xe8] sm:$0xff] }
 0x4af   :  { %3348 = vmatprep.mubr.f32.mxu1 %v5808_v3 }
 0x4b0   :  { %5353 = vmatpush1.bf16.msra.mxu1 %v5352_v38 }
 0x4b1   :  { %5354 = vmatprep.subr.bf16.mxu1 %v5809_v28 }
 0x4b2   :  { %4791 = vmatmul.mubr.msk.f32.gmra.mrb[72].mxu1 %vm2553_vm3, %v7177_v15  ;;  %v3459_v15 = vld [vmem:[%s8006_s6 + $0x80] sm:$0xff] }
 0x4b3   :  { %3354 = vmatprep.mubr.f32.mxu1 %v5808_v3  ;;  %v5355_v6 = vpack.c.bf16 %v3460_v21, %v3459_v15 }
 0x4b5   :  { %5356 = vmatpush1.bf16.msra.mxu1 %v5355_v6 }
 0x4b6   :  { %4792 = vmatmul.mubr.msk.f32.gmra.mrb[74].mxu1 %vm2553_vm3, %v2507_v22  ;;  %5357 = vmatprep.subr.bf16.mxu1 %v5809_v28  ;;  %v3461_v22 = vld [vmem:[%s8006_s6 + $0x90] sm:$0xff] }
 0x4b7   :  { %v5358_v57 = vpack.c.bf16 %v3462_v24, %v3461_v22 }
 0x4b9   :  { %5359 = vmatpush1.bf16.msra.mxu1 %v5358_v57  ;;  %v5373_v57 = vpack.c.bf16 %v4807_v5, %v4806_v1  ;;  %v4831_v1 = vld [vmem:[%s8008_s7 + $0x90] sm:$0xff]  ;;  %v4832_v5 = vld [vmem:[%s8008_s7 + $0x98] sm:$0xff] }
 0x4ba   :  { %5360 = vmatprep.subr.bf16.mxu1 %v5809_v28 }
 0x565   :  { %v3302_v62 = vpop.f32.mrb[56].mxu1 }
 0x566   :  { %v3304_v2 = vpop.f32.mrb[57].mxu1  ;;  %v3393_v59 = vadd.f32 %v7551_v13, %v3302_v62  ;;  %v4808_v62 = vld [vmem:[%s8006_s6 + $0xf0] sm:$0xff] }
 0x567   :  { %v3394_v33 = vadd.f32 %v7555_v0, %v3304_v2  ;;  %v4809_v2 = vld [vmem:[%s8006_s6 + $0xf8] sm:$0xff] }
 0x568   :  { %v3413_v42 = vmax.f32 %v3393_v59, 0.0 }
 0x569   :  { %v3308_v35 = vpop.f32.mrb[58].mxu1  ;;  %v3414_v46 = vmax.f32 %v3394_v33, 0.0 }
 0x56a   :  { %v3395_v37 = vadd.f32 %v7551_v13, %v3308_v35  ;;  %v3310_v49 = vpop.f32.mrb[59].mxu1 }
 0x56b   :  { %v3396_v23 = vadd.f32 %v7555_v0, %v3310_v49 }
 0x56c   :  { %v3415_v48 = vmax.f32 %v3395_v37, 0.0 }
 0x56d   :  { %v3416_v26 = vmax.f32 %v3396_v23, 0.0  ;;  %v3314_v29 = vpop.f32.mrb[60].mxu1  ;;  %v5376_v23 = vpack.c.bf16 %v4809_v2, %v4808_v62 }
 0x56e   :  { %v7567_v55 = vmax.f32 %v3413_v42, %v3415_v48  ;;  %v3316_v63 = vpop.f32.mrb[61].mxu1  ;;  %v3397_v58 = vadd.f32 %v7551_v13, %v3314_v29 }
 0x56f   :  { %v7569_v31 = vmax.f32 %v3414_v46, %v3416_v26  ;;  %v3398_v50 = vadd.f32 %v7555_v0, %v3316_v63 }
 0x570   :  { %v3417_v32 = vmax.f32 %v3397_v58, 0.0 }
 0x571   :  { %v3320_v52 = vpop.f32.mrb[62].mxu1  ;;  %4793 = vmatprep.mubr.msk.f32.mxu1 %vm118_vm0, %v7569_v31  ;;  %v3418_v41 = vmax.f32 %v3398_v50, 0.0  ;;  %v4812_v50 = vld [vmem:[%s8006_s6 + $0x110] sm:$0xff] }
 0x572   :  { %v3399_v10 = vadd.f32 %v7551_v13, %v3320_v52  ;;  %v3322_v25 = vpop.f32.mrb[63].mxu1  ;;  %3543 = vmatmul.mubr.f32.vlgmr.msra.gmra.mrb[76].mxu1 %v7567_v55  ;;  %v4813_v52 = vld [vmem:[%s8006_s6 + $0x118] sm:$0xff] }
 0x573   :  { %v3400_v30 = vadd.f32 %v7555_v0, %v3322_v25  ;;  %5362 = vmatpush1.bf16.msra.mxu1 %v5361_v56 }
 0x574   :  { %v3419_v39 = vmax.f32 %v3399_v10, 0.0  ;;  %5363 = vmatprep.subr.bf16.mxu1 %v5809_v28 }
 0x575   :  { %v3420_v45 = vmax.f32 %v3400_v30, 0.0  ;;  %v3326_v51 = vpop.f32.mrb[64].mxu1 }
 0x576   :  { %v7591_v53 = vmax.f32 %v3417_v32, %v3419_v39  ;;  %v3328_v36 = vpop.f32.mrb[65].mxu1  ;;  %v3401_v16 = vadd.f32 %v7551_v13, %v3326_v51  ;;  %v5382_v39 = vpack.c.bf16 %v4813_v52, %v4812_v50 }
 0x577   :  { %v7593_v27 = vmax.f32 %v3418_v41, %v3420_v45  ;;  %5365 = vmatpush1.bf16.msra.mxu1 %v5364_v34  ;;  %v3402_v19 = vadd.f32 %v7555_v0, %v3328_v36  ;;  %v4814_v41 = vld [vmem:[%s8006_s6 + $0x120] sm:$0xff]  ;;  %v4815_v45 = vld [vmem:[%s8006_s6 + $0x128] sm:$0xff] }
 0x578   :  { %5366 = vmatprep.subr.bf16.mxu1 %v5809_v28  ;;  %v3421_v20 = vmax.f32 %v3401_v16, 0.0  ;;  %v4816_v16 = vld [vmem:[%s8006_s6 + $0x130] sm:$0xff] }
 0x579   :  { %v3332_v61 = vpop.f32.mrb[66].mxu1  ;;  %4794 = vmatprep.mubr.msk.f32.mxu1 %vm118_vm0, %v7593_v27  ;;  %v3422_v38 = vmax.f32 %v3402_v19, 0.0  ;;  %v5388_v18 = vpack.c.bf16 %v4817_v7, %v4816_v16  ;;  %v4826_v19 = vld [vmem:[%s8008_s7 + $0x68] sm:$0xff]  ;;  %v4838_v16 = vld [vmem:[%s8008_s7 + $0xb8] sm:$0xff] }
 0x57a   :  { %v3403_v17 = vadd.f32 %v7551_v13, %v3332_v61  ;;  %v3334_v4 = vpop.f32.mrb[67].mxu1  ;;  %3548 = vmatmul.mubr.f32.gmra.mrb[78].mxu1 %v7591_v53 }
 0x57b   :  { %v3404_v11 = vadd.f32 %v7555_v0, %v3334_v4  ;;  %5368 = vmatpush1.bf16.msra.mxu1 %v5367_v14  ;;  %v4828_v4 = vld [vmem:[%s8008_s7 + $0x78] sm:$0xff] }
 0x57c   :  { %v3423_v54 = vmax.f32 %v3403_v17, 0.0  ;;  %5369 = vmatprep.subr.bf16.mxu1 %v5809_v28  ;;  %v4827_v17 = vld [vmem:[%s8008_s7 + $0x70] sm:$0xff] }
 0x57d   :  { %v3424_v15 = vmax.f32 %v3404_v11, 0.0  ;;  %v3338_v21 = vpop.f32.mrb[68].mxu1  ;;  %v5397_v11 = vpack.c.bf16 %v4828_v4, %v4827_v17  ;;  %v4844_v17 = vld [vmem:[%s8008_s7 + $0xe8] sm:$0xff] }
 0x57e   :  { %v7616_v6 = vmax.f32 %v3421_v20, %v3423_v54  ;;  %v3340_v22 = vpop.f32.mrb[69].mxu1  ;;  %v3405_v60 = vadd.f32 %v7551_v13, %v3338_v21  ;;  %v4830_v20 = vld [vmem:[%s8008_s7 + $0x88] sm:$0xff] }
 0x57f   :  { %v7618_v24 = vmax.f32 %v3422_v38, %v3424_v15  ;;  %5371 = vmatpush1.bf16.msra.mxu1 %v5370_v47  ;;  %v3406_v59 = vadd.f32 %v7555_v0, %v3340_v22  ;;  %v4829_v47 = vld [vmem:[%s8008_s7 + $0x80] sm:$0xff]  ;;  %v5403_v38 = vpack.c.bf16 %v4832_v5, %v4831_v1  ;;  %v4849_v1 = vld [vmem:[%s8008_s7 + $0x108] sm:$0xff] }
 0x580   :  { %5372 = vmatprep.subr.bf16.mxu1 %v5809_v28  ;;  %v3425_v42 = vmax.f32 %v3405_v60, 0.0  ;;  %v5400_v54 = vpack.c.bf16 %v4830_v20, %v4829_v47  ;;  %v4847_v47 = vld [vmem:[%s8008_s7 + $0xf8] sm:$0xff] }
 0x581   :  { %v3344_v33 = vpop.f32.mrb[70].mxu1  ;;  %4795 = vmatprep.mubr.msk.f32.mxu1 %vm118_vm0, %v7618_v24  ;;  %v3426_v46 = vmax.f32 %v3406_v59, 0.0 }
 0x582   :  { %v3407_v35 = vadd.f32 %v7551_v13, %v3344_v33  ;;  %v3346_v37 = vpop.f32.mrb[71].mxu1  ;;  %3553 = vmatmul.mubr.f32.gmra.mrb[80].mxu1 %v7616_v6 }
 0x583   :  { %v3408_v49 = vadd.f32 %v7555_v0, %v3346_v37  ;;  %5374 = vmatpush1.bf16.msra.mxu1 %v5373_v57 }
 0x584   :  { %v3427_v48 = vmax.f32 %v3407_v35, 0.0  ;;  %5375 = vmatprep.subr.bf16.mxu1 %v5809_v28 }
 0x585   :  { %v3428_v26 = vmax.f32 %v3408_v49, 0.0  ;;  %v3350_v29 = vpop.f32.mrb[72].mxu1  ;;  %v3684_v49 = vld [vmem:[%s8008_s7] sm:$0xff] }
 0x586   :  { %v3439_v63 = vmax.f32 %v3425_v42, %v3427_v48  ;;  %v3352_v56 = vpop.f32.mrb[73].mxu1  ;;  %v3409_v12 = vadd.f32 %v7551_v13, %v3350_v29 }
 0x587   :  { %v3440_v58 = vmax.f32 %v3426_v46, %v3428_v26  ;;  %5377 = vmatpush1.bf16.msra.mxu1 %v5376_v23  ;;  %v3410_v10 = vadd.f32 %v7555_v0, %v3352_v56  ;;  %v3685_v23 = vld [vmem:[%s8008_s7 + $0x8] sm:$0xff]  ;;  %v3686_v46 = vld [vmem:[%s8008_s7 + $0x10] sm:$0xff]  ;;  %v3687_v26 = vld [vmem:[%s8008_s7 + $0x18] sm:$0xff] }
 0x588   :  { %5378 = vmatprep.subr.bf16.mxu1 %v5809_v28  ;;  %v3429_v8 = vmax.f32 %v3409_v12, 0.0  ;;  %v5406_v48 = vpack.c.bf16 %v3685_v23, %v3684_v49  ;;  %v3689_v12 = vld [vmem:[%s8008_s7 + $0x28] sm:$0xff]  ;;  %v4859_v49 = vld [vmem:[%s8008_s7 + $0x150] sm:$0xff]  ;;  %v4860_v23 = vld [vmem:[%s8008_s7 + $0x158] sm:$0xff] }
 0x589   :  { %v3356_v25 = vpop.f32.mrb[74].mxu1  ;;  %4796 = vmatprep.mubr.msk.f32.mxu1 %vm118_vm0, %v3440_v58  ;;  %v3430_v51 = vmax.f32 %v3410_v10, 0.0 }
 0x58a   :  { %v3411_v30 = vadd.f32 %v7551_v13, %v3356_v25  ;;  %v3358_v34 = vpop.f32.mrb[75].mxu1  ;;  %3558 = vmatmul.mubr.f32.gmra.mrb[82].mxu1 %v3439_v63 }
 0x58b   :  { %v3412_v32 = vadd.f32 %v7555_v0, %v3358_v34  ;;  %5380 = vmatpush1.bf16.msra.mxu1 %v5379_v9  ;;  %v5385_v0 = vpack.c.bf16 %v4815_v45, %v4814_v41  ;;  %v3688_v9 = vld [vmem:[%s8008_s7 + $0x20] sm:$0xff]  ;;  %v3691_v34 = vld [vmem:[%s8008_s7 + $0x38] sm:$0xff]  ;;  %v3693_v45 = vld [vmem:[%s8008_s7 + $0x48] sm:$0xff] }
 0x58c   :  { %v3431_v40 = vmax.f32 %v3411_v30, 0.0  ;;  %5381 = vmatprep.subr.bf16.mxu1 %v5809_v28  ;;  %v5412_v52 = vpack.c.bf16 %v3689_v12, %v3688_v9  ;;  %v3690_v30 = vld [vmem:[%s8008_s7 + $0x30] sm:$0xff]  ;;  %v3692_v41 = vld [vmem:[%s8008_s7 + $0x40] sm:$0xff]  ;;  %v4117_v9 = vld [vmem:[%s8009_s9 + $0x8] sm:$0xff] }
 0x58d   :  { %v3432_v13 = vmax.f32 %v3412_v32, 0.0 }
 0x58e   :  { %v3441_v36 = vmax.f32 %v3429_v8, %v3431_v40 }
 0x58f   :  { %v3442_v14 = vmax.f32 %v3430_v51, %v3432_v13  ;;  %5383 = vmatpush1.bf16.msra.mxu1 %v5382_v39  ;;  %v5415_v39 = vpack.c.bf16 %v3691_v34, %v3690_v30  ;;  %v5418_v51 = vpack.c.bf16 %v3693_v45, %v3692_v41  ;;  %v4835_v13 = vld [vmem:[%s8008_s7 + $0xa0] sm:$0xff]  ;;  %v4122_v34 = vld [vmem:[%s8009_s9 + $0x30] sm:$0xff] }
 0x590   :  { %5384 = vmatprep.subr.bf16.mxu1 %v5809_v28  ;;  %v4126_v45 = vld [vmem:[%s8009_s9 + $0x50] sm:$0xff] }
 0x591   :  { %4797 = vmatprep.mubr.msk.f32.mxu1 %vm118_vm0, %v3442_v14 }
 0x592   :  { %3563 = vmatmul.mubr.f32.gmra.mrb[84].mxu1 %v3441_v36 }
 0x593   :  { %5386 = vmatpush1.bf16.msra.mxu1 %v5385_v0  ;;  %4818 = vmatprep.mubr.msk.f32.mxu1 %vm118_vm0, %v7569_v31  ;;  %v4824_v31 = vld [vmem:[%s8008_s7 + $0x58] sm:$0xff]  ;;  %v4837_v0 = vld [vmem:[%s8008_s7 + $0xb0] sm:$0xff] }
 0x594   :  { %5387 = vmatprep.subr.bf16.mxu1 %v5809_v28  ;;  %v5424_v7 = vpack.c.bf16 %v4838_v16, %v4837_v0  ;;  %v4130_v16 = vld [vmem:[%s8009_s9 + $0x70] sm:$0xff] }
 0x597   :  { %5389 = vmatpush1.bf16.msra.mxu1 %v5388_v18  ;;  %v4839_v18 = vld [vmem:[%s8008_s7 + $0xc0] sm:$0xff] }
 0x598   :  { %5390 = vmatprep.subr.bf16.mxu1 %v5809_v28 }
 0x59a   :  { %3654 = vmatmul.mubr.f32.vlgmr.msra.gmra.mrb[86].mxu1 %v7567_v55  ;;  %v4823_v55 = vld [vmem:[%s8008_s7 + $0x50] sm:$0xff] }
 0x59b   :  { %4819 = vmatprep.mubr.msk.f32.mxu1 %vm118_vm0, %v7593_v27  ;;  %v4825_v27 = vld [vmem:[%s8008_s7 + $0x60] sm:$0xff] }
 0x59c   :  { %v5394_v61 = vpack.c.bf16 %v4826_v19, %v4825_v27  ;;  %v4842_v27 = vld [vmem:[%s8008_s7 + $0xd8] sm:$0xff] }
 0x59e   :  { %3659 = vmatmul.mubr.f32.gmra.mrb[88].mxu1 %v7591_v53  ;;  %v5391_v53 = vpack.c.bf16 %v4824_v31, %v4823_v55  ;;  %v4840_v55 = vld [vmem:[%s8008_s7 + $0xc8] sm:$0xff] }
 0x59f   :  { %4820 = vmatprep.mubr.msk.f32.mxu1 %vm118_vm0, %v7618_v24  ;;  %v5427_v31 = vpack.c.bf16 %v4840_v55, %v4839_v18 }
 0x5a0   :  { %5392 = vmatpush3.bf16.msra.mxu1 %v5391_v53  ;;  %v4841_v53 = vld [vmem:[%s8008_s7 + $0xd0] sm:$0xff] }
 0x5a1   :  { %5393 = vmatprep.subr.bf16.mxu1 %v5809_v28  ;;  %v5430_v19 = vpack.c.bf16 %v4842_v27, %v4841_v53 }
 0x5a2   :  { %3664 = vmatmul.mubr.f32.gmra.mrb[90].mxu1 %v7616_v6 }
 0x5a3   :  { %4821 = vmatprep.mubr.msk.f32.mxu1 %vm118_vm0, %v3440_v58 }
 0x5a4   :  { %5395 = vmatpush3.bf16.msra.mxu1 %v5394_v61  ;;  %v4843_v61 = vld [vmem:[%s8008_s7 + $0xe0] sm:$0xff] }
 0x5a5   :  { %5396 = vmatprep.subr.bf16.mxu1 %v5809_v28  ;;  %v5433_v4 = vpack.c.bf16 %v4844_v17, %v4843_v61 }
 0x5a6   :  { %3669 = vmatmul.mubr.f32.gmra.mrb[92].mxu1 %v3439_v63  ;;  %v5409_v63 = vpack.c.bf16 %v3687_v26, %v3686_v46  ;;  %v4864_v46 = vld [vmem:[%s8008_s7 + $0x178] sm:$0xff] }
 0x5a7   :  { %4822 = vmatprep.mubr.msk.f32.mxu1 %vm118_vm0, %v3442_v14 }
 0x5a8   :  { %5398 = vmatpush3.bf16.msra.mxu1 %v5397_v11  ;;  %v4846_v11 = vld [vmem:[%s8008_s7 + $0xf0] sm:$0xff] }
 0x5a9   :  { %5399 = vmatprep.subr.bf16.mxu1 %v5809_v28  ;;  %v5436_v20 = vpack.c.bf16 %v4847_v47, %v4846_v11 }
 0x5aa   :  { %3674 = vmatmul.mubr.f32.gmra.mrb[94].mxu1 %v3441_v36  ;;  %v4836_v36 = vld [vmem:[%s8008_s7 + $0xa8] sm:$0xff] }
 0x5ab   :  { %4977 = vmatprep.mubr.msk.f32.mxu1 %vm5810_vm4, %v5808_v3  ;;  %v5421_v14 = vpack.c.bf16 %v4836_v36, %v4835_v13  ;;  %v4128_v36 = vld [vmem:[%s8009_s9 + $0x60] sm:$0xff] }
 0x5ac   :  { %5401 = vmatpush3.bf16.msra.mxu1 %v5400_v54  ;;  %v4848_v54 = vld [vmem:[%s8008_s7 + $0x100] sm:$0xff] }
 0x5ad   :  { %5402 = vmatprep.subr.bf16.mxu1 %v5809_v28  ;;  %v5439_v5 = vpack.c.bf16 %v4849_v1, %v4848_v54 }
 0x5b0   :  { %5404 = vmatpush3.bf16.msra.mxu1 %v5403_v38  ;;  %v4850_v38 = vld [vmem:[%s8008_s7 + $0x110] sm:$0xff] }
 0x5b1   :  { %5405 = vmatprep.subr.bf16.mxu1 %v5809_v28 }
 0x645   :  { %v3544_v15 = vpop.f32.mrb[76].mxu1 }
 0x646   :  { %v3546_v21 = vpop.f32.mrb[77].mxu1 }
 0x64d   :  { %v3549_v6 = vpop.f32.mrb[78].mxu1 }
 0x64e   :  { %v3551_v22 = vpop.f32.mrb[79].mxu1 }
 0x64f   :  { %v4853_v22 = vld [vmem:[%s8008_s7 + $0x128] sm:$0xff] }
 0x655   :  { %v7718_v24 = vpop.f32.mrb[80].mxu1 }
 0x656   :  { %v3556_v57 = vpop.f32.mrb[81].mxu1 }
 0x657   :  { %v4854_v57 = vld [vmem:[%s8008_s7 + $0x130] sm:$0xff] }
 0x65d   :  { %v7720_v60 = vpop.f32.mrb[82].mxu1 }
 0x65e   :  { %v3561_v62 = vpop.f32.mrb[83].mxu1 }
 0x65f   :  { %v4855_v62 = vld [vmem:[%s8008_s7 + $0x138] sm:$0xff] }
 0x665   :  { %v7722_v2 = vpop.f32.mrb[84].mxu1 }
 0x666   :  { %v3566_v59 = vpop.f32.mrb[85].mxu1 }
 0x667   :  { %v5448_v59 = vpack.c.bf16 %v4855_v62, %v4854_v57  ;;  %v4217_v62 = vld [vmem:[%s8011_s11 + $0x20] sm:$0xff] }
 0x66d   :  { %v3655_v33 = vpop.f32.mrb[86].mxu1 }
 0x66e   :  { %v3679_v35 = vmax.f32 %v3544_v15, %v3655_v33  ;;  %v3657_v37 = vpop.f32.mrb[87].mxu1  ;;  %v4851_v15 = vld [vmem:[%s8008_s7 + $0x118] sm:$0xff]  ;;  %v4857_v33 = vld [vmem:[%s8008_s7 + $0x140] sm:$0xff] }
 0x66f   :  { %v5442_v21 = vpack.c.bf16 %v4851_v15, %v4850_v38  ;;  %v4214_v38 = vld [vmem:[%s8011_s11 + $0x8] sm:$0xff] }
 0x671   :  { %v3660_v42 = vpop.f32.mrb[88].mxu1 }
 0x672   :  { %v3680_v44 = vmax.f32 %v3549_v6, %v3660_v42  ;;  %v3662_v43 = vpop.f32.mrb[89].mxu1  ;;  %v4852_v6 = vld [vmem:[%s8008_s7 + $0x120] sm:$0xff]  ;;  %v5454_v42 = vpack.c.bf16 %v4860_v23, %v4859_v49 }
 0x673   :  { %v4221_v23 = vld [vmem:[%s8011_s11 + $0x40] sm:$0xff] }
 0x674   :  { %4978 = vmatmul.mubr.msk.f32.vlgmr.msra.gmra.mrb[96].mxu1 %vm3705_vm5, %v3680_v44  ;;  %v4862_v44 = vld [vmem:[%s8008_s7 + $0x168] sm:$0xff] }
 0x675   :  { %5407 = vmatpush3.bf16.msra.mxu1 %v5406_v48  ;;  %v3665_v29 = vpop.f32.mrb[90].mxu1  ;;  %5000 = vmatprep.mubr.msk.f32.mxu1 %vm5810_vm4, %v5808_v3  ;;  %v4861_v48 = vld [vmem:[%s8008_s7 + $0x160] sm:$0xff] }
 0x676   :  { %v3681_v56 = vmax.f32 %v7718_v24, %v3665_v29  ;;  %v3667_v58 = vpop.f32.mrb[91].mxu1  ;;  %5408 = vmatprep.subr.bf16.mxu1 %v5809_v28  ;;  %v5445_v24 = vpack.c.bf16 %v4853_v22, %v4852_v6  ;;  %v5457_v43 = vpack.c.bf16 %v4862_v44, %v4861_v48  ;;  %v4865_v29 = vld [vmem:[%s8008_s7 + $0x180] sm:$0xff]  ;;  %v4215_v22 = vld [vmem:[%s8011_s11 + $0x10] sm:$0xff] }
 0x677   :  { %v4116_v58 = vld [vmem:[%s8009_s9] sm:$0xff]  ;;  %v4223_v44 = vld [vmem:[%s8011_s11 + $0x50] sm:$0xf] }
 0x678   :  { %v5466_v12 = vpack.c.bf16 %v4117_v9, %v4116_v58 }
 0x679   :  { %5410 = vmatpush3.bf16.msra.mxu1 %v5409_v63  ;;  %v7747_v50 = vpop.f32.mrb[92].mxu1  ;;  %v4866_v63 = vld [vmem:[%s8008_s7 + $0x188] sm:$0xff] }
 0x67a   :  { %v3682_v10 = vmax.f32 %v7720_v60, %v7747_v50  ;;  %v3672_v25 = vpop.f32.mrb[93].mxu1  ;;  %5411 = vmatprep.subr.bf16.mxu1 %v5809_v28  ;;  %v4863_v60 = vld [vmem:[%s8008_s7 + $0x170] sm:$0xff]  ;;  %v4119_v50 = vld [vmem:[%s8009_s9 + $0x18] sm:$0xff] }
 0x67b   :  { %v5460_v26 = vpack.c.bf16 %v4864_v46, %v4863_v60  ;;  %v4121_v25 = vld [vmem:[%s8009_s9 + $0x28] sm:$0xff] }
 0x67d   :  { %5413 = vmatpush3.bf16.msra.mxu1 %v5412_v52  ;;  %v7758_v32 = vpop.f32.mrb[94].mxu1 }
 0x67e   :  { %v3683_v8 = vmax.f32 %v7722_v2, %v7758_v32  ;;  %v3677_v40 = vpop.f32.mrb[95].mxu1  ;;  %5414 = vmatprep.subr.bf16.mxu1 %v5809_v28  ;;  %v4118_v2 = vld [vmem:[%s8009_s9 + $0x10] sm:$0xff]  ;;  %v4123_v32 = vld [vmem:[%s8009_s9 + $0x38] sm:$0xff] }
 0x67f   :  { %v5469_v52 = vpack.c.bf16 %v4119_v50, %v4118_v2  ;;  %v4125_v40 = vld [vmem:[%s8009_s9 + $0x48] sm:$0xff] }
 0x681   :  { %5416 = vmatpush3.bf16.msra.mxu1 %v5415_v39  ;;  %v5475_v39 = vpack.c.bf16 %v4123_v32, %v4122_v34 }
 0x682   :  { %5417 = vmatprep.subr.bf16.mxu1 %v5809_v28 }
 0x685   :  { %5419 = vmatpush3.bf16.msra.mxu1 %v5418_v51  ;;  %v4127_v51 = vld [vmem:[%s8009_s9 + $0x58] sm:$0xff] }
 0x686   :  { %5420 = vmatprep.subr.bf16.mxu1 %v5809_v28  ;;  %v5481_v13 = vpack.c.bf16 %v4127_v51, %v4126_v45 }
 0x688   :  { %5001 = vmatmul.mubr.msk.f32.vlgmr.msra.gmra.mrb[98].mxu1 %vm3705_vm5, %v3679_v35  ;;  %v4858_v35 = vld [vmem:[%s8008_s7 + $0x148] sm:$0xff] }
 0x689   :  { %5422 = vmatpush3.bf16.msra.mxu1 %v5421_v14  ;;  %5023 = vmatprep.mubr.msk.f32.mxu1 %vm5810_vm4, %v5808_v3  ;;  %v5451_v37 = vpack.c.bf16 %v4858_v35, %v4857_v33  ;;  %v4129_v14 = vld [vmem:[%s8009_s9 + $0x68] sm:$0xff]  ;;  %v4219_v35 = vld [vmem:[%s8011_s11 + $0x30] sm:$0xff] }
 0x68a   :  { %5423 = vmatprep.subr.bf16.mxu1 %v5809_v28  ;;  %v5484_v0 = vpack.c.bf16 %v4129_v14, %v4128_v36 }
 0x68d   :  { %5425 = vmatpush3.bf16.msra.mxu1 %v5424_v7 }
 0x68e   :  { %5426 = vmatprep.subr.bf16.mxu1 %v5809_v28 }
 0x691   :  { %5428 = vmatpush3.bf16.msra.mxu1 %v5427_v31 }
 0x692   :  { %5429 = vmatprep.subr.bf16.mxu1 %v5809_v28 }
 0x695   :  { %5431 = vmatpush3.bf16.msra.mxu1 %v5430_v19 }
 0x696   :  { %5432 = vmatprep.subr.bf16.mxu1 %v5809_v28 }
 0x699   :  { %5434 = vmatpush3.bf16.msra.mxu1 %v5433_v4 }
 0x69a   :  { %5435 = vmatprep.subr.bf16.mxu1 %v5809_v28 }
 0x69c   :  { %5024 = vmatmul.mubr.msk.f32.vlgmr.msra.gmra.mrb[100].mxu1 %vm3705_vm5, %v3681_v56  ;;  %v5463_v56 = vpack.c.bf16 %v4866_v63, %v4865_v29 }
 0x69d   :  { %5437 = vmatpush3.bf16.msra.mxu1 %v5436_v20  ;;  %5046 = vmatprep.mubr.msk.f32.mxu1 %vm5810_vm4, %v5808_v3  ;;  %v4868_v20 = vld [vmem:[%s8010_s8] ss:$0 sm:$0xff] }
 0x69e   :  { %5438 = vmatprep.subr.bf16.mxu1 %v5809_v28 }
 0x6a1   :  { %5440 = vmatpush3.bf16.msra.mxu1 %v5439_v5  ;;  %v4213_v5 = vld [vmem:[%s8011_s11] sm:$0xff] }
 0x6a2   :  { %5441 = vmatprep.subr.bf16.mxu1 %v5809_v28 }
 0x6a5   :  { %5443 = vmatpush3.bf16.msra.mxu1 %v5442_v21  ;;  %v5487_v21 = vpack.c.bf16 %v4214_v38, %v4213_v5 }
 0x6a6   :  { %5444 = vmatprep.subr.bf16.mxu1 %v5809_v28 }
 0x6a9   :  { %5446 = vmatpush3.bf16.msra.mxu1 %v5445_v24  ;;  %v4216_v24 = vld [vmem:[%s8011_s11 + $0x18] sm:$0xff] }
 0x6aa   :  { %5447 = vmatprep.subr.bf16.mxu1 %v5809_v28  ;;  %v5490_v57 = vpack.c.bf16 %v4216_v24, %v4215_v22 }
 0x6ad   :  { %5449 = vmatpush3.bf16.msra.mxu1 %v5448_v59  ;;  %v4218_v59 = vld [vmem:[%s8011_s11 + $0x28] sm:$0xff] }
 0x6ae   :  { %5450 = vmatprep.subr.bf16.mxu1 %v5809_v28  ;;  %v5493_v33 = vpack.c.bf16 %v4218_v59, %v4217_v62 }
 0x6b0   :  { %5047 = vmatmul.mubr.msk.f32.vlgmr.msra.gmra.mrb[102].mxu1 %vm3705_vm5, %v3682_v10  ;;  %v4120_v10 = vld [vmem:[%s8009_s9 + $0x20] sm:$0xff] }
 0x6b1   :  { %5452 = vmatpush3.bf16.msra.mxu1 %v5451_v37  ;;  %5069 = vmatprep.mubr.msk.f32.mxu1 %vm5810_vm4, %v5808_v3  ;;  %v5472_v30 = vpack.c.bf16 %v4121_v25, %v4120_v10  ;;  %v4220_v37 = vld [vmem:[%s8011_s11 + $0x38] sm:$0xff] }
 0x6b2   :  { %5453 = vmatprep.subr.bf16.mxu1 %v5809_v28  ;;  %v5496_v49 = vpack.c.bf16 %v4220_v37, %v4219_v35 }
 0x6b5   :  { %5455 = vmatpush3.bf16.msra.mxu1 %v5454_v42  ;;  %v4222_v42 = vld [vmem:[%s8011_s11 + $0x48] sm:$0xff] }
 0x6b6   :  { %5456 = vmatprep.subr.bf16.mxu1 %v5809_v28  ;;  %v5499_v48 = vpack.c.bf16 %v4222_v42, %v4221_v23 }
 0x6b9   :  { %5458 = vmatpush3.bf16.msra.mxu1 %v5457_v43 }
 0x6ba   :  { %5459 = vmatprep.subr.bf16.mxu1 %v5809_v28 }
 0x6bd   :  { %5461 = vmatpush3.bf16.msra.mxu1 %v5460_v26 }
 0x6be   :  { %5462 = vmatprep.subr.bf16.mxu1 %v5809_v28 }
 0x6c1   :  { %5464 = vmatpush3.bf16.msra.mxu1 %v5463_v56 }
 0x6c2   :  { %5465 = vmatprep.subr.bf16.mxu1 %v5809_v28 }
 0x6c4   :  { %5070 = vmatmul.mubr.msk.f32.vlgmr.msra.gmra.mrb[104].mxu1 %vm3705_vm5, %v3683_v8  ;;  %v4124_v8 = vld [vmem:[%s8009_s9 + $0x40] sm:$0xff] }
 0x6c5   :  { %5102 = vmatprep.mubr.msk.f32.mxu1 %vm5810_vm4, %v5808_v3  ;;  %5467 = vmatpush3.bf16.msra.mxu1 %v5466_v12  ;;  %v5478_v41 = vpack.c.bf16 %v4125_v40, %v4124_v8 }
 0x6c6   :  { %5468 = vmatprep.subr.bf16.mxu1 %v5809_v28 }
 0x6c9   :  { %5470 = vmatpush3.bf16.msra.mxu1 %v5469_v52 }
 0x6ca   :  { %5471 = vmatprep.subr.bf16.mxu1 %v5809_v28 }
 0x6cd   :  { %5473 = vmatpush3.bf16.msra.mxu1 %v5472_v30 }
 0x6ce   :  { %5474 = vmatprep.subr.bf16.mxu1 %v5809_v28 }
 0x6d1   :  { %5476 = vmatpush3.bf16.msra.mxu1 %v5475_v39 }
 0x6d2   :  { %5477 = vmatprep.subr.bf16.mxu1 %v5809_v28 }
 0x6d5   :  { %5479 = vmatpush3.bf16.msra.mxu1 %v5478_v41 }
 0x6d6   :  { %5480 = vmatprep.subr.bf16.mxu1 %v5809_v28 }
 0x6d9   :  { %5482 = vmatpush3.bf16.msra.mxu1 %v5481_v13 }
 0x6da   :  { %5483 = vmatprep.subr.bf16.mxu1 %v5809_v28 }
 0x6dd   :  { %5485 = vmatpush3.bf16.msra.mxu1 %v5484_v0 }
 0x6de   :  { %5100 = vmatprep.subr.mxu1 %v5808_v3 }
 0x6e1   :  { %5101 = vmatpush3.msra.mxu1 %v4130_v16 }
 0x6e2   :  { %5486 = vmatprep.subr.bf16.mxu1 %v5809_v28 }
 0x747   :  { %v3775_v7 = vpop.f32.mrb[96].mxu1 }
 0x748   :  { %v4979_v18 = vpop.f32.mrb[97].mxu1 }
 0x75b   :  { %v3848_v55 = vpop.f32.mrb[98].mxu1 }
 0x75c   :  { %v3849_v31 = vadd.f32 %v3848_v55, %v3775_v7  ;;  %v5002_v53 = vpop.f32.mrb[99].mxu1 }
 0x76f   :  { %v3932_v27 = vpop.f32.mrb[100].mxu1 }
 0x770   :  { %v3936_v19 = vadd.f32 %v3932_v27, %v3849_v31  ;;  %v5025_v61 = vpop.f32.mrb[101].mxu1 }
 0x783   :  { %v4017_v17 = vpop.f32.mrb[102].mxu1 }
 0x784   :  { %v4021_v4 = vadd.f32 %v4017_v17, %v3936_v19  ;;  %v5048_v11 = vpop.f32.mrb[103].mxu1 }
 0x797   :  { %v4102_v47 = vpop.f32.mrb[104].mxu1 }
 0x798   :  { %v4106_v54 = vadd.f32 %v4102_v47, %v4021_v4  ;;  %v5071_v1 = vpop.f32.mrb[105].mxu1 }
 0x79a   :  { %v4114_v15 = vadd.f32 %v4868_v20, %v4106_v54 }
 0x79c   :  { %v4115_v6 = vmax.f32 %v4114_v15, 0.0 }
 0x79e   :  { %5103 = vmatmul.mubr.msk.f32.vlgmr.msra.gmra.mrb[106].mxu1 %vm4138_vm6, %v4115_v6 }
 0x79f   :  { %5488 = vmatpush3.bf16.msra.mxu1 %v5487_v21  ;;  %5127 = vmatprep.mubr.msk.f32.mxu1 %vm5810_vm4, %v5808_v3 }
 0x7a0   :  { %5489 = vmatprep.subr.bf16.mxu1 %v5809_v28 }
 0x7a3   :  { %5491 = vmatpush3.bf16.msra.mxu1 %v5490_v57 }
 0x7a4   :  { %5492 = vmatprep.subr.bf16.mxu1 %v5809_v28 }
 0x7a7   :  { %5494 = vmatpush3.bf16.msra.mxu1 %v5493_v33 }
 0x7a8   :  { %5495 = vmatprep.subr.bf16.mxu1 %v5809_v28 }
 0x7ab   :  { %5497 = vmatpush3.bf16.msra.mxu1 %v5496_v49 }
 0x7ac   :  { %5498 = vmatprep.subr.bf16.mxu1 %v5809_v28  ;;  %v4869_v28 = vld [vmem:[%s8012_s10] ss:$0 sm:$0xff] }
 0x7af   :  { %5500 = vmatpush3.bf16.msra.mxu1 %v5499_v48 }
 0x7b0   :  { %5125 = vmatprep.subr.mxu1 %v5808_v3  ;;  %v4871_v3 = vld [vmem:[%s8013_s12] ss:$0 sm:$0xff] }
 0x7b3   :  { %5126 = vmatpush3.msk.msra.mxu1 %vm2584_vm2, %v4223_v44 }
 0x871   :  { %v4208_v43 = vpop.f32.mrb[106].mxu1 }
 0x872   :  { %v4209_v60 = vadd.f32 %v4869_v28, %v4208_v43  ;;  %v5104_v46 = vpop.f32.mrb[107].mxu1 }
 0x874   :  { %v4212_v26 = vmax.f32 %v4209_v60, 0.0 }
 0x876   :  { %5128 = vmatmul.mubr.msk.f32.vlgmr.msra.gmra.mrb[108].mxu1 %vm2553_vm3, %v4212_v26 }
 0x949   :  { %v4303_v29 = vpop.f32.mrb[108].mxu1 }
 0x94a   :  { %v4304_v63 = vadd.f32 %v4871_v3, %v4303_v29  ;;  %v5129_v56 = vpop.f32.mrb[109].mxu1 }
 0x94c   :  { %4307 = vst [vmem:[%s8014_s13] sm:$0xff] %v4304_v63 }

</bundles_post_ra>
